<compile_context>
chip_gen: v6e
topology: v6e:2x2x1
jax: 0.10.0
libtpu: 0.0.40
codegen_flags: <defaults>
</compile_context>

<pallas_src>
import numpy as np
import jax
import jax.numpy as jnp
from jax import lax
from jax.experimental import pallas as pl
from jax.experimental.pallas import tpu as pltpu

# ----------------------------- model dims (small) ---------------------------
B = 2            # batch
T_SEM = 8        # semantic token count (25hz codes)
T = T_SEM * 2    # frames after 2x nearest interpolation (50hz)
TEXT_LEN = 8     # phoneme sequence length
TEXT_VOCAB = 50
N_CODES = 64     # VQ codebook size
SSL_DIM = 48     # quantized latent dim
HIDDEN = 32      # inter/hidden channels
HALF = HIDDEN // 2
N_HEADS = 2
HEAD_DIM = HIDDEN // N_HEADS
SPEC_CH = 16     # refer spectrogram channels
T_REF = 16       # refer spectrogram frames
GIN = 32         # global conditioning (speaker embedding) dim
UP_CH = 32       # decoder channels
UP_STRIDE = 4    # decoder upsample factor
UP_K = 8         # transposed-conv kernel size
UP_PAD = 2       # transposed-conv padding (PyTorch convention)
T_AUDIO = T * UP_STRIDE

# stacked-batch row counts (batch folded along the sublane/time axis)
R_SEM = B * T_SEM
R_T = B * T
R_TXT = B * TEXT_LEN
R_REF = B * T_REF
R_AUD = B * T_AUDIO

F32 = jnp.float32
CDT = jnp.bfloat16        # weight-slab / MXU operand dtype (f32 accumulation)
LANES = 128
ALIGN = 16                # slab entry row alignment (bf16 sublane tile = 16)
NEG = -1e9                # additive attention mask value


# --------------------------- in-kernel helper math ---------------------------
def _leaky(x):
    return jnp.where(x >= 0, x, 0.1 * x)


def _relu(x):
    return jnp.maximum(x, 0.0)


def _layer_norm(x, g, b, eps=1e-5):
    mu = jnp.mean(x, axis=-1, keepdims=True)
    xc = x - mu
    var = jnp.mean(xc * xc, axis=-1, keepdims=True)
    return xc * lax.rsqrt(var + eps) * g + b


def _mm(a, b):
    """bf16 x bf16 MXU matmul with f32 accumulation."""
    return jnp.dot(a.astype(CDT), b.astype(CDT), preferred_element_type=F32)


def _mm_t(a, b):
    """Contract the last dims of both operands: (M,K) x (N,K) -> (M,N)."""
    return lax.dot_general(a.astype(CDT), b.astype(CDT),
                           (((1,), (1,)), ((), ())),
                           preferred_element_type=F32)


def _softmax_rows(s):
    m = jnp.max(s, axis=-1, keepdims=True)
    p = jnp.exp(s - m)
    # approx reciprocal -> EUP slot; tiny parity deviation, fine for inference.
    return p * pl.reciprocal(jnp.sum(p, axis=-1, keepdims=True), approx=True)


def _shift_rows(x, s, seg):
    """y[i] = x[i + s] within each length-`seg` row segment, 0 at segment edges.

    Used by the k-tap accumulated conv / polyphase upsample so the stacked
    batch segments never leak into each other.  jnp.roll (static shift) lowers
    to two sublane slices + concat; pltpu.roll is a drop-in XLU alternative at
    real sequence lengths.
    """
    if s == 0:
        return x
    n = x.shape[0]
    rolled = jnp.roll(x, -s, axis=0)
    pos = lax.broadcasted_iota(jnp.int32, (n, 1), 0) % seg
    keep = pos < (seg - s) if s > 0 else pos >= (-s)
    return jnp.where(keep, rolled, 0.0)


def _mha(q, k, v, bias, wo):
    """Multi-head attention with the output projection fused into the head
    merge: out = sum_h softmax(q_h k_h^T + bias) v_h @ wo[h] (no lane concat).
    The 1/sqrt(head_dim) scale is folded into the Q weights at pack time."""
    out = jnp.zeros((q.shape[0], HIDDEN), F32)
    for h in range(N_HEADS):
        sl = slice(h * HEAD_DIM, (h + 1) * HEAD_DIM)
        s = _mm_t(q[:, sl], k[:, sl]) + bias
        p = _softmax_rows(s)
        out = out + _mm(_mm(p, v[:, sl]), wo[sl, :])
    return out


# ------------------------------- fused kernel --------------------------------
def _make_kernel(layout):
    """Builds the kernel closed over the static slab layout {name: (row, r, c)}."""

    def kernel(codes_ref, text_ref, refer_ref, noise_ref, w_ref, o_ref, up_ref):
        def W(name):
            off, rows, cols = layout[name]
            blk = w_ref[pl.ds(off, rows), :]
            return blk if cols == LANES else blk[:, :cols]

        def conv3(x, wname, seg, bname=None):
            """Conv1d(k=3, pad=1) over row-stacked batch segments as 3
            accumulated shifted matmuls (no im2col lane-concat)."""
            off, _, cols = layout[wname]
            cin = x.shape[1]
            acc = None
            for si, s in enumerate((-1, 0, 1)):
                w_tap = w_ref[pl.ds(off + si * cin, cin), :]
                if cols != LANES:
                    w_tap = w_tap[:, :cols]
                t = _mm(_shift_rows(x, s, seg), w_tap)
                acc = t if acc is None else acc + t
            if bname is not None:
                acc = acc + W(bname)
            return acc

        # ---- 1. reference encoder -> global speaker embedding (per batch row)
        h = _relu(conv3(refer_ref[...], 'ref_w', T_REF, 'ref_b'))      # (R_REF, GIN)
        ge = _mm(W('mean_mat'), h)                                     # (B, GIN)
        # fused speaker projections: [enc_p cond | flow cond | decoder cond]
        ge_all = _mm(ge, W('ge_w')) + W('ge_b')                        # (B, 96)
        ge_rows = _mm(W('expand_t'), ge_all)                           # (R_T, 96)
        ge_enc = ge_rows[:, :HIDDEN]
        ge_flow = ge_rows[:, HIDDEN:2 * HIDDEN]
        ge_dec = ge_rows[:, 2 * HIDDEN:]

        # ---- 2. quantizer.decode (one-hot matmul) + 25hz->50hz nearest repeat
        # TODO(synk): use scalar-prefetch row gathers at real codebook sizes.
        onehot = (codes_ref[...] ==
                  lax.broadcasted_iota(jnp.int32, (R_SEM, N_CODES), 1)).astype(F32)
        quant = _mm(onehot, W('codebook'))                             # (R_SEM, SSL)
        x = _mm(W('rep'), quant)                                       # (R_T, SSL)

        # ---- 3. enc_p: ssl proj + fused-QKV self attention + FFN
        x = _mm(x, W('ssl_w')) + W('ssl_b')
        qkv = _mm(x, W('qkv_w')) + W('qkv_b')
        a = _mha(qkv[:, :HIDDEN], qkv[:, HIDDEN:2 * HIDDEN], qkv[:, 2 * HIDDEN:],
                 W('self_bias').astype(F32), W('wo_w')) + W('wo_b')
        x = _layer_norm(x + a, W('ln1_g'), W('ln1_b'))
        f = _relu(conv3(x, 'ffn1_w', T, 'ffn1_b'))
        f = conv3(f, 'ffn2_w', T, 'ffn2_b')
        x = _layer_norm(x + f, W('ln2_g'), W('ln2_b'))

        # ---- 4. MRTE-style cross attention to the text sequence + speaker cond
        toh = (text_ref[...] ==
               lax.broadcasted_iota(jnp.int32, (R_TXT, TEXT_VOCAB), 1)).astype(F32)
        temb = _mm(toh, W('text_emb'))                                 # (R_TXT, H)
        cq = _mm(x, W('cq_w')) + W('cq_b')
        ckv = _mm(temb, W('ckv_w')) + W('ckv_b')
        c = _mha(cq, ckv[:, :HIDDEN], ckv[:, HIDDEN:],
                 W('cross_bias').astype(F32), W('cwo_w')) + W('cwo_b')
        x = x + c + ge_enc

        # ---- 5. prior projection + reparameterization
        stats = _mm(x, W('proj_w')) + W('proj_b')
        m_p, logs_p = stats[:, :HIDDEN], stats[:, HIDDEN:]
        z_p = m_p + noise_ref[...] * jnp.exp(logs_p)

        # ---- 6. flow reverse (one residual coupling layer, mean-only)
        x0, x1 = z_p[:, :HALF], z_p[:, HALF:]
        hf = _mm(x0, W('fl_pre_w')) + W('fl_pre_b') + ge_flow
        wn = conv3(hf, 'fl_wn_w', T, 'fl_wn_b')
        hg = jnp.tanh(wn[:, :HIDDEN]) * jax.nn.sigmoid(wn[:, HIDDEN:])
        m = _mm(hg, W('fl_post_w')) + W('fl_post_b')
        z = jnp.concatenate([x0, x1 - m], axis=1)                      # (R_T, H)

        # ---- 7. HiFiGAN-style decoder
        d = _leaky(conv3(z, 'dec_pre_w', T, 'dec_pre_b') + ge_dec)     # (R_T, UP_CH)

        # ConvTranspose1d(k=8, s=4, p=2) as a polyphase conv: 3 accumulated
        # shifted matmuls producing all 4 phases lane-dense...
        off_p, _, _ = layout['poly_w']
        ph = None
        for si, s in enumerate((-1, 0, 1)):
            w_tap = w_ref[pl.ds(off_p + si * UP_CH, UP_CH), :]         # (UP_CH, 128)
            t = _mm(_shift_rows(d, s, T), w_tap)
            ph = t if ph is None else ph + t                           # (R_T, 4*UP_CH)
        # ...de-interleaved time-major via 4 sublane-strided scratch stores
        # (replaces the old quadratic permutation matmul).
        for r in range(UP_STRIDE):
            up_ref[pl.ds(r, R_T, stride=UP_STRIDE), :] = ph[:, r * UP_CH:(r + 1) * UP_CH]
        up = up_ref[...] + W('up_b')                                   # (R_AUD, UP_CH)

        d2 = _leaky(up)
        r1 = conv3(_leaky(d2), 'res1_w', T_AUDIO, 'res1_b')
        r1 = conv3(_leaky(r1), 'res2_w', T_AUDIO, 'res2_b')
        d3 = _leaky(d2 + r1)                                           # (R_AUD, UP_CH)

        # post conv (Cout=1) emitted lane-dense as one (1, R_AUD) = (1, 128) row:
        # contract channels of (1, UP_CH) tap rows against the shifted activations.
        off_q, _, _ = layout['post_w']
        pre = None
        for si, s in enumerate((-1, 0, 1)):
            w_row = w_ref[pl.ds(off_q + si, 1), :][:, :UP_CH]          # (1, UP_CH)
            t = _mm_t(w_row, _shift_rows(d3, s, T_AUDIO))              # (1, R_AUD)
            pre = t if pre is None else pre + t
        o_ref[...] = jnp.tanh(pre + W('post_b'))

    return kernel


# ------------------------------ parameter init -------------------------------
def init_params(key):
    def nxt():
        nonlocal key
        key, sub = jax.random.split(key)
        return sub

    def w(shape, scale=0.05):
        return scale * jax.random.normal(nxt(), shape, F32)

    def b(n):
        return jnp.zeros((n,), F32)

    p = {}
    p['ref_conv_w'] = w((3, SPEC_CH, GIN)); p['ref_conv_b'] = b(GIN)
    p['codebook'] = w((N_CODES, SSL_DIM), 0.5)
    p['text_emb'] = w((TEXT_VOCAB, HIDDEN), 0.5)
    p['ssl_proj_w'] = w((SSL_DIM, HIDDEN)); p['ssl_proj_b'] = b(HIDDEN)
    for n in ('wq', 'wk', 'wv', 'wo', 'cwq', 'cwk', 'cwv', 'cwo'):
        p[n] = w((HIDDEN, HIDDEN)); p['b' + n] = b(HIDDEN)
    p['ln1_g'] = jnp.ones((HIDDEN,), F32); p['ln1_b'] = b(HIDDEN)
    p['ln2_g'] = jnp.ones((HIDDEN,), F32); p['ln2_b'] = b(HIDDEN)
    p['ffn1_w'] = w((3, HIDDEN, 2 * HIDDEN)); p['ffn1_b'] = b(2 * HIDDEN)
    p['ffn2_w'] = w((3, 2 * HIDDEN, HIDDEN)); p['ffn2_b'] = b(HIDDEN)
    p['ge_w'] = w((GIN, HIDDEN)); p['ge_b'] = b(HIDDEN)
    p['fl_cond_w'] = w((GIN, HIDDEN)); p['fl_cond_b'] = b(HIDDEN)
    p['dec_cond_w'] = w((GIN, UP_CH)); p['dec_cond_b'] = b(UP_CH)
    p['proj_w'] = w((HIDDEN, 2 * HIDDEN)); p['proj_b'] = b(2 * HIDDEN)
    p['fl_pre_w'] = w((HALF, HIDDEN)); p['fl_pre_b'] = b(HIDDEN)
    p['fl_wn_w'] = w((3, HIDDEN, 2 * HIDDEN)); p['fl_wn_b'] = b(2 * HIDDEN)
    p['fl_post_w'] = w((HIDDEN, HALF)); p['fl_post_b'] = b(HALF)
    p['dec_pre_w'] = w((3, HIDDEN, UP_CH)); p['dec_pre_b'] = b(UP_CH)
    p['dec_up_w'] = w((UP_K, UP_CH, UP_CH)); p['dec_up_b'] = b(UP_CH)
    p['res1_w'] = w((3, UP_CH, UP_CH)); p['res1_b'] = b(UP_CH)
    p['res2_w'] = w((3, UP_CH, UP_CH)); p['res2_b'] = b(UP_CH)
    p['dec_post_w'] = w((3, UP_CH, 1)); p['dec_post_b'] = b(1)
    return p


# -------------------------- weight-slab pack (host) ---------------------------
def pack_params(p):
    """Fuse the logical params into matmul-ready blocks and pack every weight,
    bias and constant selection/mask matrix into ONE lane-dense (N, 128) bf16
    slab.  Returns (slab, layout) where layout[name] = (row_offset, rows, cols)."""
    scale = 1.0 / (HEAD_DIM ** 0.5)

    def npf(x):
        return np.asarray(x, np.float32)

    def flat(wt):   # (K, Cin, Cout) -> (K*Cin, Cout), taps stacked s = -1, 0, +1
        wt = npf(wt)
        return wt.reshape(-1, wt.shape[-1])

    # fused projections (1/sqrt(head_dim) folded into the Q columns)
    qkv_w = np.concatenate([npf(p['wq']) * scale, npf(p['wk']), npf(p['wv'])], axis=1)
    qkv_b = np.concatenate([npf(p['bwq']) * scale, npf(p['bwk']), npf(p['bwv'])])
    ckv_w = np.concatenate([npf(p['cwk']), npf(p['cwv'])], axis=1)
    ckv_b = np.concatenate([npf(p['bcwk']), npf(p['bcwv'])])
    ge_w = np.concatenate([npf(p['ge_w']), npf(p['fl_cond_w']), npf(p['dec_cond_w'])],
                          axis=1)
    ge_b = np.concatenate([npf(p['ge_b']), npf(p['fl_cond_b']), npf(p['dec_cond_b'])])

    # polyphase ConvTranspose1d(k=8, s=4, p=2): tap s in {-1,0,+1} row blocks,
    # phase r in {0..3} column blocks; kernel index k = r + UP_PAD - UP_STRIDE*s.
    # TODO(synk): PyTorch ConvTranspose1d stores (Cin, Cout, K) - transpose on import.
    up_w = npf(p['dec_up_w'])
    blocks = []
    for s in (-1, 0, 1):
        row = []
        for r in range(UP_STRIDE):
            k = r + UP_PAD - UP_STRIDE * s
            row.append(up_w[k] if 0 <= k < UP_K
                       else np.zeros((UP_CH, UP_CH), np.float32))
        blocks.append(np.concatenate(row, axis=1))
    poly_w = np.concatenate(blocks, axis=0)                 # (3*UP_CH, 4*UP_CH)

    # constant selection / averaging / masking matrices (built once host-side)
    rep = np.zeros((R_T, R_SEM), np.float32)                # 25hz -> 50hz repeat
    mean_mat = np.zeros((B, R_REF), np.float32)             # per-batch time mean
    expand_t = np.zeros((R_T, B), np.float32)               # broadcast ge to rows
    self_bias = np.full((R_T, R_T), NEG, np.float32)        # block-diag attn mask
    cross_bias = np.full((R_T, R_TXT), NEG, np.float32)
    for bi in range(B):
        for t in range(T):
            rep[bi * T + t, bi * T_SEM + t // 2] = 1.0
        mean_mat[bi, bi * T_REF:(bi + 1) * T_REF] = 1.0 / T_REF
        expand_t[bi * T:(bi + 1) * T, bi] = 1.0
        self_bias[bi * T:(bi + 1) * T, bi * T:(bi + 1) * T] = 0.0
        cross_bias[bi * T:(bi + 1) * T, bi * TEXT_LEN:(bi + 1) * TEXT_LEN] = 0.0

    entries = [
        ('rep', rep), ('mean_mat', mean_mat), ('expand_t', expand_t),
        ('self_bias', self_bias), ('cross_bias', cross_bias),
        ('ref_w', flat(p['ref_conv_w'])), ('ref_b', npf(p['ref_conv_b'])),
        ('codebook', npf(p['codebook'])), ('text_emb', npf(p['text_emb'])),
        ('ssl_w', npf(p['ssl_proj_w'])), ('ssl_b', npf(p['ssl_proj_b'])),
        ('qkv_w', qkv_w), ('qkv_b', qkv_b),
        ('wo_w', npf(p['wo'])), ('wo_b', npf(p['bwo'])),
        ('ln1_g', npf(p['ln1_g'])), ('ln1_b', npf(p['ln1_b'])),
        ('ffn1_w', flat(p['ffn1_w'])), ('ffn1_b', npf(p['ffn1_b'])),
        ('ffn2_w', flat(p['ffn2_w'])), ('ffn2_b', npf(p['ffn2_b'])),
        ('ln2_g', npf(p['ln2_g'])), ('ln2_b', npf(p['ln2_b'])),
        ('cq_w', npf(p['cwq']) * scale), ('cq_b', npf(p['bcwq']) * scale),
        ('ckv_w', ckv_w), ('ckv_b', ckv_b),
        ('cwo_w', npf(p['cwo'])), ('cwo_b', npf(p['bcwo'])),
        ('ge_w', ge_w), ('ge_b', ge_b),
        ('proj_w', npf(p['proj_w'])), ('proj_b', npf(p['proj_b'])),
        ('fl_pre_w', npf(p['fl_pre_w'])), ('fl_pre_b', npf(p['fl_pre_b'])),
        ('fl_wn_w', flat(p['fl_wn_w'])), ('fl_wn_b', npf(p['fl_wn_b'])),
        ('fl_post_w', npf(p['fl_post_w'])), ('fl_post_b', npf(p['fl_post_b'])),
        ('dec_pre_w', flat(p['dec_pre_w'])), ('dec_pre_b', npf(p['dec_pre_b'])),
        ('poly_w', poly_w), ('up_b', npf(p['dec_up_b'])),
        ('res1_w', flat(p['res1_w'])), ('res1_b', npf(p['res1_b'])),
        ('res2_w', flat(p['res2_w'])), ('res2_b', npf(p['res2_b'])),
        ('post_w', npf(p['dec_post_w'])[:, :, 0]), ('post_b', npf(p['dec_post_b'])),
    ]

    layout = {}
    rows = []
    off = 0
    for name, arr in entries:
        arr = np.asarray(arr, np.float32)
        if arr.ndim == 1:
            arr = arr.reshape(1, -1)
        r, c = arr.shape
        assert c <= LANES, (name, arr.shape)
        rpad = ((r + ALIGN - 1) // ALIGN) * ALIGN
        buf = np.zeros((rpad, LANES), np.float32)
        buf[:r, :c] = arr
        layout[name] = (off, r, c)
        rows.append(buf)
        off += rpad
    slab = jnp.asarray(np.concatenate(rows, axis=0), CDT)
    return slab, layout


# --------------------------------- forward -----------------------------------
def make_vits_forward(layout, n_slab_rows):
    """Mirrors VitsModel.forward(pred_semantic, text_seq, refer, randn)."""
    kernel = _make_kernel(layout)

    def forward(slab, pred_semantic, text_seq, refer, randn):
        # batch folded along the sublane/time axis (wrapper-side reshapes are
        # plain XLA layout plumbing, not kernel work)
        codes = pred_semantic.reshape(R_SEM, 1).astype(jnp.int32)
        text = text_seq.reshape(R_TXT, 1).astype(jnp.int32)
        ref2 = jnp.transpose(refer, (0, 2, 1)).reshape(R_REF, SPEC_CH)
        noise2 = jnp.transpose(randn, (0, 2, 1)).reshape(R_T, HIDDEN)

        in_specs = [
            pl.BlockSpec((R_SEM, 1), lambda i: (0, 0)),
            pl.BlockSpec((R_TXT, 1), lambda i: (0, 0)),
            pl.BlockSpec((R_REF, SPEC_CH), lambda i: (0, 0)),
            pl.BlockSpec((R_T, HIDDEN), lambda i: (0, 0)),
            pl.BlockSpec((n_slab_rows, LANES), lambda i: (0, 0)),  # weight slab
        ]
        audio_row = pl.pallas_call(
            kernel,
            out_shape=jax.ShapeDtypeStruct((1, R_AUD), F32),      # lane-dense (1,128)
            grid=(1,),
            in_specs=in_specs,
            out_specs=pl.BlockSpec((1, R_AUD), lambda i: (0, 0)),
            scratch_shapes=[pltpu.VMEM((R_AUD, UP_CH), F32)],      # up-sample buffer
            compiler_params=pltpu.CompilerParams(
                dimension_semantics=("arbitrary",),
                vmem_limit_bytes=32 * 1024 * 1024),
            cost_estimate=pl.CostEstimate(
                flops=5_200_000,
                transcendentals=7_000,
                bytes_accessed=int(n_slab_rows) * LANES * 2 + 20_000),
        )(codes, text, ref2, noise2, slab)
        return audio_row.reshape(B, 1, T_AUDIO)

    return forward


# ----------------------------------- main ------------------------------------
if __name__ == "__main__":
    key = jax.random.PRNGKey(0)
    kp, kc, kt, kr, kn = jax.random.split(key, 5)

    params = init_params(kp)
    slab, layout = pack_params(params)   # one-time host-side weight fusion/packing

    pred_semantic = jax.random.randint(kc, (B, 1, T_SEM), 0, N_CODES, dtype=jnp.int32)
    text_seq = jax.random.randint(kt, (B, TEXT_LEN), 0, TEXT_VOCAB, dtype=jnp.int32)
    refer = jax.random.normal(kr, (B, SPEC_CH, T_REF), F32)
    randn = jax.random.normal(kn, (B, HIDDEN, T), F32)

    fwd = jax.jit(make_vits_forward(layout, slab.shape[0]))
    audio = jax.block_until_ready(fwd(slab, pred_semantic, text_seq, refer, randn))

    assert audio.shape == (B, 1, T_AUDIO), audio.shape
    assert audio.dtype == jnp.float32
    assert bool(jnp.all(jnp.isfinite(audio)))
    print("KERNEL_OK")
</pallas_src>

<mosaic_0001>
module attributes {stable_mosaic.version = 11 : i64} {
  func.func @kernel(%arg0: i32, %arg1: memref<16x1xi32, #tpu.memory_space<vmem>>, %arg2: memref<16x1xi32, #tpu.memory_space<vmem>>, %arg3: memref<32x16xf32, #tpu.memory_space<vmem>>, %arg4: memref<32x32xf32, #tpu.memory_space<vmem>>, %arg5: memref<1792x128xbf16, #tpu.memory_space<vmem>>, %arg6: memref<1x128xf32, #tpu.memory_space<vmem>>, %arg7: memref<128x32xf32, #tpu.memory_space<vmem>>) attributes {dimension_semantics = [#tpu.dimension_semantics<arbitrary>], iteration_bounds = array<i64: 1>, scalar_prefetch = 0 : i64, scratch_operands = 1 : i64, tpu.core_type = #tpu.core_type<tc>, window_params = [{pipeline_mode = #tpu.pipeline_mode<synchronous>, transform_indices = @transform_0, window_bounds = array<i64: 16, 1>}, {pipeline_mode = #tpu.pipeline_mode<synchronous>, transform_indices = @transform_1, window_bounds = array<i64: 16, 1>}, {pipeline_mode = #tpu.pipeline_mode<synchronous>, transform_indices = @transform_2, window_bounds = array<i64: 32, 16>}, {pipeline_mode = #tpu.pipeline_mode<synchronous>, transform_indices = @transform_3, window_bounds = array<i64: 32, 32>}, {pipeline_mode = #tpu.pipeline_mode<synchronous>, transform_indices = @transform_4, window_bounds = array<i64: 1792, 128>}, {pipeline_mode = #tpu.pipeline_mode<synchronous>, transform_indices = @transform_5, window_bounds = array<i64: 1, 128>}]} {
    %c0 = arith.constant 0 : index
    %c0_0 = arith.constant 0 : index
    %0 = vector.load %arg3[%c0, %c0_0] : memref<32x16xf32, #tpu.memory_space<vmem>>, vector<32x16xf32>
    %c144 = arith.constant 144 : index
    %c0_1 = arith.constant 0 : index
    %1 = vector.load %arg5[%c144, %c0_1] : memref<1792x128xbf16, #tpu.memory_space<vmem>>, vector<16x128xbf16>
    %2 = vector.extract_strided_slice %1 {offsets = [0, 0], sizes = [16, 32], strides = [1, 1]} : vector<16x128xbf16> to vector<16x32xbf16>
    %3 = vector.extract_strided_slice %0 {offsets = [31, 0], sizes = [1, 16], strides = [1, 1]} : vector<32x16xf32> to vector<1x16xf32>
    %4 = vector.extract_strided_slice %0 {offsets = [0, 0], sizes = [31, 16], strides = [1, 1]} : vector<32x16xf32> to vector<31x16xf32>
    %5 = tpu.concatenate %3, %4 in 0 : vector<1x16xf32>, vector<31x16xf32> -> vector<32x16xf32>
    %6 = tpu.iota {dimensions = array<i32: 0>} : vector<32x1xi32>
    %c16_i32 = arith.constant 16 : i32
    %c0_i32 = arith.constant 0 : i32
    %7 = arith.cmpi eq, %c16_i32, %c0_i32 : i32
    %c1_i32 = arith.constant 1 : i32
    %8 = arith.select %7, %c1_i32, %c16_i32 : i32
    %9 = vector.broadcast %8 : i32 to vector<32x1xi32>
    %10 = arith.remsi %6, %9 : vector<32x1xi32>
    %c0_i32_2 = arith.constant 0 : i32
    %11 = vector.broadcast %c0_i32_2 : i32 to vector<32x1xi32>
    %12 = arith.cmpi ne, %10, %11 : vector<32x1xi32>
    %c0_i32_3 = arith.constant 0 : i32
    %13 = vector.broadcast %c0_i32_3 : i32 to vector<32x1xi32>
    %14 = arith.cmpi slt, %10, %13 : vector<32x1xi32>
    %c0_i32_4 = arith.constant 0 : i32
    %15 = arith.cmpi slt, %8, %c0_i32_4 : i32
    %16 = vector.broadcast %15 : i1 to vector<32x1xi1>
    %17 = vector.broadcast %16 : vector<32x1xi1> to vector<32x1xi1>
    %18 = arith.xori %14, %17 : vector<32x1xi1>
    %19 = arith.andi %18, %12 : vector<32x1xi1>
    %20 = vector.broadcast %8 : i32 to vector<32x1xi32>
    %21 = arith.addi %10, %20 : vector<32x1xi32>
    %22 = arith.select %19, %21, %10 : vector<32x1xi1>, vector<32x1xi32>
    %c1_i32_5 = arith.constant 1 : i32
    %23 = vector.broadcast %c1_i32_5 : i32 to vector<32x1xi32>
    %24 = arith.cmpi sge, %22, %23 : vector<32x1xi32>
    %cst = arith.constant 0.000000e+00 : f32
    %25 = vector.shape_cast %24 : vector<32x1xi1> to vector<32x1xi1>
    %26 = vector.broadcast %25 : vector<32x1xi1> to vector<32x16xi1>
    %27 = vector.broadcast %cst : f32 to vector<32x16xf32>
    %28 = arith.select %26, %5, %27 : vector<32x16xi1>, vector<32x16xf32>
    %29 = arith.truncf %28 : vector<32x16xf32> to vector<32x16xbf16>
    %cst_6 = arith.constant dense<0.000000e+00> : vector<32x32xf32>
    %30 = tpu.matmul %29, %2, %cst_6 {dimension_numbers = #tpu.dot_dimension_numbers<[1], [0], [0], [1], [0, 0, 1, 1], [], []>} : vector<32x16xbf16>, vector<16x32xbf16>, vector<32x32xf32> -> vector<32x32xf32>
    %c160 = arith.constant 160 : index
    %c0_7 = arith.constant 0 : index
    %31 = vector.load %arg5[%c160, %c0_7] : memref<1792x128xbf16, #tpu.memory_space<vmem>>, vector<16x128xbf16>
    %32 = vector.extract_strided_slice %31 {offsets = [0, 0], sizes = [16, 32], strides = [1, 1]} : vector<16x128xbf16> to vector<16x32xbf16>
    %33 = arith.truncf %0 : vector<32x16xf32> to vector<32x16xbf16>
    %cst_8 = arith.constant dense<0.000000e+00> : vector<32x32xf32>
    %34 = tpu.matmul %33, %32, %cst_8 {dimension_numbers = #tpu.dot_dimension_numbers<[1], [0], [0], [1], [0, 0, 1, 1], [], []>} : vector<32x16xbf16>, vector<16x32xbf16>, vector<32x32xf32> -> vector<32x32xf32>
    %35 = arith.addf %30, %34 : vector<32x32xf32>
    %c176 = arith.constant 176 : index
    %c0_9 = arith.constant 0 : index
    %36 = vector.load %arg5[%c176, %c0_9] : memref<1792x128xbf16, #tpu.memory_space<vmem>>, vector<16x128xbf16>
    %37 = vector.extract_strided_slice %36 {offsets = [0, 0], sizes = [16, 32], strides = [1, 1]} : vector<16x128xbf16> to vector<16x32xbf16>
    %38 = vector.extract_strided_slice %0 {offsets = [1, 0], sizes = [31, 16], strides = [1, 1]} : vector<32x16xf32> to vector<31x16xf32>
    %39 = vector.extract_strided_slice %0 {offsets = [0, 0], sizes = [1, 16], strides = [1, 1]} : vector<32x16xf32> to vector<1x16xf32>
    %40 = tpu.concatenate %38, %39 in 0 : vector<31x16xf32>, vector<1x16xf32> -> vector<32x16xf32>
    %41 = tpu.iota {dimensions = array<i32: 0>} : vector<32x1xi32>
    %c16_i32_10 = arith.constant 16 : i32
    %c0_i32_11 = arith.constant 0 : i32
    %42 = arith.cmpi eq, %c16_i32_10, %c0_i32_11 : i32
    %c1_i32_12 = arith.constant 1 : i32
    %43 = arith.select %42, %c1_i32_12, %c16_i32_10 : i32
    %44 = vector.broadcast %43 : i32 to vector<32x1xi32>
    %45 = arith.remsi %41, %44 : vector<32x1xi32>
    %c0_i32_13 = arith.constant 0 : i32
    %46 = vector.broadcast %c0_i32_13 : i32 to vector<32x1xi32>
    %47 = arith.cmpi ne, %45, %46 : vector<32x1xi32>
    %c0_i32_14 = arith.constant 0 : i32
    %48 = vector.broadcast %c0_i32_14 : i32 to vector<32x1xi32>
    %49 = arith.cmpi slt, %45, %48 : vector<32x1xi32>
    %c0_i32_15 = arith.constant 0 : i32
    %50 = arith.cmpi slt, %43, %c0_i32_15 : i32
    %51 = vector.broadcast %50 : i1 to vector<32x1xi1>
    %52 = vector.broadcast %51 : vector<32x1xi1> to vector<32x1xi1>
    %53 = arith.xori %49, %52 : vector<32x1xi1>
    %54 = arith.andi %53, %47 : vector<32x1xi1>
    %55 = vector.broadcast %43 : i32 to vector<32x1xi32>
    %56 = arith.addi %45, %55 : vector<32x1xi32>
    %57 = arith.select %54, %56, %45 : vector<32x1xi1>, vector<32x1xi32>
    %c15_i32 = arith.constant 15 : i32
    %58 = vector.broadcast %c15_i32 : i32 to vector<32x1xi32>
    %59 = arith.cmpi slt, %57, %58 : vector<32x1xi32>
    %cst_16 = arith.constant 0.000000e+00 : f32
    %60 = vector.shape_cast %59 : vector<32x1xi1> to vector<32x1xi1>
    %61 = vector.broadcast %60 : vector<32x1xi1> to vector<32x16xi1>
    %62 = vector.broadcast %cst_16 : f32 to vector<32x16xf32>
    %63 = arith.select %61, %40, %62 : vector<32x16xi1>, vector<32x16xf32>
    %64 = arith.truncf %63 : vector<32x16xf32> to vector<32x16xbf16>
    %cst_17 = arith.constant dense<0.000000e+00> : vector<32x32xf32>
    %65 = tpu.matmul %64, %37, %cst_17 {dimension_numbers = #tpu.dot_dimension_numbers<[1], [0], [0], [1], [0, 0, 1, 1], [], []>} : vector<32x16xbf16>, vector<16x32xbf16>, vector<32x32xf32> -> vector<32x32xf32>
    %66 = arith.addf %35, %65 : vector<32x32xf32>
    %c192 = arith.constant 192 : index
    %c0_18 = arith.constant 0 : index
    %67 = vector.load %arg5[%c192, %c0_18] : memref<1792x128xbf16, #tpu.memory_space<vmem>>, vector<1x128xbf16>
    %68 = vector.extract_strided_slice %67 {offsets = [0, 0], sizes = [1, 32], strides = [1, 1]} : vector<1x128xbf16> to vector<1x32xbf16>
    %69 = arith.extf %68 : vector<1x32xbf16> to vector<1x32xf32>
    %70 = vector.broadcast %69 : vector<1x32xf32> to vector<32x32xf32>
    %71 = arith.addf %66, %70 : vector<32x32xf32>
    %cst_19 = arith.constant 0.000000e+00 : f32
    %72 = vector.broadcast %cst_19 : f32 to vector<32x32xf32>
    %73 = arith.maximumf %71, %72 : vector<32x32xf32>
    %c32 = arith.constant 32 : index
    %c0_20 = arith.constant 0 : index
    %74 = vector.load %arg5[%c32, %c0_20] : memref<1792x128xbf16, #tpu.memory_space<vmem>>, vector<2x128xbf16>
    %75 = vector.extract_strided_slice %74 {offsets = [0, 0], sizes = [2, 32], strides = [1, 1]} : vector<2x128xbf16> to vector<2x32xbf16>
    %76 = arith.truncf %73 : vector<32x32xf32> to vector<32x32xbf16>
    %cst_21 = arith.constant dense<0.000000e+00> : vector<2x32xf32>
    %77 = tpu.matmul %75, %76, %cst_21 {dimension_numbers = #tpu.dot_dimension_numbers<[1], [0], [0], [1], [0, 0, 1, 1], [], []>} : vector<2x32xbf16>, vector<32x32xbf16>, vector<2x32xf32> -> vector<2x32xf32>
    %c1024 = arith.constant 1024 : index
    %c0_22 = arith.constant 0 : index
    %78 = vector.load %arg5[%c1024, %c0_22] : memref<1792x128xbf16, #tpu.memory_space<vmem>>, vector<32x128xbf16>
    %79 = vector.extract_strided_slice %78 {offsets = [0, 0], sizes = [32, 96], strides = [1, 1]} : vector<32x128xbf16> to vector<32x96xbf16>
    %80 = arith.truncf %77 : vector<2x32xf32> to vector<2x32xbf16>
    %cst_23 = arith.constant dense<0.000000e+00> : vector<2x96xf32>
    %81 = tpu.matmul %80, %79, %cst_23 {dimension_numbers = #tpu.dot_dimension_numbers<[1], [0], [0], [1], [0, 0, 1, 1], [], []>} : vector<2x32xbf16>, vector<32x96xbf16>, vector<2x96xf32> -> vector<2x96xf32>
    %c1056 = arith.constant 1056 : index
    %c0_24 = arith.constant 0 : index
    %82 = vector.load %arg5[%c1056, %c0_24] : memref<1792x128xbf16, #tpu.memory_space<vmem>>, vector<1x128xbf16>
    %83 = vector.extract_strided_slice %82 {offsets = [0, 0], sizes = [1, 96], strides = [1, 1]} : vector<1x128xbf16> to vector<1x96xbf16>
    %84 = arith.extf %83 : vector<1x96xbf16> to vector<1x96xf32>
    %85 = vector.broadcast %84 : vector<1x96xf32> to vector<2x96xf32>
    %86 = arith.addf %81, %85 : vector<2x96xf32>
    %c48 = arith.constant 48 : index
    %c0_25 = arith.constant 0 : index
    %87 = vector.load %arg5[%c48, %c0_25] : memref<1792x128xbf16, #tpu.memory_space<vmem>>, vector<32x128xbf16>
    %88 = vector.extract_strided_slice %87 {offsets = [0, 0], sizes = [32, 2], strides = [1, 1]} : vector<32x128xbf16> to vector<32x2xbf16>
    %89 = arith.truncf %86 : vector<2x96xf32> to vector<2x96xbf16>
    %cst_26 = arith.constant dense<0.000000e+00> : vector<32x96xf32>
    %90 = tpu.matmul %88, %89, %cst_26 {dimension_numbers = #tpu.dot_dimension_numbers<[1], [0], [0], [1], [0, 0, 1, 1], [], []>} : vector<32x2xbf16>, vector<2x96xbf16>, vector<32x96xf32> -> vector<32x96xf32>
    %91 = vector.extract_strided_slice %90 {offsets = [0, 0], sizes = [32, 32], strides = [1, 1]} : vector<32x96xf32> to vector<32x32xf32>
    %92 = vector.extract_strided_slice %90 {offsets = [0, 32], sizes = [32, 32], strides = [1, 1]} : vector<32x96xf32> to vector<32x32xf32>
    %93 = vector.extract_strided_slice %90 {offsets = [0, 64], sizes = [32, 32], strides = [1, 1]} : vector<32x96xf32> to vector<32x32xf32>
    %c0_27 = arith.constant 0 : index
    %c0_28 = arith.constant 0 : index
    %94 = vector.load %arg1[%c0_27, %c0_28] : memref<16x1xi32, #tpu.memory_space<vmem>>, vector<16x1xi32>
    %95 = tpu.iota {dimensions = array<i32: 1>} : vector<16x64xi32>
    %96 = vector.broadcast %94 : vector<16x1xi32> to vector<16x64xi32>
    %97 = arith.cmpi eq, %96, %95 : vector<16x64xi32>
    %98 = arith.extui %97 : vector<16x64xi1> to vector<16x64xi32>
    %99 = arith.sitofp %98 : vector<16x64xi32> to vector<16x64xf32>
    %c208 = arith.constant 208 : index
    %c0_29 = arith.constant 0 : index
    %100 = vector.load %arg5[%c208, %c0_29] : memref<1792x128xbf16, #tpu.memory_space<vmem>>, vector<64x128xbf16>
    %101 = vector.extract_strided_slice %100 {offsets = [0, 0], sizes = [64, 48], strides = [1, 1]} : vector<64x128xbf16> to vector<64x48xbf16>
    %102 = arith.truncf %99 : vector<16x64xf32> to vector<16x64xbf16>
    %cst_30 = arith.constant dense<0.000000e+00> : vector<16x48xf32>
    %103 = tpu.matmul %102, %101, %cst_30 {dimension_numbers = #tpu.dot_dimension_numbers<[1], [0], [0], [1], [0, 0, 1, 1], [], []>} : vector<16x64xbf16>, vector<64x48xbf16>, vector<16x48xf32> -> vector<16x48xf32>
    %c0_31 = arith.constant 0 : index
    %c0_32 = arith.constant 0 : index
    %104 = vector.load %arg5[%c0_31, %c0_32] : memref<1792x128xbf16, #tpu.memory_space<vmem>>, vector<32x128xbf16>
    %105 = vector.extract_strided_slice %104 {offsets = [0, 0], sizes = [32, 16], strides = [1, 1]} : vector<32x128xbf16> to vector<32x16xbf16>
    %106 = arith.truncf %103 : vector<16x48xf32> to vector<16x48xbf16>
    %cst_33 = arith.constant dense<0.000000e+00> : vector<32x48xf32>
    %107 = tpu.matmul %105, %106, %cst_33 {dimension_numbers = #tpu.dot_dimension_numbers<[1], [0], [0], [1], [0, 0, 1, 1], [], []>} : vector<32x16xbf16>, vector<16x48xbf16>, vector<32x48xf32> -> vector<32x48xf32>
    %c336 = arith.constant 336 : index
    %c0_34 = arith.constant 0 : index
    %108 = vector.load %arg5[%c336, %c0_34] : memref<1792x128xbf16, #tpu.memory_space<vmem>>, vector<48x128xbf16>
    %109 = vector.extract_strided_slice %108 {offsets = [0, 0], sizes = [48, 32], strides = [1, 1]} : vector<48x128xbf16> to vector<48x32xbf16>
    %110 = arith.truncf %107 : vector<32x48xf32> to vector<32x48xbf16>
    %cst_35 = arith.constant dense<0.000000e+00> : vector<32x32xf32>
    %111 = tpu.matmul %110, %109, %cst_35 {dimension_numbers = #tpu.dot_dimension_numbers<[1], [0], [0], [1], [0, 0, 1, 1], [], []>} : vector<32x48xbf16>, vector<48x32xbf16>, vector<32x32xf32> -> vector<32x32xf32>
    %c384 = arith.constant 384 : index
    %c0_36 = arith.constant 0 : index
    %112 = vector.load %arg5[%c384, %c0_36] : memref<1792x128xbf16, #tpu.memory_space<vmem>>, vector<1x128xbf16>
    %113 = vector.extract_strided_slice %112 {offsets = [0, 0], sizes = [1, 32], strides = [1, 1]} : vector<1x128xbf16> to vector<1x32xbf16>
    %114 = arith.extf %113 : vector<1x32xbf16> to vector<1x32xf32>
    %115 = vector.broadcast %114 : vector<1x32xf32> to vector<32x32xf32>
    %116 = arith.addf %111, %115 : vector<32x32xf32>
    %c400 = arith.constant 400 : index
    %c0_37 = arith.constant 0 : index
    %117 = vector.load %arg5[%c400, %c0_37] : memref<1792x128xbf16, #tpu.memory_space<vmem>>, vector<32x128xbf16>
    %118 = vector.extract_strided_slice %117 {offsets = [0, 0], sizes = [32, 96], strides = [1, 1]} : vector<32x128xbf16> to vector<32x96xbf16>
    %119 = arith.truncf %116 : vector<32x32xf32> to vector<32x32xbf16>
    %cst_38 = arith.constant dense<0.000000e+00> : vector<32x96xf32>
    %120 = tpu.matmul %119, %118, %cst_38 {dimension_numbers = #tpu.dot_dimension_numbers<[1], [0], [0], [1], [0, 0, 1, 1], [], []>} : vector<32x32xbf16>, vector<32x96xbf16>, vector<32x96xf32> -> vector<32x96xf32>
    %c432 = arith.constant 432 : index
    %c0_39 = arith.constant 0 : index
    %121 = vector.load %arg5[%c432, %c0_39] : memref<1792x128xbf16, #tpu.memory_space<vmem>>, vector<1x128xbf16>
    %122 = vector.extract_strided_slice %121 {offsets = [0, 0], sizes = [1, 96], strides = [1, 1]} : vector<1x128xbf16> to vector<1x96xbf16>
    %123 = arith.extf %122 : vector<1x96xbf16> to vector<1x96xf32>
    %124 = vector.broadcast %123 : vector<1x96xf32> to vector<32x96xf32>
    %125 = arith.addf %120, %124 : vector<32x96xf32>
    %126 = vector.extract_strided_slice %125 {offsets = [0, 0], sizes = [32, 32], strides = [1, 1]} : vector<32x96xf32> to vector<32x32xf32>
    %127 = vector.extract_strided_slice %125 {offsets = [0, 32], sizes = [32, 32], strides = [1, 1]} : vector<32x96xf32> to vector<32x32xf32>
    %128 = vector.extract_strided_slice %125 {offsets = [0, 64], sizes = [32, 32], strides = [1, 1]} : vector<32x96xf32> to vector<32x32xf32>
    %c80 = arith.constant 80 : index
    %c0_40 = arith.constant 0 : index
    %129 = vector.load %arg5[%c80, %c0_40] : memref<1792x128xbf16, #tpu.memory_space<vmem>>, vector<32x128xbf16>
    %130 = vector.extract_strided_slice %129 {offsets = [0, 0], sizes = [32, 32], strides = [1, 1]} : vector<32x128xbf16> to vector<32x32xbf16>
    %131 = arith.extf %130 : vector<32x32xbf16> to vector<32x32xf32>
    %c448 = arith.constant 448 : index
    %c0_41 = arith.constant 0 : index
    %132 = vector.load %arg5[%c448, %c0_41] : memref<1792x128xbf16, #tpu.memory_space<vmem>>, vector<32x128xbf16>
    %133 = vector.extract_strided_slice %132 {offsets = [0, 0], sizes = [32, 32], strides = [1, 1]} : vector<32x128xbf16> to vector<32x32xbf16>
    %cst_42 = arith.constant 0.000000e+00 : f32
    %134 = vector.broadcast %cst_42 : f32 to vector<32x32xf32>
    %135 = vector.extract_strided_slice %126 {offsets = [0, 0], sizes = [32, 16], strides = [1, 1]} : vector<32x32xf32> to vector<32x16xf32>
    %136 = vector.extract_strided_slice %127 {offsets = [0, 0], sizes = [32, 16], strides = [1, 1]} : vector<32x32xf32> to vector<32x16xf32>
    %137 = arith.truncf %135 : vector<32x16xf32> to vector<32x16xbf16>
    %138 = arith.truncf %136 : vector<32x16xf32> to vector<32x16xbf16>
    %cst_43 = arith.constant dense<0.000000e+00> : vector<32x32xf32>
    %139 = tpu.matmul %137, %138, %cst_43 {dimension_numbers = #tpu.dot_dimension_numbers<[1], [1], [0], [0], [0, 0, 1, 0], [], []>} : vector<32x16xbf16>, vector<32x16xbf16>, vector<32x32xf32> -> vector<32x32xf32>
    %140 = arith.addf %139, %131 : vector<32x32xf32>
    %cst_44 = arith.constant dense<0xFF800000> : vector<32xf32>
    %141 = vector.multi_reduction <maximumf>, %140, %cst_44 [1] : vector<32x32xf32> to vector<32xf32>
    %142 = vector.shape_cast %141 : vector<32xf32> to vector<32x1xf32>
    %143 = vector.broadcast %142 : vector<32x1xf32> to vector<32x32xf32>
    %144 = arith.subf %140, %143 : vector<32x32xf32>
    %145 = math.exp %144 : vector<32x32xf32>
    %cst_45 = arith.constant dense<0.000000e+00> : vector<32xf32>
    %146 = vector.multi_reduction <add>, %145, %cst_45 [1] : vector<32x32xf32> to vector<32xf32>
    %147 = vector.shape_cast %146 : vector<32xf32> to vector<32x1xf32>
    %148 = tpu.reciprocal %147 {approx = true} : vector<32x1xf32> -> vector<32x1xf32>
    %149 = vector.broadcast %148 : vector<32x1xf32> to vector<32x32xf32>
    %150 = arith.mulf %145, %149 : vector<32x32xf32>
    %151 = vector.extract_strided_slice %128 {offsets = [0, 0], sizes = [32, 16], strides = [1, 1]} : vector<32x32xf32> to vector<32x16xf32>
    %152 = arith.truncf %150 : vector<32x32xf32> to vector<32x32xbf16>
    %153 = arith.truncf %151 : vector<32x16xf32> to vector<32x16xbf16>
    %cst_46 = arith.constant dense<0.000000e+00> : vector<32x16xf32>
    %154 = tpu.matmul %152, %153, %cst_46 {dimension_numbers = #tpu.dot_dimension_numbers<[1], [0], [0], [1], [0, 0, 1, 1], [], []>} : vector<32x32xbf16>, vector<32x16xbf16>, vector<32x16xf32> -> vector<32x16xf32>
    %155 = vector.extract_strided_slice %133 {offsets = [0, 0], sizes = [16, 32], strides = [1, 1]} : vector<32x32xbf16> to vector<16x32xbf16>
    %156 = arith.truncf %154 : vector<32x16xf32> to vector<32x16xbf16>
    %cst_47 = arith.constant dense<0.000000e+00> : vector<32x32xf32>
    %157 = tpu.matmul %156, %155, %cst_47 {dimension_numbers = #tpu.dot_dimension_numbers<[1], [0], [0], [1], [0, 0, 1, 1], [], []>} : vector<32x16xbf16>, vector<16x32xbf16>, vector<32x32xf32> -> vector<32x32xf32>
    %158 = arith.addf %134, %157 : vector<32x32xf32>
    %159 = vector.extract_strided_slice %126 {offsets = [0, 16], sizes = [32, 16], strides = [1, 1]} : vector<32x32xf32> to vector<32x16xf32>
    %160 = vector.extract_strided_slice %127 {offsets = [0, 16], sizes = [32, 16], strides = [1, 1]} : vector<32x32xf32> to vector<32x16xf32>
    %161 = arith.truncf %159 : vector<32x16xf32> to vector<32x16xbf16>
    %162 = arith.truncf %160 : vector<32x16xf32> to vector<32x16xbf16>
    %cst_48 = arith.constant dense<0.000000e+00> : vector<32x32xf32>
    %163 = tpu.matmul %161, %162, %cst_48 {dimension_numbers = #tpu.dot_dimension_numbers<[1], [1], [0], [0], [0, 0, 1, 0], [], []>} : vector<32x16xbf16>, vector<32x16xbf16>, vector<32x32xf32> -> vector<32x32xf32>
    %164 = arith.addf %163, %131 : vector<32x32xf32>
    %cst_49 = arith.constant dense<0xFF800000> : vector<32xf32>
    %165 = vector.multi_reduction <maximumf>, %164, %cst_49 [1] : vector<32x32xf32> to vector<32xf32>
    %166 = vector.shape_cast %165 : vector<32xf32> to vector<32x1xf32>
    %167 = vector.broadcast %166 : vector<32x1xf32> to vector<32x32xf32>
    %168 = arith.subf %164, %167 : vector<32x32xf32>
    %169 = math.exp %168 : vector<32x32xf32>
    %cst_50 = arith.constant dense<0.000000e+00> : vector<32xf32>
    %170 = vector.multi_reduction <add>, %169, %cst_50 [1] : vector<32x32xf32> to vector<32xf32>
    %171 = vector.shape_cast %170 : vector<32xf32> to vector<32x1xf32>
    %172 = tpu.reciprocal %171 {approx = true} : vector<32x1xf32> -> vector<32x1xf32>
    %173 = vector.broadcast %172 : vector<32x1xf32> to vector<32x32xf32>
    %174 = arith.mulf %169, %173 : vector<32x32xf32>
    %175 = vector.extract_strided_slice %128 {offsets = [0, 16], sizes = [32, 16], strides = [1, 1]} : vector<32x32xf32> to vector<32x16xf32>
    %176 = arith.truncf %174 : vector<32x32xf32> to vector<32x32xbf16>
    %177 = arith.truncf %175 : vector<32x16xf32> to vector<32x16xbf16>
    %cst_51 = arith.constant dense<0.000000e+00> : vector<32x16xf32>
    %178 = tpu.matmul %176, %177, %cst_51 {dimension_numbers = #tpu.dot_dimension_numbers<[1], [0], [0], [1], [0, 0, 1, 1], [], []>} : vector<32x32xbf16>, vector<32x16xbf16>, vector<32x16xf32> -> vector<32x16xf32>
    %179 = vector.extract_strided_slice %133 {offsets = [16, 0], sizes = [16, 32], strides = [1, 1]} : vector<32x32xbf16> to vector<16x32xbf16>
    %180 = arith.truncf %178 : vector<32x16xf32> to vector<32x16xbf16>
    %cst_52 = arith.constant dense<0.000000e+00> : vector<32x32xf32>
    %181 = tpu.matmul %180, %179, %cst_52 {dimension_numbers = #tpu.dot_dimension_numbers<[1], [0], [0], [1], [0, 0, 1, 1], [], []>} : vector<32x16xbf16>, vector<16x32xbf16>, vector<32x32xf32> -> vector<32x32xf32>
    %182 = arith.addf %158, %181 : vector<32x32xf32>
    %c480 = arith.constant 480 : index
    %c0_53 = arith.constant 0 : index
    %183 = vector.load %arg5[%c480, %c0_53] : memref<1792x128xbf16, #tpu.memory_space<vmem>>, vector<1x128xbf16>
    %184 = vector.extract_strided_slice %183 {offsets = [0, 0], sizes = [1, 32], strides = [1, 1]} : vector<1x128xbf16> to vector<1x32xbf16>
    %185 = arith.extf %184 : vector<1x32xbf16> to vector<1x32xf32>
    %186 = vector.broadcast %185 : vector<1x32xf32> to vector<32x32xf32>
    %187 = arith.addf %182, %186 : vector<32x32xf32>
    %188 = arith.addf %116, %187 : vector<32x32xf32>
    %c496 = arith.constant 496 : index
    %c0_54 = arith.constant 0 : index
    %189 = vector.load %arg5[%c496, %c0_54] : memref<1792x128xbf16, #tpu.memory_space<vmem>>, vector<1x128xbf16>
    %190 = vector.extract_strided_slice %189 {offsets = [0, 0], sizes = [1, 32], strides = [1, 1]} : vector<1x128xbf16> to vector<1x32xbf16>
    %c512 = arith.constant 512 : index
    %c0_55 = arith.constant 0 : index
    %191 = vector.load %arg5[%c512, %c0_55] : memref<1792x128xbf16, #tpu.memory_space<vmem>>, vector<1x128xbf16>
    %192 = vector.extract_strided_slice %191 {offsets = [0, 0], sizes = [1, 32], strides = [1, 1]} : vector<1x128xbf16> to vector<1x32xbf16>
    %cst_56 = arith.constant dense<0.000000e+00> : vector<32xf32>
    %193 = vector.multi_reduction <add>, %188, %cst_56 [1] : vector<32x32xf32> to vector<32xf32>
    %194 = vector.shape_cast %193 : vector<32xf32> to vector<32x1xf32>
    %cst_57 = arith.constant 3.200000e+01 : f32
    %195 = vector.broadcast %cst_57 : f32 to vector<32x1xf32>
    %196 = arith.divf %194, %195 : vector<32x1xf32>
    %197 = vector.broadcast %196 : vector<32x1xf32> to vector<32x32xf32>
    %198 = arith.subf %188, %197 : vector<32x32xf32>
    %199 = arith.mulf %198, %198 : vector<32x32xf32>
    %cst_58 = arith.constant dense<0.000000e+00> : vector<32xf32>
    %200 = vector.multi_reduction <add>, %199, %cst_58 [1] : vector<32x32xf32> to vector<32xf32>
    %201 = vector.shape_cast %200 : vector<32xf32> to vector<32x1xf32>
    %cst_59 = arith.constant 3.200000e+01 : f32
    %202 = vector.broadcast %cst_59 : f32 to vector<32x1xf32>
    %203 = arith.divf %201, %202 : vector<32x1xf32>
    %cst_60 = arith.constant 9.99999974E-6 : f32
    %204 = vector.broadcast %cst_60 : f32 to vector<32x1xf32>
    %205 = arith.addf %203, %204 : vector<32x1xf32>
    %206 = math.rsqrt %205 : vector<32x1xf32>
    %207 = vector.broadcast %206 : vector<32x1xf32> to vector<32x32xf32>
    %208 = arith.mulf %198, %207 : vector<32x32xf32>
    %209 = arith.extf %190 : vector<1x32xbf16> to vector<1x32xf32>
    %210 = vector.broadcast %209 : vector<1x32xf32> to vector<32x32xf32>
    %211 = arith.mulf %208, %210 : vector<32x32xf32>
    %212 = arith.extf %192 : vector<1x32xbf16> to vector<1x32xf32>
    %213 = vector.broadcast %212 : vector<1x32xf32> to vector<32x32xf32>
    %214 = arith.addf %211, %213 : vector<32x32xf32>
    %c528 = arith.constant 528 : index
    %c0_61 = arith.constant 0 : index
    %215 = vector.load %arg5[%c528, %c0_61] : memref<1792x128xbf16, #tpu.memory_space<vmem>>, vector<32x128xbf16>
    %216 = vector.extract_strided_slice %215 {offsets = [0, 0], sizes = [32, 64], strides = [1, 1]} : vector<32x128xbf16> to vector<32x64xbf16>
    %217 = vector.extract_strided_slice %214 {offsets = [31, 0], sizes = [1, 32], strides = [1, 1]} : vector<32x32xf32> to vector<1x32xf32>
    %218 = vector.extract_strided_slice %214 {offsets = [0, 0], sizes = [31, 32], strides = [1, 1]} : vector<32x32xf32> to vector<31x32xf32>
    %219 = tpu.concatenate %217, %218 in 0 : vector<1x32xf32>, vector<31x32xf32> -> vector<32x32xf32>
    %220 = tpu.iota {dimensions = array<i32: 0>} : vector<32x1xi32>
    %c16_i32_62 = arith.constant 16 : i32
    %c0_i32_63 = arith.constant 0 : i32
    %221 = arith.cmpi eq, %c16_i32_62, %c0_i32_63 : i32
    %c1_i32_64 = arith.constant 1 : i32
    %222 = arith.select %221, %c1_i32_64, %c16_i32_62 : i32
    %223 = vector.broadcast %222 : i32 to vector<32x1xi32>
    %224 = arith.remsi %220, %223 : vector<32x1xi32>
    %c0_i32_65 = arith.constant 0 : i32
    %225 = vector.broadcast %c0_i32_65 : i32 to vector<32x1xi32>
    %226 = arith.cmpi ne, %224, %225 : vector<32x1xi32>
    %c0_i32_66 = arith.constant 0 : i32
    %227 = vector.broadcast %c0_i32_66 : i32 to vector<32x1xi32>
    %228 = arith.cmpi slt, %224, %227 : vector<32x1xi32>
    %c0_i32_67 = arith.constant 0 : i32
    %229 = arith.cmpi slt, %222, %c0_i32_67 : i32
    %230 = vector.broadcast %229 : i1 to vector<32x1xi1>
    %231 = vector.broadcast %230 : vector<32x1xi1> to vector<32x1xi1>
    %232 = arith.xori %228, %231 : vector<32x1xi1>
    %233 = arith.andi %232, %226 : vector<32x1xi1>
    %234 = vector.broadcast %222 : i32 to vector<32x1xi32>
    %235 = arith.addi %224, %234 : vector<32x1xi32>
    %236 = arith.select %233, %235, %224 : vector<32x1xi1>, vector<32x1xi32>
    %c1_i32_68 = arith.constant 1 : i32
    %237 = vector.broadcast %c1_i32_68 : i32 to vector<32x1xi32>
    %238 = arith.cmpi sge, %236, %237 : vector<32x1xi32>
    %cst_69 = arith.constant 0.000000e+00 : f32
    %239 = vector.shape_cast %238 : vector<32x1xi1> to vector<32x1xi1>
    %240 = vector.broadcast %239 : vector<32x1xi1> to vector<32x32xi1>
    %241 = vector.broadcast %cst_69 : f32 to vector<32x32xf32>
    %242 = arith.select %240, %219, %241 : vector<32x32xi1>, vector<32x32xf32>
    %243 = arith.truncf %242 : vector<32x32xf32> to vector<32x32xbf16>
    %cst_70 = arith.constant dense<0.000000e+00> : vector<32x64xf32>
    %244 = tpu.matmul %243, %216, %cst_70 {dimension_numbers = #tpu.dot_dimension_numbers<[1], [0], [0], [1], [0, 0, 1, 1], [], []>} : vector<32x32xbf16>, vector<32x64xbf16>, vector<32x64xf32> -> vector<32x64xf32>
    %c560 = arith.constant 560 : index
    %c0_71 = arith.constant 0 : index
    %245 = vector.load %arg5[%c560, %c0_71] : memref<1792x128xbf16, #tpu.memory_space<vmem>>, vector<32x128xbf16>
    %246 = vector.extract_strided_slice %245 {offsets = [0, 0], sizes = [32, 64], strides = [1, 1]} : vector<32x128xbf16> to vector<32x64xbf16>
    %247 = arith.truncf %214 : vector<32x32xf32> to vector<32x32xbf16>
    %cst_72 = arith.constant dense<0.000000e+00> : vector<32x64xf32>
    %248 = tpu.matmul %247, %246, %cst_72 {dimension_numbers = #tpu.dot_dimension_numbers<[1], [0], [0], [1], [0, 0, 1, 1], [], []>} : vector<32x32xbf16>, vector<32x64xbf16>, vector<32x64xf32> -> vector<32x64xf32>
    %249 = arith.addf %244, %248 : vector<32x64xf32>
    %c592 = arith.constant 592 : index
    %c0_73 = arith.constant 0 : index
    %250 = vector.load %arg5[%c592, %c0_73] : memref<1792x128xbf16, #tpu.memory_space<vmem>>, vector<32x128xbf16>
    %251 = vector.extract_strided_slice %250 {offsets = [0, 0], sizes = [32, 64], strides = [1, 1]} : vector<32x128xbf16> to vector<32x64xbf16>
    %252 = vector.extract_strided_slice %214 {offsets = [1, 0], sizes = [31, 32], strides = [1, 1]} : vector<32x32xf32> to vector<31x32xf32>
    %253 = vector.extract_strided_slice %214 {offsets = [0, 0], sizes = [1, 32], strides = [1, 1]} : vector<32x32xf32> to vector<1x32xf32>
    %254 = tpu.concatenate %252, %253 in 0 : vector<31x32xf32>, vector<1x32xf32> -> vector<32x32xf32>
    %255 = tpu.iota {dimensions = array<i32: 0>} : vector<32x1xi32>
    %c16_i32_74 = arith.constant 16 : i32
    %c0_i32_75 = arith.constant 0 : i32
    %256 = arith.cmpi eq, %c16_i32_74, %c0_i32_75 : i32
    %c1_i32_76 = arith.constant 1 : i32
    %257 = arith.select %256, %c1_i32_76, %c16_i32_74 : i32
    %258 = vector.broadcast %257 : i32 to vector<32x1xi32>
    %259 = arith.remsi %255, %258 : vector<32x1xi32>
    %c0_i32_77 = arith.constant 0 : i32
    %260 = vector.broadcast %c0_i32_77 : i32 to vector<32x1xi32>
    %261 = arith.cmpi ne, %259, %260 : vector<32x1xi32>
    %c0_i32_78 = arith.constant 0 : i32
    %262 = vector.broadcast %c0_i32_78 : i32 to vector<32x1xi32>
    %263 = arith.cmpi slt, %259, %262 : vector<32x1xi32>
    %c0_i32_79 = arith.constant 0 : i32
    %264 = arith.cmpi slt, %257, %c0_i32_79 : i32
    %265 = vector.broadcast %264 : i1 to vector<32x1xi1>
    %266 = vector.broadcast %265 : vector<32x1xi1> to vector<32x1xi1>
    %267 = arith.xori %263, %266 : vector<32x1xi1>
    %268 = arith.andi %267, %261 : vector<32x1xi1>
    %269 = vector.broadcast %257 : i32 to vector<32x1xi32>
    %270 = arith.addi %259, %269 : vector<32x1xi32>
    %271 = arith.select %268, %270, %259 : vector<32x1xi1>, vector<32x1xi32>
    %c15_i32_80 = arith.constant 15 : i32
    %272 = vector.broadcast %c15_i32_80 : i32 to vector<32x1xi32>
    %273 = arith.cmpi slt, %271, %272 : vector<32x1xi32>
    %cst_81 = arith.constant 0.000000e+00 : f32
    %274 = vector.shape_cast %273 : vector<32x1xi1> to vector<32x1xi1>
    %275 = vector.broadcast %274 : vector<32x1xi1> to vector<32x32xi1>
    %276 = vector.broadcast %cst_81 : f32 to vector<32x32xf32>
    %277 = arith.select %275, %254, %276 : vector<32x32xi1>, vector<32x32xf32>
    %278 = arith.truncf %277 : vector<32x32xf32> to vector<32x32xbf16>
    %cst_82 = arith.constant dense<0.000000e+00> : vector<32x64xf32>
    %279 = tpu.matmul %278, %251, %cst_82 {dimension_numbers = #tpu.dot_dimension_numbers<[1], [0], [0], [1], [0, 0, 1, 1], [], []>} : vector<32x32xbf16>, vector<32x64xbf16>, vector<32x64xf32> -> vector<32x64xf32>
    %280 = arith.addf %249, %279 : vector<32x64xf32>
    %c624 = arith.constant 624 : index
    %c0_83 = arith.constant 0 : index
    %281 = vector.load %arg5[%c624, %c0_83] : memref<1792x128xbf16, #tpu.memory_space<vmem>>, vector<1x128xbf16>
    %282 = vector.extract_strided_slice %281 {offsets = [0, 0], sizes = [1, 64], strides = [1, 1]} : vector<1x128xbf16> to vector<1x64xbf16>
    %283 = arith.extf %282 : vector<1x64xbf16> to vector<1x64xf32>
    %284 = vector.broadcast %283 : vector<1x64xf32> to vector<32x64xf32>
    %285 = arith.addf %280, %284 : vector<32x64xf32>
    %cst_84 = arith.constant 0.000000e+00 : f32
    %286 = vector.broadcast %cst_84 : f32 to vector<32x64xf32>
    %287 = arith.maximumf %285, %286 : vector<32x64xf32>
    %c640 = arith.constant 640 : index
    %c0_85 = arith.constant 0 : index
    %288 = vector.load %arg5[%c640, %c0_85] : memref<1792x128xbf16, #tpu.memory_space<vmem>>, vector<64x128xbf16>
    %289 = vector.extract_strided_slice %288 {offsets = [0, 0], sizes = [64, 32], strides = [1, 1]} : vector<64x128xbf16> to vector<64x32xbf16>
    %290 = vector.extract_strided_slice %287 {offsets = [31, 0], sizes = [1, 64], strides = [1, 1]} : vector<32x64xf32> to vector<1x64xf32>
    %291 = vector.extract_strided_slice %287 {offsets = [0, 0], sizes = [31, 64], strides = [1, 1]} : vector<32x64xf32> to vector<31x64xf32>
    %292 = tpu.concatenate %290, %291 in 0 : vector<1x64xf32>, vector<31x64xf32> -> vector<32x64xf32>
    %293 = tpu.iota {dimensions = array<i32: 0>} : vector<32x1xi32>
    %c16_i32_86 = arith.constant 16 : i32
    %c0_i32_87 = arith.constant 0 : i32
    %294 = arith.cmpi eq, %c16_i32_86, %c0_i32_87 : i32
    %c1_i32_88 = arith.constant 1 : i32
    %295 = arith.select %294, %c1_i32_88, %c16_i32_86 : i32
    %296 = vector.broadcast %295 : i32 to vector<32x1xi32>
    %297 = arith.remsi %293, %296 : vector<32x1xi32>
    %c0_i32_89 = arith.constant 0 : i32
    %298 = vector.broadcast %c0_i32_89 : i32 to vector<32x1xi32>
    %299 = arith.cmpi ne, %297, %298 : vector<32x1xi32>
    %c0_i32_90 = arith.constant 0 : i32
    %300 = vector.broadcast %c0_i32_90 : i32 to vector<32x1xi32>
    %301 = arith.cmpi slt, %297, %300 : vector<32x1xi32>
    %c0_i32_91 = arith.constant 0 : i32
    %302 = arith.cmpi slt, %295, %c0_i32_91 : i32
    %303 = vector.broadcast %302 : i1 to vector<32x1xi1>
    %304 = vector.broadcast %303 : vector<32x1xi1> to vector<32x1xi1>
    %305 = arith.xori %301, %304 : vector<32x1xi1>
    %306 = arith.andi %305, %299 : vector<32x1xi1>
    %307 = vector.broadcast %295 : i32 to vector<32x1xi32>
    %308 = arith.addi %297, %307 : vector<32x1xi32>
    %309 = arith.select %306, %308, %297 : vector<32x1xi1>, vector<32x1xi32>
    %c1_i32_92 = arith.constant 1 : i32
    %310 = vector.broadcast %c1_i32_92 : i32 to vector<32x1xi32>
    %311 = arith.cmpi sge, %309, %310 : vector<32x1xi32>
    %cst_93 = arith.constant 0.000000e+00 : f32
    %312 = vector.shape_cast %311 : vector<32x1xi1> to vector<32x1xi1>
    %313 = vector.broadcast %312 : vector<32x1xi1> to vector<32x64xi1>
    %314 = vector.broadcast %cst_93 : f32 to vector<32x64xf32>
    %315 = arith.select %313, %292, %314 : vector<32x64xi1>, vector<32x64xf32>
    %316 = arith.truncf %315 : vector<32x64xf32> to vector<32x64xbf16>
    %cst_94 = arith.constant dense<0.000000e+00> : vector<32x32xf32>
    %317 = tpu.matmul %316, %289, %cst_94 {dimension_numbers = #tpu.dot_dimension_numbers<[1], [0], [0], [1], [0, 0, 1, 1], [], []>} : vector<32x64xbf16>, vector<64x32xbf16>, vector<32x32xf32> -> vector<32x32xf32>
    %c704 = arith.constant 704 : index
    %c0_95 = arith.constant 0 : index
    %318 = vector.load %arg5[%c704, %c0_95] : memref<1792x128xbf16, #tpu.memory_space<vmem>>, vector<64x128xbf16>
    %319 = vector.extract_strided_slice %318 {offsets = [0, 0], sizes = [64, 32], strides = [1, 1]} : vector<64x128xbf16> to vector<64x32xbf16>
    %320 = arith.truncf %287 : vector<32x64xf32> to vector<32x64xbf16>
    %cst_96 = arith.constant dense<0.000000e+00> : vector<32x32xf32>
    %321 = tpu.matmul %320, %319, %cst_96 {dimension_numbers = #tpu.dot_dimension_numbers<[1], [0], [0], [1], [0, 0, 1, 1], [], []>} : vector<32x64xbf16>, vector<64x32xbf16>, vector<32x32xf32> -> vector<32x32xf32>
    %322 = arith.addf %317, %321 : vector<32x32xf32>
    %c768 = arith.constant 768 : index
    %c0_97 = arith.constant 0 : index
    %323 = vector.load %arg5[%c768, %c0_97] : memref<1792x128xbf16, #tpu.memory_space<vmem>>, vector<64x128xbf16>
    %324 = vector.extract_strided_slice %323 {offsets = [0, 0], sizes = [64, 32], strides = [1, 1]} : vector<64x128xbf16> to vector<64x32xbf16>
    %325 = vector.extract_strided_slice %287 {offsets = [1, 0], sizes = [31, 64], strides = [1, 1]} : vector<32x64xf32> to vector<31x64xf32>
    %326 = vector.extract_strided_slice %287 {offsets = [0, 0], sizes = [1, 64], strides = [1, 1]} : vector<32x64xf32> to vector<1x64xf32>
    %327 = tpu.concatenate %325, %326 in 0 : vector<31x64xf32>, vector<1x64xf32> -> vector<32x64xf32>
    %328 = tpu.iota {dimensions = array<i32: 0>} : vector<32x1xi32>
    %c16_i32_98 = arith.constant 16 : i32
    %c0_i32_99 = arith.constant 0 : i32
    %329 = arith.cmpi eq, %c16_i32_98, %c0_i32_99 : i32
    %c1_i32_100 = arith.constant 1 : i32
    %330 = arith.select %329, %c1_i32_100, %c16_i32_98 : i32
    %331 = vector.broadcast %330 : i32 to vector<32x1xi32>
    %332 = arith.remsi %328, %331 : vector<32x1xi32>
    %c0_i32_101 = arith.constant 0 : i32
    %333 = vector.broadcast %c0_i32_101 : i32 to vector<32x1xi32>
    %334 = arith.cmpi ne, %332, %333 : vector<32x1xi32>
    %c0_i32_102 = arith.constant 0 : i32
    %335 = vector.broadcast %c0_i32_102 : i32 to vector<32x1xi32>
    %336 = arith.cmpi slt, %332, %335 : vector<32x1xi32>
    %c0_i32_103 = arith.constant 0 : i32
    %337 = arith.cmpi slt, %330, %c0_i32_103 : i32
    %338 = vector.broadcast %337 : i1 to vector<32x1xi1>
    %339 = vector.broadcast %338 : vector<32x1xi1> to vector<32x1xi1>
    %340 = arith.xori %336, %339 : vector<32x1xi1>
    %341 = arith.andi %340, %334 : vector<32x1xi1>
    %342 = vector.broadcast %330 : i32 to vector<32x1xi32>
    %343 = arith.addi %332, %342 : vector<32x1xi32>
    %344 = arith.select %341, %343, %332 : vector<32x1xi1>, vector<32x1xi32>
    %c15_i32_104 = arith.constant 15 : i32
    %345 = vector.broadcast %c15_i32_104 : i32 to vector<32x1xi32>
    %346 = arith.cmpi slt, %344, %345 : vector<32x1xi32>
    %cst_105 = arith.constant 0.000000e+00 : f32
    %347 = vector.shape_cast %346 : vector<32x1xi1> to vector<32x1xi1>
    %348 = vector.broadcast %347 : vector<32x1xi1> to vector<32x64xi1>
    %349 = vector.broadcast %cst_105 : f32 to vector<32x64xf32>
    %350 = arith.select %348, %327, %349 : vector<32x64xi1>, vector<32x64xf32>
    %351 = arith.truncf %350 : vector<32x64xf32> to vector<32x64xbf16>
    %cst_106 = arith.constant dense<0.000000e+00> : vector<32x32xf32>
    %352 = tpu.matmul %351, %324, %cst_106 {dimension_numbers = #tpu.dot_dimension_numbers<[1], [0], [0], [1], [0, 0, 1, 1], [], []>} : vector<32x64xbf16>, vector<64x32xbf16>, vector<32x32xf32> -> vector<32x32xf32>
    %353 = arith.addf %322, %352 : vector<32x32xf32>
    %c832 = arith.constant 832 : index
    %c0_107 = arith.constant 0 : index
    %354 = vector.load %arg5[%c832, %c0_107] : memref<1792x128xbf16, #tpu.memory_space<vmem>>, vector<1x128xbf16>
    %355 = vector.extract_strided_slice %354 {offsets = [0, 0], sizes = [1, 32], strides = [1, 1]} : vector<1x128xbf16> to vector<1x32xbf16>
    %356 = arith.extf %355 : vector<1x32xbf16> to vector<1x32xf32>
    %357 = vector.broadcast %356 : vector<1x32xf32> to vector<32x32xf32>
    %358 = arith.addf %353, %357 : vector<32x32xf32>
    %359 = arith.addf %214, %358 : vector<32x32xf32>
    %c848 = arith.constant 848 : index
    %c0_108 = arith.constant 0 : index
    %360 = vector.load %arg5[%c848, %c0_108] : memref<1792x128xbf16, #tpu.memory_space<vmem>>, vector<1x128xbf16>
    %361 = vector.extract_strided_slice %360 {offsets = [0, 0], sizes = [1, 32], strides = [1, 1]} : vector<1x128xbf16> to vector<1x32xbf16>
    %c864 = arith.constant 864 : index
    %c0_109 = arith.constant 0 : index
    %362 = vector.load %arg5[%c864, %c0_109] : memref<1792x128xbf16, #tpu.memory_space<vmem>>, vector<1x128xbf16>
    %363 = vector.extract_strided_slice %362 {offsets = [0, 0], sizes = [1, 32], strides = [1, 1]} : vector<1x128xbf16> to vector<1x32xbf16>
    %cst_110 = arith.constant dense<0.000000e+00> : vector<32xf32>
    %364 = vector.multi_reduction <add>, %359, %cst_110 [1] : vector<32x32xf32> to vector<32xf32>
    %365 = vector.shape_cast %364 : vector<32xf32> to vector<32x1xf32>
    %cst_111 = arith.constant 3.200000e+01 : f32
    %366 = vector.broadcast %cst_111 : f32 to vector<32x1xf32>
    %367 = arith.divf %365, %366 : vector<32x1xf32>
    %368 = vector.broadcast %367 : vector<32x1xf32> to vector<32x32xf32>
    %369 = arith.subf %359, %368 : vector<32x32xf32>
    %370 = arith.mulf %369, %369 : vector<32x32xf32>
    %cst_112 = arith.constant dense<0.000000e+00> : vector<32xf32>
    %371 = vector.multi_reduction <add>, %370, %cst_112 [1] : vector<32x32xf32> to vector<32xf32>
    %372 = vector.shape_cast %371 : vector<32xf32> to vector<32x1xf32>
    %cst_113 = arith.constant 3.200000e+01 : f32
    %373 = vector.broadcast %cst_113 : f32 to vector<32x1xf32>
    %374 = arith.divf %372, %373 : vector<32x1xf32>
    %cst_114 = arith.constant 9.99999974E-6 : f32
    %375 = vector.broadcast %cst_114 : f32 to vector<32x1xf32>
    %376 = arith.addf %374, %375 : vector<32x1xf32>
    %377 = math.rsqrt %376 : vector<32x1xf32>
    %378 = vector.broadcast %377 : vector<32x1xf32> to vector<32x32xf32>
    %379 = arith.mulf %369, %378 : vector<32x32xf32>
    %380 = arith.extf %361 : vector<1x32xbf16> to vector<1x32xf32>
    %381 = vector.broadcast %380 : vector<1x32xf32> to vector<32x32xf32>
    %382 = arith.mulf %379, %381 : vector<32x32xf32>
    %383 = arith.extf %363 : vector<1x32xbf16> to vector<1x32xf32>
    %384 = vector.broadcast %383 : vector<1x32xf32> to vector<32x32xf32>
    %385 = arith.addf %382, %384 : vector<32x32xf32>
    %c0_115 = arith.constant 0 : index
    %c0_116 = arith.constant 0 : index
    %386 = vector.load %arg2[%c0_115, %c0_116] : memref<16x1xi32, #tpu.memory_space<vmem>>, vector<16x1xi32>
    %387 = tpu.iota {dimensions = array<i32: 1>} : vector<16x50xi32>
    %388 = vector.broadcast %386 : vector<16x1xi32> to vector<16x50xi32>
    %389 = arith.cmpi eq, %388, %387 : vector<16x50xi32>
    %390 = arith.extui %389 : vector<16x50xi1> to vector<16x50xi32>
    %391 = arith.sitofp %390 : vector<16x50xi32> to vector<16x50xf32>
    %c272 = arith.constant 272 : index
    %c0_117 = arith.constant 0 : index
    %392 = vector.load %arg5[%c272, %c0_117] : memref<1792x128xbf16, #tpu.memory_space<vmem>>, vector<50x128xbf16>
    %393 = vector.extract_strided_slice %392 {offsets = [0, 0], sizes = [50, 32], strides = [1, 1]} : vector<50x128xbf16> to vector<50x32xbf16>
    %394 = arith.truncf %391 : vector<16x50xf32> to vector<16x50xbf16>
    %cst_118 = arith.constant dense<0.000000e+00> : vector<16x32xf32>
    %395 = tpu.matmul %394, %393, %cst_118 {dimension_numbers = #tpu.dot_dimension_numbers<[1], [0], [0], [1], [0, 0, 1, 1], [], []>} : vector<16x50xbf16>, vector<50x32xbf16>, vector<16x32xf32> -> vector<16x32xf32>
    %c880 = arith.constant 880 : index
    %c0_119 = arith.constant 0 : index
    %396 = vector.load %arg5[%c880, %c0_119] : memref<1792x128xbf16, #tpu.memory_space<vmem>>, vector<32x128xbf16>
    %397 = vector.extract_strided_slice %396 {offsets = [0, 0], sizes = [32, 32], strides = [1, 1]} : vector<32x128xbf16> to vector<32x32xbf16>
    %398 = arith.truncf %385 : vector<32x32xf32> to vector<32x32xbf16>
    %cst_120 = arith.constant dense<0.000000e+00> : vector<32x32xf32>
    %399 = tpu.matmul %398, %397, %cst_120 {dimension_numbers = #tpu.dot_dimension_numbers<[1], [0], [0], [1], [0, 0, 1, 1], [], []>} : vector<32x32xbf16>, vector<32x32xbf16>, vector<32x32xf32> -> vector<32x32xf32>
    %c912 = arith.constant 912 : index
    %c0_121 = arith.constant 0 : index
    %400 = vector.load %arg5[%c912, %c0_121] : memref<1792x128xbf16, #tpu.memory_space<vmem>>, vector<1x128xbf16>
    %401 = vector.extract_strided_slice %400 {offsets = [0, 0], sizes = [1, 32], strides = [1, 1]} : vector<1x128xbf16> to vector<1x32xbf16>
    %402 = arith.extf %401 : vector<1x32xbf16> to vector<1x32xf32>
    %403 = vector.broadcast %402 : vector<1x32xf32> to vector<32x32xf32>
    %404 = arith.addf %399, %403 : vector<32x32xf32>
    %c928 = arith.constant 928 : index
    %c0_122 = arith.constant 0 : index
    %405 = vector.load %arg5[%c928, %c0_122] : memref<1792x128xbf16, #tpu.memory_space<vmem>>, vector<32x128xbf16>
    %406 = vector.extract_strided_slice %405 {offsets = [0, 0], sizes = [32, 64], strides = [1, 1]} : vector<32x128xbf16> to vector<32x64xbf16>
    %407 = arith.truncf %395 : vector<16x32xf32> to vector<16x32xbf16>
    %cst_123 = arith.constant dense<0.000000e+00> : vector<16x64xf32>
    %408 = tpu.matmul %407, %406, %cst_123 {dimension_numbers = #tpu.dot_dimension_numbers<[1], [0], [0], [1], [0, 0, 1, 1], [], []>} : vector<16x32xbf16>, vector<32x64xbf16>, vector<16x64xf32> -> vector<16x64xf32>
    %c960 = arith.constant 960 : index
    %c0_124 = arith.constant 0 : index
    %409 = vector.load %arg5[%c960, %c0_124] : memref<1792x128xbf16, #tpu.memory_space<vmem>>, vector<1x128xbf16>
    %410 = vector.extract_strided_slice %409 {offsets = [0, 0], sizes = [1, 64], strides = [1, 1]} : vector<1x128xbf16> to vector<1x64xbf16>
    %411 = arith.extf %410 : vector<1x64xbf16> to vector<1x64xf32>
    %412 = vector.broadcast %411 : vector<1x64xf32> to vector<16x64xf32>
    %413 = arith.addf %408, %412 : vector<16x64xf32>
    %414 = vector.extract_strided_slice %413 {offsets = [0, 0], sizes = [16, 32], strides = [1, 1]} : vector<16x64xf32> to vector<16x32xf32>
    %415 = vector.extract_strided_slice %413 {offsets = [0, 32], sizes = [16, 32], strides = [1, 1]} : vector<16x64xf32> to vector<16x32xf32>
    %c112 = arith.constant 112 : index
    %c0_125 = arith.constant 0 : index
    %416 = vector.load %arg5[%c112, %c0_125] : memref<1792x128xbf16, #tpu.memory_space<vmem>>, vector<32x128xbf16>
    %417 = vector.extract_strided_slice %416 {offsets = [0, 0], sizes = [32, 16], strides = [1, 1]} : vector<32x128xbf16> to vector<32x16xbf16>
    %418 = arith.extf %417 : vector<32x16xbf16> to vector<32x16xf32>
    %c976 = arith.constant 976 : index
    %c0_126 = arith.constant 0 : index
    %419 = vector.load %arg5[%c976, %c0_126] : memref<1792x128xbf16, #tpu.memory_space<vmem>>, vector<32x128xbf16>
    %420 = vector.extract_strided_slice %419 {offsets = [0, 0], sizes = [32, 32], strides = [1, 1]} : vector<32x128xbf16> to vector<32x32xbf16>
    %cst_127 = arith.constant 0.000000e+00 : f32
    %421 = vector.broadcast %cst_127 : f32 to vector<32x32xf32>
    %422 = vector.extract_strided_slice %404 {offsets = [0, 0], sizes = [32, 16], strides = [1, 1]} : vector<32x32xf32> to vector<32x16xf32>
    %423 = vector.extract_strided_slice %414 {offsets = [0, 0], sizes = [16, 16], strides = [1, 1]} : vector<16x32xf32> to vector<16x16xf32>
    %424 = arith.truncf %422 : vector<32x16xf32> to vector<32x16xbf16>
    %425 = arith.truncf %423 : vector<16x16xf32> to vector<16x16xbf16>
    %cst_128 = arith.constant dense<0.000000e+00> : vector<32x16xf32>
    %426 = tpu.matmul %424, %425, %cst_128 {dimension_numbers = #tpu.dot_dimension_numbers<[1], [1], [0], [0], [0, 0, 1, 0], [], []>} : vector<32x16xbf16>, vector<16x16xbf16>, vector<32x16xf32> -> vector<32x16xf32>
    %427 = arith.addf %426, %418 : vector<32x16xf32>
    %cst_129 = arith.constant dense<0xFF800000> : vector<32xf32>
    %428 = vector.multi_reduction <maximumf>, %427, %cst_129 [1] : vector<32x16xf32> to vector<32xf32>
    %429 = vector.shape_cast %428 : vector<32xf32> to vector<32x1xf32>
    %430 = vector.broadcast %429 : vector<32x1xf32> to vector<32x16xf32>
    %431 = arith.subf %427, %430 : vector<32x16xf32>
    %432 = math.exp %431 : vector<32x16xf32>
    %cst_130 = arith.constant dense<0.000000e+00> : vector<32xf32>
    %433 = vector.multi_reduction <add>, %432, %cst_130 [1] : vector<32x16xf32> to vector<32xf32>
    %434 = vector.shape_cast %433 : vector<32xf32> to vector<32x1xf32>
    %435 = tpu.reciprocal %434 {approx = true} : vector<32x1xf32> -> vector<32x1xf32>
    %436 = vector.broadcast %435 : vector<32x1xf32> to vector<32x16xf32>
    %437 = arith.mulf %432, %436 : vector<32x16xf32>
    %438 = vector.extract_strided_slice %415 {offsets = [0, 0], sizes = [16, 16], strides = [1, 1]} : vector<16x32xf32> to vector<16x16xf32>
    %439 = arith.truncf %437 : vector<32x16xf32> to vector<32x16xbf16>
    %440 = arith.truncf %438 : vector<16x16xf32> to vector<16x16xbf16>
    %cst_131 = arith.constant dense<0.000000e+00> : vector<32x16xf32>
    %441 = tpu.matmul %439, %440, %cst_131 {dimension_numbers = #tpu.dot_dimension_numbers<[1], [0], [0], [1], [0, 0, 1, 1], [], []>} : vector<32x16xbf16>, vector<16x16xbf16>, vector<32x16xf32> -> vector<32x16xf32>
    %442 = vector.extract_strided_slice %420 {offsets = [0, 0], sizes = [16, 32], strides = [1, 1]} : vector<32x32xbf16> to vector<16x32xbf16>
    %443 = arith.truncf %441 : vector<32x16xf32> to vector<32x16xbf16>
    %cst_132 = arith.constant dense<0.000000e+00> : vector<32x32xf32>
    %444 = tpu.matmul %443, %442, %cst_132 {dimension_numbers = #tpu.dot_dimension_numbers<[1], [0], [0], [1], [0, 0, 1, 1], [], []>} : vector<32x16xbf16>, vector<16x32xbf16>, vector<32x32xf32> -> vector<32x32xf32>
    %445 = arith.addf %421, %444 : vector<32x32xf32>
    %446 = vector.extract_strided_slice %404 {offsets = [0, 16], sizes = [32, 16], strides = [1, 1]} : vector<32x32xf32> to vector<32x16xf32>
    %447 = vector.extract_strided_slice %414 {offsets = [0, 16], sizes = [16, 16], strides = [1, 1]} : vector<16x32xf32> to vector<16x16xf32>
    %448 = arith.truncf %446 : vector<32x16xf32> to vector<32x16xbf16>
    %449 = arith.truncf %447 : vector<16x16xf32> to vector<16x16xbf16>
    %cst_133 = arith.constant dense<0.000000e+00> : vector<32x16xf32>
    %450 = tpu.matmul %448, %449, %cst_133 {dimension_numbers = #tpu.dot_dimension_numbers<[1], [1], [0], [0], [0, 0, 1, 0], [], []>} : vector<32x16xbf16>, vector<16x16xbf16>, vector<32x16xf32> -> vector<32x16xf32>
    %451 = arith.addf %450, %418 : vector<32x16xf32>
    %cst_134 = arith.constant dense<0xFF800000> : vector<32xf32>
    %452 = vector.multi_reduction <maximumf>, %451, %cst_134 [1] : vector<32x16xf32> to vector<32xf32>
    %453 = vector.shape_cast %452 : vector<32xf32> to vector<32x1xf32>
    %454 = vector.broadcast %453 : vector<32x1xf32> to vector<32x16xf32>
    %455 = arith.subf %451, %454 : vector<32x16xf32>
    %456 = math.exp %455 : vector<32x16xf32>
    %cst_135 = arith.constant dense<0.000000e+00> : vector<32xf32>
    %457 = vector.multi_reduction <add>, %456, %cst_135 [1] : vector<32x16xf32> to vector<32xf32>
    %458 = vector.shape_cast %457 : vector<32xf32> to vector<32x1xf32>
    %459 = tpu.reciprocal %458 {approx = true} : vector<32x1xf32> -> vector<32x1xf32>
    %460 = vector.broadcast %459 : vector<32x1xf32> to vector<32x16xf32>
    %461 = arith.mulf %456, %460 : vector<32x16xf32>
    %462 = vector.extract_strided_slice %415 {offsets = [0, 16], sizes = [16, 16], strides = [1, 1]} : vector<16x32xf32> to vector<16x16xf32>
    %463 = arith.truncf %461 : vector<32x16xf32> to vector<32x16xbf16>
    %464 = arith.truncf %462 : vector<16x16xf32> to vector<16x16xbf16>
    %cst_136 = arith.constant dense<0.000000e+00> : vector<32x16xf32>
    %465 = tpu.matmul %463, %464, %cst_136 {dimension_numbers = #tpu.dot_dimension_numbers<[1], [0], [0], [1], [0, 0, 1, 1], [], []>} : vector<32x16xbf16>, vector<16x16xbf16>, vector<32x16xf32> -> vector<32x16xf32>
    %466 = vector.extract_strided_slice %420 {offsets = [16, 0], sizes = [16, 32], strides = [1, 1]} : vector<32x32xbf16> to vector<16x32xbf16>
    %467 = arith.truncf %465 : vector<32x16xf32> to vector<32x16xbf16>
    %cst_137 = arith.constant dense<0.000000e+00> : vector<32x32xf32>
    %468 = tpu.matmul %467, %466, %cst_137 {dimension_numbers = #tpu.dot_dimension_numbers<[1], [0], [0], [1], [0, 0, 1, 1], [], []>} : vector<32x16xbf16>, vector<16x32xbf16>, vector<32x32xf32> -> vector<32x32xf32>
    %469 = arith.addf %445, %468 : vector<32x32xf32>
    %c1008 = arith.constant 1008 : index
    %c0_138 = arith.constant 0 : index
    %470 = vector.load %arg5[%c1008, %c0_138] : memref<1792x128xbf16, #tpu.memory_space<vmem>>, vector<1x128xbf16>
    %471 = vector.extract_strided_slice %470 {offsets = [0, 0], sizes = [1, 32], strides = [1, 1]} : vector<1x128xbf16> to vector<1x32xbf16>
    %472 = arith.extf %471 : vector<1x32xbf16> to vector<1x32xf32>
    %473 = vector.broadcast %472 : vector<1x32xf32> to vector<32x32xf32>
    %474 = arith.addf %469, %473 : vector<32x32xf32>
    %475 = arith.addf %385, %474 : vector<32x32xf32>
    %476 = arith.addf %475, %91 : vector<32x32xf32>
    %c1072 = arith.constant 1072 : index
    %c0_139 = arith.constant 0 : index
    %477 = vector.load %arg5[%c1072, %c0_139] : memref<1792x128xbf16, #tpu.memory_space<vmem>>, vector<32x128xbf16>
    %478 = vector.extract_strided_slice %477 {offsets = [0, 0], sizes = [32, 64], strides = [1, 1]} : vector<32x128xbf16> to vector<32x64xbf16>
    %479 = arith.truncf %476 : vector<32x32xf32> to vector<32x32xbf16>
    %cst_140 = arith.constant dense<0.000000e+00> : vector<32x64xf32>
    %480 = tpu.matmul %479, %478, %cst_140 {dimension_numbers = #tpu.dot_dimension_numbers<[1], [0], [0], [1], [0, 0, 1, 1], [], []>} : vector<32x32xbf16>, vector<32x64xbf16>, vector<32x64xf32> -> vector<32x64xf32>
    %c1104 = arith.constant 1104 : index
    %c0_141 = arith.constant 0 : index
    %481 = vector.load %arg5[%c1104, %c0_141] : memref<1792x128xbf16, #tpu.memory_space<vmem>>, vector<1x128xbf16>
    %482 = vector.extract_strided_slice %481 {offsets = [0, 0], sizes = [1, 64], strides = [1, 1]} : vector<1x128xbf16> to vector<1x64xbf16>
    %483 = arith.extf %482 : vector<1x64xbf16> to vector<1x64xf32>
    %484 = vector.broadcast %483 : vector<1x64xf32> to vector<32x64xf32>
    %485 = arith.addf %480, %484 : vector<32x64xf32>
    %486 = vector.extract_strided_slice %485 {offsets = [0, 0], sizes = [32, 32], strides = [1, 1]} : vector<32x64xf32> to vector<32x32xf32>
    %487 = vector.extract_strided_slice %485 {offsets = [0, 32], sizes = [32, 32], strides = [1, 1]} : vector<32x64xf32> to vector<32x32xf32>
    %c0_142 = arith.constant 0 : index
    %c0_143 = arith.constant 0 : index
    %488 = vector.load %arg4[%c0_142, %c0_143] : memref<32x32xf32, #tpu.memory_space<vmem>>, vector<32x32xf32>
    %489 = math.exp %487 : vector<32x32xf32>
    %490 = arith.mulf %488, %489 : vector<32x32xf32>
    %491 = arith.addf %486, %490 : vector<32x32xf32>
    %492 = vector.extract_strided_slice %491 {offsets = [0, 0], sizes = [32, 16], strides = [1, 1]} : vector<32x32xf32> to vector<32x16xf32>
    %493 = vector.extract_strided_slice %491 {offsets = [0, 16], sizes = [32, 16], strides = [1, 1]} : vector<32x32xf32> to vector<32x16xf32>
    %c1120 = arith.constant 1120 : index
    %c0_144 = arith.constant 0 : index
    %494 = vector.load %arg5[%c1120, %c0_144] : memref<1792x128xbf16, #tpu.memory_space<vmem>>, vector<16x128xbf16>
    %495 = vector.extract_strided_slice %494 {offsets = [0, 0], sizes = [16, 32], strides = [1, 1]} : vector<16x128xbf16> to vector<16x32xbf16>
    %496 = arith.truncf %492 : vector<32x16xf32> to vector<32x16xbf16>
    %cst_145 = arith.constant dense<0.000000e+00> : vector<32x32xf32>
    %497 = tpu.matmul %496, %495, %cst_145 {dimension_numbers = #tpu.dot_dimension_numbers<[1], [0], [0], [1], [0, 0, 1, 1], [], []>} : vector<32x16xbf16>, vector<16x32xbf16>, vector<32x32xf32> -> vector<32x32xf32>
    %c1136 = arith.constant 1136 : index
    %c0_146 = arith.constant 0 : index
    %498 = vector.load %arg5[%c1136, %c0_146] : memref<1792x128xbf16, #tpu.memory_space<vmem>>, vector<1x128xbf16>
    %499 = vector.extract_strided_slice %498 {offsets = [0, 0], sizes = [1, 32], strides = [1, 1]} : vector<1x128xbf16> to vector<1x32xbf16>
    %500 = arith.extf %499 : vector<1x32xbf16> to vector<1x32xf32>
    %501 = vector.broadcast %500 : vector<1x32xf32> to vector<32x32xf32>
    %502 = arith.addf %497, %501 : vector<32x32xf32>
    %503 = arith.addf %502, %92 : vector<32x32xf32>
    %c1152 = arith.constant 1152 : index
    %c0_147 = arith.constant 0 : index
    %504 = vector.load %arg5[%c1152, %c0_147] : memref<1792x128xbf16, #tpu.memory_space<vmem>>, vector<32x128xbf16>
    %505 = vector.extract_strided_slice %504 {offsets = [0, 0], sizes = [32, 64], strides = [1, 1]} : vector<32x128xbf16> to vector<32x64xbf16>
    %506 = vector.extract_strided_slice %503 {offsets = [31, 0], sizes = [1, 32], strides = [1, 1]} : vector<32x32xf32> to vector<1x32xf32>
    %507 = vector.extract_strided_slice %503 {offsets = [0, 0], sizes = [31, 32], strides = [1, 1]} : vector<32x32xf32> to vector<31x32xf32>
    %508 = tpu.concatenate %506, %507 in 0 : vector<1x32xf32>, vector<31x32xf32> -> vector<32x32xf32>
    %509 = tpu.iota {dimensions = array<i32: 0>} : vector<32x1xi32>
    %c16_i32_148 = arith.constant 16 : i32
    %c0_i32_149 = arith.constant 0 : i32
    %510 = arith.cmpi eq, %c16_i32_148, %c0_i32_149 : i32
    %c1_i32_150 = arith.constant 1 : i32
    %511 = arith.select %510, %c1_i32_150, %c16_i32_148 : i32
    %512 = vector.broadcast %511 : i32 to vector<32x1xi32>
    %513 = arith.remsi %509, %512 : vector<32x1xi32>
    %c0_i32_151 = arith.constant 0 : i32
    %514 = vector.broadcast %c0_i32_151 : i32 to vector<32x1xi32>
    %515 = arith.cmpi ne, %513, %514 : vector<32x1xi32>
    %c0_i32_152 = arith.constant 0 : i32
    %516 = vector.broadcast %c0_i32_152 : i32 to vector<32x1xi32>
    %517 = arith.cmpi slt, %513, %516 : vector<32x1xi32>
    %c0_i32_153 = arith.constant 0 : i32
    %518 = arith.cmpi slt, %511, %c0_i32_153 : i32
    %519 = vector.broadcast %518 : i1 to vector<32x1xi1>
    %520 = vector.broadcast %519 : vector<32x1xi1> to vector<32x1xi1>
    %521 = arith.xori %517, %520 : vector<32x1xi1>
    %522 = arith.andi %521, %515 : vector<32x1xi1>
    %523 = vector.broadcast %511 : i32 to vector<32x1xi32>
    %524 = arith.addi %513, %523 : vector<32x1xi32>
    %525 = arith.select %522, %524, %513 : vector<32x1xi1>, vector<32x1xi32>
    %c1_i32_154 = arith.constant 1 : i32
    %526 = vector.broadcast %c1_i32_154 : i32 to vector<32x1xi32>
    %527 = arith.cmpi sge, %525, %526 : vector<32x1xi32>
    %cst_155 = arith.constant 0.000000e+00 : f32
    %528 = vector.shape_cast %527 : vector<32x1xi1> to vector<32x1xi1>
    %529 = vector.broadcast %528 : vector<32x1xi1> to vector<32x32xi1>
    %530 = vector.broadcast %cst_155 : f32 to vector<32x32xf32>
    %531 = arith.select %529, %508, %530 : vector<32x32xi1>, vector<32x32xf32>
    %532 = arith.truncf %531 : vector<32x32xf32> to vector<32x32xbf16>
    %cst_156 = arith.constant dense<0.000000e+00> : vector<32x64xf32>
    %533 = tpu.matmul %532, %505, %cst_156 {dimension_numbers = #tpu.dot_dimension_numbers<[1], [0], [0], [1], [0, 0, 1, 1], [], []>} : vector<32x32xbf16>, vector<32x64xbf16>, vector<32x64xf32> -> vector<32x64xf32>
    %c1184 = arith.constant 1184 : index
    %c0_157 = arith.constant 0 : index
    %534 = vector.load %arg5[%c1184, %c0_157] : memref<1792x128xbf16, #tpu.memory_space<vmem>>, vector<32x128xbf16>
    %535 = vector.extract_strided_slice %534 {offsets = [0, 0], sizes = [32, 64], strides = [1, 1]} : vector<32x128xbf16> to vector<32x64xbf16>
    %536 = arith.truncf %503 : vector<32x32xf32> to vector<32x32xbf16>
    %cst_158 = arith.constant dense<0.000000e+00> : vector<32x64xf32>
    %537 = tpu.matmul %536, %535, %cst_158 {dimension_numbers = #tpu.dot_dimension_numbers<[1], [0], [0], [1], [0, 0, 1, 1], [], []>} : vector<32x32xbf16>, vector<32x64xbf16>, vector<32x64xf32> -> vector<32x64xf32>
    %538 = arith.addf %533, %537 : vector<32x64xf32>
    %c1216 = arith.constant 1216 : index
    %c0_159 = arith.constant 0 : index
    %539 = vector.load %arg5[%c1216, %c0_159] : memref<1792x128xbf16, #tpu.memory_space<vmem>>, vector<32x128xbf16>
    %540 = vector.extract_strided_slice %539 {offsets = [0, 0], sizes = [32, 64], strides = [1, 1]} : vector<32x128xbf16> to vector<32x64xbf16>
    %541 = vector.extract_strided_slice %503 {offsets = [1, 0], sizes = [31, 32], strides = [1, 1]} : vector<32x32xf32> to vector<31x32xf32>
    %542 = vector.extract_strided_slice %503 {offsets = [0, 0], sizes = [1, 32], strides = [1, 1]} : vector<32x32xf32> to vector<1x32xf32>
    %543 = tpu.concatenate %541, %542 in 0 : vector<31x32xf32>, vector<1x32xf32> -> vector<32x32xf32>
    %544 = tpu.iota {dimensions = array<i32: 0>} : vector<32x1xi32>
    %c16_i32_160 = arith.constant 16 : i32
    %c0_i32_161 = arith.constant 0 : i32
    %545 = arith.cmpi eq, %c16_i32_160, %c0_i32_161 : i32
    %c1_i32_162 = arith.constant 1 : i32
    %546 = arith.select %545, %c1_i32_162, %c16_i32_160 : i32
    %547 = vector.broadcast %546 : i32 to vector<32x1xi32>
    %548 = arith.remsi %544, %547 : vector<32x1xi32>
    %c0_i32_163 = arith.constant 0 : i32
    %549 = vector.broadcast %c0_i32_163 : i32 to vector<32x1xi32>
    %550 = arith.cmpi ne, %548, %549 : vector<32x1xi32>
    %c0_i32_164 = arith.constant 0 : i32
    %551 = vector.broadcast %c0_i32_164 : i32 to vector<32x1xi32>
    %552 = arith.cmpi slt, %548, %551 : vector<32x1xi32>
    %c0_i32_165 = arith.constant 0 : i32
    %553 = arith.cmpi slt, %546, %c0_i32_165 : i32
    %554 = vector.broadcast %553 : i1 to vector<32x1xi1>
    %555 = vector.broadcast %554 : vector<32x1xi1> to vector<32x1xi1>
    %556 = arith.xori %552, %555 : vector<32x1xi1>
    %557 = arith.andi %556, %550 : vector<32x1xi1>
    %558 = vector.broadcast %546 : i32 to vector<32x1xi32>
    %559 = arith.addi %548, %558 : vector<32x1xi32>
    %560 = arith.select %557, %559, %548 : vector<32x1xi1>, vector<32x1xi32>
    %c15_i32_166 = arith.constant 15 : i32
    %561 = vector.broadcast %c15_i32_166 : i32 to vector<32x1xi32>
    %562 = arith.cmpi slt, %560, %561 : vector<32x1xi32>
    %cst_167 = arith.constant 0.000000e+00 : f32
    %563 = vector.shape_cast %562 : vector<32x1xi1> to vector<32x1xi1>
    %564 = vector.broadcast %563 : vector<32x1xi1> to vector<32x32xi1>
    %565 = vector.broadcast %cst_167 : f32 to vector<32x32xf32>
    %566 = arith.select %564, %543, %565 : vector<32x32xi1>, vector<32x32xf32>
    %567 = arith.truncf %566 : vector<32x32xf32> to vector<32x32xbf16>
    %cst_168 = arith.constant dense<0.000000e+00> : vector<32x64xf32>
    %568 = tpu.matmul %567, %540, %cst_168 {dimension_numbers = #tpu.dot_dimension_numbers<[1], [0], [0], [1], [0, 0, 1, 1], [], []>} : vector<32x32xbf16>, vector<32x64xbf16>, vector<32x64xf32> -> vector<32x64xf32>
    %569 = arith.addf %538, %568 : vector<32x64xf32>
    %c1248 = arith.constant 1248 : index
    %c0_169 = arith.constant 0 : index
    %570 = vector.load %arg5[%c1248, %c0_169] : memref<1792x128xbf16, #tpu.memory_space<vmem>>, vector<1x128xbf16>
    %571 = vector.extract_strided_slice %570 {offsets = [0, 0], sizes = [1, 64], strides = [1, 1]} : vector<1x128xbf16> to vector<1x64xbf16>
    %572 = arith.extf %571 : vector<1x64xbf16> to vector<1x64xf32>
    %573 = vector.broadcast %572 : vector<1x64xf32> to vector<32x64xf32>
    %574 = arith.addf %569, %573 : vector<32x64xf32>
    %575 = vector.extract_strided_slice %574 {offsets = [0, 0], sizes = [32, 32], strides = [1, 1]} : vector<32x64xf32> to vector<32x32xf32>
    %576 = math.tanh %575 : vector<32x32xf32>
    %577 = vector.extract_strided_slice %574 {offsets = [0, 32], sizes = [32, 32], strides = [1, 1]} : vector<32x64xf32> to vector<32x32xf32>
    %578 = arith.negf %577 : vector<32x32xf32>
    %579 = math.exp %578 : vector<32x32xf32>
    %cst_170 = arith.constant 1.000000e+00 : f32
    %580 = vector.broadcast %cst_170 : f32 to vector<32x32xf32>
    %581 = arith.addf %580, %579 : vector<32x32xf32>
    %582 = arith.divf %580, %581 : vector<32x32xf32>
    %583 = arith.mulf %576, %582 : vector<32x32xf32>
    %c1264 = arith.constant 1264 : index
    %c0_171 = arith.constant 0 : index
    %584 = vector.load %arg5[%c1264, %c0_171] : memref<1792x128xbf16, #tpu.memory_space<vmem>>, vector<32x128xbf16>
    %585 = vector.extract_strided_slice %584 {offsets = [0, 0], sizes = [32, 16], strides = [1, 1]} : vector<32x128xbf16> to vector<32x16xbf16>
    %586 = arith.truncf %583 : vector<32x32xf32> to vector<32x32xbf16>
    %cst_172 = arith.constant dense<0.000000e+00> : vector<32x16xf32>
    %587 = tpu.matmul %586, %585, %cst_172 {dimension_numbers = #tpu.dot_dimension_numbers<[1], [0], [0], [1], [0, 0, 1, 1], [], []>} : vector<32x32xbf16>, vector<32x16xbf16>, vector<32x16xf32> -> vector<32x16xf32>
    %c1296 = arith.constant 1296 : index
    %c0_173 = arith.constant 0 : index
    %588 = vector.load %arg5[%c1296, %c0_173] : memref<1792x128xbf16, #tpu.memory_space<vmem>>, vector<1x128xbf16>
    %589 = vector.extract_strided_slice %588 {offsets = [0, 0], sizes = [1, 16], strides = [1, 1]} : vector<1x128xbf16> to vector<1x16xbf16>
    %590 = arith.extf %589 : vector<1x16xbf16> to vector<1x16xf32>
    %591 = vector.broadcast %590 : vector<1x16xf32> to vector<32x16xf32>
    %592 = arith.addf %587, %591 : vector<32x16xf32>
    %593 = arith.subf %493, %592 : vector<32x16xf32>
    %594 = tpu.concatenate %492, %593 in 1 : vector<32x16xf32>, vector<32x16xf32> -> vector<32x32xf32>
    %c1312 = arith.constant 1312 : index
    %c0_174 = arith.constant 0 : index
    %595 = vector.load %arg5[%c1312, %c0_174] : memref<1792x128xbf16, #tpu.memory_space<vmem>>, vector<32x128xbf16>
    %596 = vector.extract_strided_slice %595 {offsets = [0, 0], sizes = [32, 32], strides = [1, 1]} : vector<32x128xbf16> to vector<32x32xbf16>
    %597 = vector.extract_strided_slice %594 {offsets = [31, 0], sizes = [1, 32], strides = [1, 1]} : vector<32x32xf32> to vector<1x32xf32>
    %598 = vector.extract_strided_slice %594 {offsets = [0, 0], sizes = [31, 32], strides = [1, 1]} : vector<32x32xf32> to vector<31x32xf32>
    %599 = tpu.concatenate %597, %598 in 0 : vector<1x32xf32>, vector<31x32xf32> -> vector<32x32xf32>
    %600 = tpu.iota {dimensions = array<i32: 0>} : vector<32x1xi32>
    %c16_i32_175 = arith.constant 16 : i32
    %c0_i32_176 = arith.constant 0 : i32
    %601 = arith.cmpi eq, %c16_i32_175, %c0_i32_176 : i32
    %c1_i32_177 = arith.constant 1 : i32
    %602 = arith.select %601, %c1_i32_177, %c16_i32_175 : i32
    %603 = vector.broadcast %602 : i32 to vector<32x1xi32>
    %604 = arith.remsi %600, %603 : vector<32x1xi32>
    %c0_i32_178 = arith.constant 0 : i32
    %605 = vector.broadcast %c0_i32_178 : i32 to vector<32x1xi32>
    %606 = arith.cmpi ne, %604, %605 : vector<32x1xi32>
    %c0_i32_179 = arith.constant 0 : i32
    %607 = vector.broadcast %c0_i32_179 : i32 to vector<32x1xi32>
    %608 = arith.cmpi slt, %604, %607 : vector<32x1xi32>
    %c0_i32_180 = arith.constant 0 : i32
    %609 = arith.cmpi slt, %602, %c0_i32_180 : i32
    %610 = vector.broadcast %609 : i1 to vector<32x1xi1>
    %611 = vector.broadcast %610 : vector<32x1xi1> to vector<32x1xi1>
    %612 = arith.xori %608, %611 : vector<32x1xi1>
    %613 = arith.andi %612, %606 : vector<32x1xi1>
    %614 = vector.broadcast %602 : i32 to vector<32x1xi32>
    %615 = arith.addi %604, %614 : vector<32x1xi32>
    %616 = arith.select %613, %615, %604 : vector<32x1xi1>, vector<32x1xi32>
    %c1_i32_181 = arith.constant 1 : i32
    %617 = vector.broadcast %c1_i32_181 : i32 to vector<32x1xi32>
    %618 = arith.cmpi sge, %616, %617 : vector<32x1xi32>
    %cst_182 = arith.constant 0.000000e+00 : f32
    %619 = vector.shape_cast %618 : vector<32x1xi1> to vector<32x1xi1>
    %620 = vector.broadcast %619 : vector<32x1xi1> to vector<32x32xi1>
    %621 = vector.broadcast %cst_182 : f32 to vector<32x32xf32>
    %622 = arith.select %620, %599, %621 : vector<32x32xi1>, vector<32x32xf32>
    %623 = arith.truncf %622 : vector<32x32xf32> to vector<32x32xbf16>
    %cst_183 = arith.constant dense<0.000000e+00> : vector<32x32xf32>
    %624 = tpu.matmul %623, %596, %cst_183 {dimension_numbers = #tpu.dot_dimension_numbers<[1], [0], [0], [1], [0, 0, 1, 1], [], []>} : vector<32x32xbf16>, vector<32x32xbf16>, vector<32x32xf32> -> vector<32x32xf32>
    %c1344 = arith.constant 1344 : index
    %c0_184 = arith.constant 0 : index
    %625 = vector.load %arg5[%c1344, %c0_184] : memref<1792x128xbf16, #tpu.memory_space<vmem>>, vector<32x128xbf16>
    %626 = vector.extract_strided_slice %625 {offsets = [0, 0], sizes = [32, 32], strides = [1, 1]} : vector<32x128xbf16> to vector<32x32xbf16>
    %627 = arith.truncf %594 : vector<32x32xf32> to vector<32x32xbf16>
    %cst_185 = arith.constant dense<0.000000e+00> : vector<32x32xf32>
    %628 = tpu.matmul %627, %626, %cst_185 {dimension_numbers = #tpu.dot_dimension_numbers<[1], [0], [0], [1], [0, 0, 1, 1], [], []>} : vector<32x32xbf16>, vector<32x32xbf16>, vector<32x32xf32> -> vector<32x32xf32>
    %629 = arith.addf %624, %628 : vector<32x32xf32>
    %c1376 = arith.constant 1376 : index
    %c0_186 = arith.constant 0 : index
    %630 = vector.load %arg5[%c1376, %c0_186] : memref<1792x128xbf16, #tpu.memory_space<vmem>>, vector<32x128xbf16>
    %631 = vector.extract_strided_slice %630 {offsets = [0, 0], sizes = [32, 32], strides = [1, 1]} : vector<32x128xbf16> to vector<32x32xbf16>
    %632 = vector.extract_strided_slice %594 {offsets = [1, 0], sizes = [31, 32], strides = [1, 1]} : vector<32x32xf32> to vector<31x32xf32>
    %633 = vector.extract_strided_slice %594 {offsets = [0, 0], sizes = [1, 32], strides = [1, 1]} : vector<32x32xf32> to vector<1x32xf32>
    %634 = tpu.concatenate %632, %633 in 0 : vector<31x32xf32>, vector<1x32xf32> -> vector<32x32xf32>
    %635 = tpu.iota {dimensions = array<i32: 0>} : vector<32x1xi32>
    %c16_i32_187 = arith.constant 16 : i32
    %c0_i32_188 = arith.constant 0 : i32
    %636 = arith.cmpi eq, %c16_i32_187, %c0_i32_188 : i32
    %c1_i32_189 = arith.constant 1 : i32
    %637 = arith.select %636, %c1_i32_189, %c16_i32_187 : i32
    %638 = vector.broadcast %637 : i32 to vector<32x1xi32>
    %639 = arith.remsi %635, %638 : vector<32x1xi32>
    %c0_i32_190 = arith.constant 0 : i32
    %640 = vector.broadcast %c0_i32_190 : i32 to vector<32x1xi32>
    %641 = arith.cmpi ne, %639, %640 : vector<32x1xi32>
    %c0_i32_191 = arith.constant 0 : i32
    %642 = vector.broadcast %c0_i32_191 : i32 to vector<32x1xi32>
    %643 = arith.cmpi slt, %639, %642 : vector<32x1xi32>
    %c0_i32_192 = arith.constant 0 : i32
    %644 = arith.cmpi slt, %637, %c0_i32_192 : i32
    %645 = vector.broadcast %644 : i1 to vector<32x1xi1>
    %646 = vector.broadcast %645 : vector<32x1xi1> to vector<32x1xi1>
    %647 = arith.xori %643, %646 : vector<32x1xi1>
    %648 = arith.andi %647, %641 : vector<32x1xi1>
    %649 = vector.broadcast %637 : i32 to vector<32x1xi32>
    %650 = arith.addi %639, %649 : vector<32x1xi32>
    %651 = arith.select %648, %650, %639 : vector<32x1xi1>, vector<32x1xi32>
    %c15_i32_193 = arith.constant 15 : i32
    %652 = vector.broadcast %c15_i32_193 : i32 to vector<32x1xi32>
    %653 = arith.cmpi slt, %651, %652 : vector<32x1xi32>
    %cst_194 = arith.constant 0.000000e+00 : f32
    %654 = vector.shape_cast %653 : vector<32x1xi1> to vector<32x1xi1>
    %655 = vector.broadcast %654 : vector<32x1xi1> to vector<32x32xi1>
    %656 = vector.broadcast %cst_194 : f32 to vector<32x32xf32>
    %657 = arith.select %655, %634, %656 : vector<32x32xi1>, vector<32x32xf32>
    %658 = arith.truncf %657 : vector<32x32xf32> to vector<32x32xbf16>
    %cst_195 = arith.constant dense<0.000000e+00> : vector<32x32xf32>
    %659 = tpu.matmul %658, %631, %cst_195 {dimension_numbers = #tpu.dot_dimension_numbers<[1], [0], [0], [1], [0, 0, 1, 1], [], []>} : vector<32x32xbf16>, vector<32x32xbf16>, vector<32x32xf32> -> vector<32x32xf32>
    %660 = arith.addf %629, %659 : vector<32x32xf32>
    %c1408 = arith.constant 1408 : index
    %c0_196 = arith.constant 0 : index
    %661 = vector.load %arg5[%c1408, %c0_196] : memref<1792x128xbf16, #tpu.memory_space<vmem>>, vector<1x128xbf16>
    %662 = vector.extract_strided_slice %661 {offsets = [0, 0], sizes = [1, 32], strides = [1, 1]} : vector<1x128xbf16> to vector<1x32xbf16>
    %663 = arith.extf %662 : vector<1x32xbf16> to vector<1x32xf32>
    %664 = vector.broadcast %663 : vector<1x32xf32> to vector<32x32xf32>
    %665 = arith.addf %660, %664 : vector<32x32xf32>
    %666 = arith.addf %665, %93 : vector<32x32xf32>
    %cst_197 = arith.constant 0.000000e+00 : f32
    %667 = vector.broadcast %cst_197 : f32 to vector<32x32xf32>
    %668 = arith.cmpf oge, %666, %667 : vector<32x32xf32>
    %cst_198 = arith.constant 1.000000e-01 : f32
    %669 = vector.broadcast %cst_198 : f32 to vector<32x32xf32>
    %670 = arith.mulf %669, %666 : vector<32x32xf32>
    %671 = arith.select %668, %666, %670 : vector<32x32xi1>, vector<32x32xf32>
    %c1424 = arith.constant 1424 : index
    %c0_199 = arith.constant 0 : index
    %672 = vector.load %arg5[%c1424, %c0_199] : memref<1792x128xbf16, #tpu.memory_space<vmem>>, vector<32x128xbf16>
    %673 = vector.extract_strided_slice %671 {offsets = [31, 0], sizes = [1, 32], strides = [1, 1]} : vector<32x32xf32> to vector<1x32xf32>
    %674 = vector.extract_strided_slice %671 {offsets = [0, 0], sizes = [31, 32], strides = [1, 1]} : vector<32x32xf32> to vector<31x32xf32>
    %675 = tpu.concatenate %673, %674 in 0 : vector<1x32xf32>, vector<31x32xf32> -> vector<32x32xf32>
    %676 = tpu.iota {dimensions = array<i32: 0>} : vector<32x1xi32>
    %c16_i32_200 = arith.constant 16 : i32
    %c0_i32_201 = arith.constant 0 : i32
    %677 = arith.cmpi eq, %c16_i32_200, %c0_i32_201 : i32
    %c1_i32_202 = arith.constant 1 : i32
    %678 = arith.select %677, %c1_i32_202, %c16_i32_200 : i32
    %679 = vector.broadcast %678 : i32 to vector<32x1xi32>
    %680 = arith.remsi %676, %679 : vector<32x1xi32>
    %c0_i32_203 = arith.constant 0 : i32
    %681 = vector.broadcast %c0_i32_203 : i32 to vector<32x1xi32>
    %682 = arith.cmpi ne, %680, %681 : vector<32x1xi32>
    %c0_i32_204 = arith.constant 0 : i32
    %683 = vector.broadcast %c0_i32_204 : i32 to vector<32x1xi32>
    %684 = arith.cmpi slt, %680, %683 : vector<32x1xi32>
    %c0_i32_205 = arith.constant 0 : i32
    %685 = arith.cmpi slt, %678, %c0_i32_205 : i32
    %686 = vector.broadcast %685 : i1 to vector<32x1xi1>
    %687 = vector.broadcast %686 : vector<32x1xi1> to vector<32x1xi1>
    %688 = arith.xori %684, %687 : vector<32x1xi1>
    %689 = arith.andi %688, %682 : vector<32x1xi1>
    %690 = vector.broadcast %678 : i32 to vector<32x1xi32>
    %691 = arith.addi %680, %690 : vector<32x1xi32>
    %692 = arith.select %689, %691, %680 : vector<32x1xi1>, vector<32x1xi32>
    %c1_i32_206 = arith.constant 1 : i32
    %693 = vector.broadcast %c1_i32_206 : i32 to vector<32x1xi32>
    %694 = arith.cmpi sge, %692, %693 : vector<32x1xi32>
    %cst_207 = arith.constant 0.000000e+00 : f32
    %695 = vector.shape_cast %694 : vector<32x1xi1> to vector<32x1xi1>
    %696 = vector.broadcast %695 : vector<32x1xi1> to vector<32x32xi1>
    %697 = vector.broadcast %cst_207 : f32 to vector<32x32xf32>
    %698 = arith.select %696, %675, %697 : vector<32x32xi1>, vector<32x32xf32>
    %699 = arith.truncf %698 : vector<32x32xf32> to vector<32x32xbf16>
    %cst_208 = arith.constant dense<0.000000e+00> : vector<32x128xf32>
    %700 = tpu.matmul %699, %672, %cst_208 {dimension_numbers = #tpu.dot_dimension_numbers<[1], [0], [0], [1], [0, 0, 1, 1], [], []>} : vector<32x32xbf16>, vector<32x128xbf16>, vector<32x128xf32> -> vector<32x128xf32>
    %c1456 = arith.constant 1456 : index
    %c0_209 = arith.constant 0 : index
    %701 = vector.load %arg5[%c1456, %c0_209] : memref<1792x128xbf16, #tpu.memory_space<vmem>>, vector<32x128xbf16>
    %702 = arith.truncf %671 : vector<32x32xf32> to vector<32x32xbf16>
    %cst_210 = arith.constant dense<0.000000e+00> : vector<32x128xf32>
    %703 = tpu.matmul %702, %701, %cst_210 {dimension_numbers = #tpu.dot_dimension_numbers<[1], [0], [0], [1], [0, 0, 1, 1], [], []>} : vector<32x32xbf16>, vector<32x128xbf16>, vector<32x128xf32> -> vector<32x128xf32>
    %704 = arith.addf %700, %703 : vector<32x128xf32>
    %c1488 = arith.constant 1488 : index
    %c0_211 = arith.constant 0 : index
    %705 = vector.load %arg5[%c1488, %c0_211] : memref<1792x128xbf16, #tpu.memory_space<vmem>>, vector<32x128xbf16>
    %706 = vector.extract_strided_slice %671 {offsets = [1, 0], sizes = [31, 32], strides = [1, 1]} : vector<32x32xf32> to vector<31x32xf32>
    %707 = vector.extract_strided_slice %671 {offsets = [0, 0], sizes = [1, 32], strides = [1, 1]} : vector<32x32xf32> to vector<1x32xf32>
    %708 = tpu.concatenate %706, %707 in 0 : vector<31x32xf32>, vector<1x32xf32> -> vector<32x32xf32>
    %709 = tpu.iota {dimensions = array<i32: 0>} : vector<32x1xi32>
    %c16_i32_212 = arith.constant 16 : i32
    %c0_i32_213 = arith.constant 0 : i32
    %710 = arith.cmpi eq, %c16_i32_212, %c0_i32_213 : i32
    %c1_i32_214 = arith.constant 1 : i32
    %711 = arith.select %710, %c1_i32_214, %c16_i32_212 : i32
    %712 = vector.broadcast %711 : i32 to vector<32x1xi32>
    %713 = arith.remsi %709, %712 : vector<32x1xi32>
    %c0_i32_215 = arith.constant 0 : i32
    %714 = vector.broadcast %c0_i32_215 : i32 to vector<32x1xi32>
    %715 = arith.cmpi ne, %713, %714 : vector<32x1xi32>
    %c0_i32_216 = arith.constant 0 : i32
    %716 = vector.broadcast %c0_i32_216 : i32 to vector<32x1xi32>
    %717 = arith.cmpi slt, %713, %716 : vector<32x1xi32>
    %c0_i32_217 = arith.constant 0 : i32
    %718 = arith.cmpi slt, %711, %c0_i32_217 : i32
    %719 = vector.broadcast %718 : i1 to vector<32x1xi1>
    %720 = vector.broadcast %719 : vector<32x1xi1> to vector<32x1xi1>
    %721 = arith.xori %717, %720 : vector<32x1xi1>
    %722 = arith.andi %721, %715 : vector<32x1xi1>
    %723 = vector.broadcast %711 : i32 to vector<32x1xi32>
    %724 = arith.addi %713, %723 : vector<32x1xi32>
    %725 = arith.select %722, %724, %713 : vector<32x1xi1>, vector<32x1xi32>
    %c15_i32_218 = arith.constant 15 : i32
    %726 = vector.broadcast %c15_i32_218 : i32 to vector<32x1xi32>
    %727 = arith.cmpi slt, %725, %726 : vector<32x1xi32>
    %cst_219 = arith.constant 0.000000e+00 : f32
    %728 = vector.shape_cast %727 : vector<32x1xi1> to vector<32x1xi1>
    %729 = vector.broadcast %728 : vector<32x1xi1> to vector<32x32xi1>
    %730 = vector.broadcast %cst_219 : f32 to vector<32x32xf32>
    %731 = arith.select %729, %708, %730 : vector<32x32xi1>, vector<32x32xf32>
    %732 = arith.truncf %731 : vector<32x32xf32> to vector<32x32xbf16>
    %cst_220 = arith.constant dense<0.000000e+00> : vector<32x128xf32>
    %733 = tpu.matmul %732, %705, %cst_220 {dimension_numbers = #tpu.dot_dimension_numbers<[1], [0], [0], [1], [0, 0, 1, 1], [], []>} : vector<32x32xbf16>, vector<32x128xbf16>, vector<32x128xf32> -> vector<32x128xf32>
    %734 = arith.addf %704, %733 : vector<32x128xf32>
    %735 = vector.extract_strided_slice %734 {offsets = [0, 0], sizes = [32, 32], strides = [1, 1]} : vector<32x128xf32> to vector<32x32xf32>
    %c0_221 = arith.constant 0 : index
    %c0_222 = arith.constant 0 : index
    %736 = tpu.strided_load %arg7[%c0_221, %c0_222] {strides = array<i32: 4, 1>} : memref<128x32xf32, #tpu.memory_space<vmem>>, vector<32x32xf32>
    tpu.strided_store %arg7[%c0_221, %c0_222], %735 {strides = array<i32: 4, 1>} : memref<128x32xf32, #tpu.memory_space<vmem>>, vector<32x32xf32>
    %737 = vector.extract_strided_slice %734 {offsets = [0, 32], sizes = [32, 32], strides = [1, 1]} : vector<32x128xf32> to vector<32x32xf32>
    %c1 = arith.constant 1 : index
    %c0_223 = arith.constant 0 : index
    %738 = tpu.strided_load %arg7[%c1, %c0_223] {strides = array<i32: 4, 1>} : memref<128x32xf32, #tpu.memory_space<vmem>>, vector<32x32xf32>
    tpu.strided_store %arg7[%c1, %c0_223], %737 {strides = array<i32: 4, 1>} : memref<128x32xf32, #tpu.memory_space<vmem>>, vector<32x32xf32>
    %739 = vector.extract_strided_slice %734 {offsets = [0, 64], sizes = [32, 32], strides = [1, 1]} : vector<32x128xf32> to vector<32x32xf32>
    %c2 = arith.constant 2 : index
    %c0_224 = arith.constant 0 : index
    %740 = tpu.strided_load %arg7[%c2, %c0_224] {strides = array<i32: 4, 1>} : memref<128x32xf32, #tpu.memory_space<vmem>>, vector<32x32xf32>
    tpu.strided_store %arg7[%c2, %c0_224], %739 {strides = array<i32: 4, 1>} : memref<128x32xf32, #tpu.memory_space<vmem>>, vector<32x32xf32>
    %741 = vector.extract_strided_slice %734 {offsets = [0, 96], sizes = [32, 32], strides = [1, 1]} : vector<32x128xf32> to vector<32x32xf32>
    %c3 = arith.constant 3 : index
    %c0_225 = arith.constant 0 : index
    %742 = tpu.strided_load %arg7[%c3, %c0_225] {strides = array<i32: 4, 1>} : memref<128x32xf32, #tpu.memory_space<vmem>>, vector<32x32xf32>
    tpu.strided_store %arg7[%c3, %c0_225], %741 {strides = array<i32: 4, 1>} : memref<128x32xf32, #tpu.memory_space<vmem>>, vector<32x32xf32>
    %c0_226 = arith.constant 0 : index
    %c0_227 = arith.constant 0 : index
    %743 = vector.load %arg7[%c0_226, %c0_227] : memref<128x32xf32, #tpu.memory_space<vmem>>, vector<128x32xf32>
    %c1520 = arith.constant 1520 : index
    %c0_228 = arith.constant 0 : index
    %744 = vector.load %arg5[%c1520, %c0_228] : memref<1792x128xbf16, #tpu.memory_space<vmem>>, vector<1x128xbf16>
    %745 = vector.extract_strided_slice %744 {offsets = [0, 0], sizes = [1, 32], strides = [1, 1]} : vector<1x128xbf16> to vector<1x32xbf16>
    %746 = arith.extf %745 : vector<1x32xbf16> to vector<1x32xf32>
    %747 = vector.broadcast %746 : vector<1x32xf32> to vector<128x32xf32>
    %748 = arith.addf %743, %747 : vector<128x32xf32>
    %cst_229 = arith.constant 0.000000e+00 : f32
    %749 = vector.broadcast %cst_229 : f32 to vector<128x32xf32>
    %750 = arith.cmpf oge, %748, %749 : vector<128x32xf32>
    %cst_230 = arith.constant 1.000000e-01 : f32
    %751 = vector.broadcast %cst_230 : f32 to vector<128x32xf32>
    %752 = arith.mulf %751, %748 : vector<128x32xf32>
    %753 = arith.select %750, %748, %752 : vector<128x32xi1>, vector<128x32xf32>
    %cst_231 = arith.constant 0.000000e+00 : f32
    %754 = vector.broadcast %cst_231 : f32 to vector<128x32xf32>
    %755 = arith.cmpf oge, %753, %754 : vector<128x32xf32>
    %cst_232 = arith.constant 1.000000e-01 : f32
    %756 = vector.broadcast %cst_232 : f32 to vector<128x32xf32>
    %757 = arith.mulf %756, %753 : vector<128x32xf32>
    %758 = arith.select %755, %753, %757 : vector<128x32xi1>, vector<128x32xf32>
    %c1536 = arith.constant 1536 : index
    %c0_233 = arith.constant 0 : index
    %759 = vector.load %arg5[%c1536, %c0_233] : memref<1792x128xbf16, #tpu.memory_space<vmem>>, vector<32x128xbf16>
    %760 = vector.extract_strided_slice %759 {offsets = [0, 0], sizes = [32, 32], strides = [1, 1]} : vector<32x128xbf16> to vector<32x32xbf16>
    %761 = vector.extract_strided_slice %758 {offsets = [127, 0], sizes = [1, 32], strides = [1, 1]} : vector<128x32xf32> to vector<1x32xf32>
    %762 = vector.extract_strided_slice %758 {offsets = [0, 0], sizes = [127, 32], strides = [1, 1]} : vector<128x32xf32> to vector<127x32xf32>
    %763 = tpu.concatenate %761, %762 in 0 : vector<1x32xf32>, vector<127x32xf32> -> vector<128x32xf32>
    %764 = tpu.iota {dimensions = array<i32: 0>} : vector<128x1xi32>
    %c64_i32 = arith.constant 64 : i32
    %c0_i32_234 = arith.constant 0 : i32
    %765 = arith.cmpi eq, %c64_i32, %c0_i32_234 : i32
    %c1_i32_235 = arith.constant 1 : i32
    %766 = arith.select %765, %c1_i32_235, %c64_i32 : i32
    %767 = vector.broadcast %766 : i32 to vector<128x1xi32>
    %768 = arith.remsi %764, %767 : vector<128x1xi32>
    %c0_i32_236 = arith.constant 0 : i32
    %769 = vector.broadcast %c0_i32_236 : i32 to vector<128x1xi32>
    %770 = arith.cmpi ne, %768, %769 : vector<128x1xi32>
    %c0_i32_237 = arith.constant 0 : i32
    %771 = vector.broadcast %c0_i32_237 : i32 to vector<128x1xi32>
    %772 = arith.cmpi slt, %768, %771 : vector<128x1xi32>
    %c0_i32_238 = arith.constant 0 : i32
    %773 = arith.cmpi slt, %766, %c0_i32_238 : i32
    %774 = vector.broadcast %773 : i1 to vector<128x1xi1>
    %775 = vector.broadcast %774 : vector<128x1xi1> to vector<128x1xi1>
    %776 = arith.xori %772, %775 : vector<128x1xi1>
    %777 = arith.andi %776, %770 : vector<128x1xi1>
    %778 = vector.broadcast %766 : i32 to vector<128x1xi32>
    %779 = arith.addi %768, %778 : vector<128x1xi32>
    %780 = arith.select %777, %779, %768 : vector<128x1xi1>, vector<128x1xi32>
    %c1_i32_239 = arith.constant 1 : i32
    %781 = vector.broadcast %c1_i32_239 : i32 to vector<128x1xi32>
    %782 = arith.cmpi sge, %780, %781 : vector<128x1xi32>
    %cst_240 = arith.constant 0.000000e+00 : f32
    %783 = vector.shape_cast %782 : vector<128x1xi1> to vector<128x1xi1>
    %784 = vector.broadcast %783 : vector<128x1xi1> to vector<128x32xi1>
    %785 = vector.broadcast %cst_240 : f32 to vector<128x32xf32>
    %786 = arith.select %784, %763, %785 : vector<128x32xi1>, vector<128x32xf32>
    %787 = arith.truncf %786 : vector<128x32xf32> to vector<128x32xbf16>
    %cst_241 = arith.constant dense<0.000000e+00> : vector<128x32xf32>
    %788 = tpu.matmul %787, %760, %cst_241 {dimension_numbers = #tpu.dot_dimension_numbers<[1], [0], [0], [1], [0, 0, 1, 1], [], []>} : vector<128x32xbf16>, vector<32x32xbf16>, vector<128x32xf32> -> vector<128x32xf32>
    %c1568 = arith.constant 1568 : index
    %c0_242 = arith.constant 0 : index
    %789 = vector.load %arg5[%c1568, %c0_242] : memref<1792x128xbf16, #tpu.memory_space<vmem>>, vector<32x128xbf16>
    %790 = vector.extract_strided_slice %789 {offsets = [0, 0], sizes = [32, 32], strides = [1, 1]} : vector<32x128xbf16> to vector<32x32xbf16>
    %791 = arith.truncf %758 : vector<128x32xf32> to vector<128x32xbf16>
    %cst_243 = arith.constant dense<0.000000e+00> : vector<128x32xf32>
    %792 = tpu.matmul %791, %790, %cst_243 {dimension_numbers = #tpu.dot_dimension_numbers<[1], [0], [0], [1], [0, 0, 1, 1], [], []>} : vector<128x32xbf16>, vector<32x32xbf16>, vector<128x32xf32> -> vector<128x32xf32>
    %793 = arith.addf %788, %792 : vector<128x32xf32>
    %c1600 = arith.constant 1600 : index
    %c0_244 = arith.constant 0 : index
    %794 = vector.load %arg5[%c1600, %c0_244] : memref<1792x128xbf16, #tpu.memory_space<vmem>>, vector<32x128xbf16>
    %795 = vector.extract_strided_slice %794 {offsets = [0, 0], sizes = [32, 32], strides = [1, 1]} : vector<32x128xbf16> to vector<32x32xbf16>
    %796 = vector.extract_strided_slice %758 {offsets = [1, 0], sizes = [127, 32], strides = [1, 1]} : vector<128x32xf32> to vector<127x32xf32>
    %797 = vector.extract_strided_slice %758 {offsets = [0, 0], sizes = [1, 32], strides = [1, 1]} : vector<128x32xf32> to vector<1x32xf32>
    %798 = tpu.concatenate %796, %797 in 0 : vector<127x32xf32>, vector<1x32xf32> -> vector<128x32xf32>
    %799 = tpu.iota {dimensions = array<i32: 0>} : vector<128x1xi32>
    %c64_i32_245 = arith.constant 64 : i32
    %c0_i32_246 = arith.constant 0 : i32
    %800 = arith.cmpi eq, %c64_i32_245, %c0_i32_246 : i32
    %c1_i32_247 = arith.constant 1 : i32
    %801 = arith.select %800, %c1_i32_247, %c64_i32_245 : i32
    %802 = vector.broadcast %801 : i32 to vector<128x1xi32>
    %803 = arith.remsi %799, %802 : vector<128x1xi32>
    %c0_i32_248 = arith.constant 0 : i32
    %804 = vector.broadcast %c0_i32_248 : i32 to vector<128x1xi32>
    %805 = arith.cmpi ne, %803, %804 : vector<128x1xi32>
    %c0_i32_249 = arith.constant 0 : i32
    %806 = vector.broadcast %c0_i32_249 : i32 to vector<128x1xi32>
    %807 = arith.cmpi slt, %803, %806 : vector<128x1xi32>
    %c0_i32_250 = arith.constant 0 : i32
    %808 = arith.cmpi slt, %801, %c0_i32_250 : i32
    %809 = vector.broadcast %808 : i1 to vector<128x1xi1>
    %810 = vector.broadcast %809 : vector<128x1xi1> to vector<128x1xi1>
    %811 = arith.xori %807, %810 : vector<128x1xi1>
    %812 = arith.andi %811, %805 : vector<128x1xi1>
    %813 = vector.broadcast %801 : i32 to vector<128x1xi32>
    %814 = arith.addi %803, %813 : vector<128x1xi32>
    %815 = arith.select %812, %814, %803 : vector<128x1xi1>, vector<128x1xi32>
    %c63_i32 = arith.constant 63 : i32
    %816 = vector.broadcast %c63_i32 : i32 to vector<128x1xi32>
    %817 = arith.cmpi slt, %815, %816 : vector<128x1xi32>
    %cst_251 = arith.constant 0.000000e+00 : f32
    %818 = vector.shape_cast %817 : vector<128x1xi1> to vector<128x1xi1>
    %819 = vector.broadcast %818 : vector<128x1xi1> to vector<128x32xi1>
    %820 = vector.broadcast %cst_251 : f32 to vector<128x32xf32>
    %821 = arith.select %819, %798, %820 : vector<128x32xi1>, vector<128x32xf32>
    %822 = arith.truncf %821 : vector<128x32xf32> to vector<128x32xbf16>
    %cst_252 = arith.constant dense<0.000000e+00> : vector<128x32xf32>
    %823 = tpu.matmul %822, %795, %cst_252 {dimension_numbers = #tpu.dot_dimension_numbers<[1], [0], [0], [1], [0, 0, 1, 1], [], []>} : vector<128x32xbf16>, vector<32x32xbf16>, vector<128x32xf32> -> vector<128x32xf32>
    %824 = arith.addf %793, %823 : vector<128x32xf32>
    %c1632 = arith.constant 1632 : index
    %c0_253 = arith.constant 0 : index
    %825 = vector.load %arg5[%c1632, %c0_253] : memref<1792x128xbf16, #tpu.memory_space<vmem>>, vector<1x128xbf16>
    %826 = vector.extract_strided_slice %825 {offsets = [0, 0], sizes = [1, 32], strides = [1, 1]} : vector<1x128xbf16> to vector<1x32xbf16>
    %827 = arith.extf %826 : vector<1x32xbf16> to vector<1x32xf32>
    %828 = vector.broadcast %827 : vector<1x32xf32> to vector<128x32xf32>
    %829 = arith.addf %824, %828 : vector<128x32xf32>
    %cst_254 = arith.constant 0.000000e+00 : f32
    %830 = vector.broadcast %cst_254 : f32 to vector<128x32xf32>
    %831 = arith.cmpf oge, %829, %830 : vector<128x32xf32>
    %cst_255 = arith.constant 1.000000e-01 : f32
    %832 = vector.broadcast %cst_255 : f32 to vector<128x32xf32>
    %833 = arith.mulf %832, %829 : vector<128x32xf32>
    %834 = arith.select %831, %829, %833 : vector<128x32xi1>, vector<128x32xf32>
    %c1648 = arith.constant 1648 : index
    %c0_256 = arith.constant 0 : index
    %835 = vector.load %arg5[%c1648, %c0_256] : memref<1792x128xbf16, #tpu.memory_space<vmem>>, vector<32x128xbf16>
    %836 = vector.extract_strided_slice %835 {offsets = [0, 0], sizes = [32, 32], strides = [1, 1]} : vector<32x128xbf16> to vector<32x32xbf16>
    %837 = vector.extract_strided_slice %834 {offsets = [127, 0], sizes = [1, 32], strides = [1, 1]} : vector<128x32xf32> to vector<1x32xf32>
    %838 = vector.extract_strided_slice %834 {offsets = [0, 0], sizes = [127, 32], strides = [1, 1]} : vector<128x32xf32> to vector<127x32xf32>
    %839 = tpu.concatenate %837, %838 in 0 : vector<1x32xf32>, vector<127x32xf32> -> vector<128x32xf32>
    %840 = tpu.iota {dimensions = array<i32: 0>} : vector<128x1xi32>
    %c64_i32_257 = arith.constant 64 : i32
    %c0_i32_258 = arith.constant 0 : i32
    %841 = arith.cmpi eq, %c64_i32_257, %c0_i32_258 : i32
    %c1_i32_259 = arith.constant 1 : i32
    %842 = arith.select %841, %c1_i32_259, %c64_i32_257 : i32
    %843 = vector.broadcast %842 : i32 to vector<128x1xi32>
    %844 = arith.remsi %840, %843 : vector<128x1xi32>
    %c0_i32_260 = arith.constant 0 : i32
    %845 = vector.broadcast %c0_i32_260 : i32 to vector<128x1xi32>
    %846 = arith.cmpi ne, %844, %845 : vector<128x1xi32>
    %c0_i32_261 = arith.constant 0 : i32
    %847 = vector.broadcast %c0_i32_261 : i32 to vector<128x1xi32>
    %848 = arith.cmpi slt, %844, %847 : vector<128x1xi32>
    %c0_i32_262 = arith.constant 0 : i32
    %849 = arith.cmpi slt, %842, %c0_i32_262 : i32
    %850 = vector.broadcast %849 : i1 to vector<128x1xi1>
    %851 = vector.broadcast %850 : vector<128x1xi1> to vector<128x1xi1>
    %852 = arith.xori %848, %851 : vector<128x1xi1>
    %853 = arith.andi %852, %846 : vector<128x1xi1>
    %854 = vector.broadcast %842 : i32 to vector<128x1xi32>
    %855 = arith.addi %844, %854 : vector<128x1xi32>
    %856 = arith.select %853, %855, %844 : vector<128x1xi1>, vector<128x1xi32>
    %c1_i32_263 = arith.constant 1 : i32
    %857 = vector.broadcast %c1_i32_263 : i32 to vector<128x1xi32>
    %858 = arith.cmpi sge, %856, %857 : vector<128x1xi32>
    %cst_264 = arith.constant 0.000000e+00 : f32
    %859 = vector.shape_cast %858 : vector<128x1xi1> to vector<128x1xi1>
    %860 = vector.broadcast %859 : vector<128x1xi1> to vector<128x32xi1>
    %861 = vector.broadcast %cst_264 : f32 to vector<128x32xf32>
    %862 = arith.select %860, %839, %861 : vector<128x32xi1>, vector<128x32xf32>
    %863 = arith.truncf %862 : vector<128x32xf32> to vector<128x32xbf16>
    %cst_265 = arith.constant dense<0.000000e+00> : vector<128x32xf32>
    %864 = tpu.matmul %863, %836, %cst_265 {dimension_numbers = #tpu.dot_dimension_numbers<[1], [0], [0], [1], [0, 0, 1, 1], [], []>} : vector<128x32xbf16>, vector<32x32xbf16>, vector<128x32xf32> -> vector<128x32xf32>
    %c1680 = arith.constant 1680 : index
    %c0_266 = arith.constant 0 : index
    %865 = vector.load %arg5[%c1680, %c0_266] : memref<1792x128xbf16, #tpu.memory_space<vmem>>, vector<32x128xbf16>
    %866 = vector.extract_strided_slice %865 {offsets = [0, 0], sizes = [32, 32], strides = [1, 1]} : vector<32x128xbf16> to vector<32x32xbf16>
    %867 = arith.truncf %834 : vector<128x32xf32> to vector<128x32xbf16>
    %cst_267 = arith.constant dense<0.000000e+00> : vector<128x32xf32>
    %868 = tpu.matmul %867, %866, %cst_267 {dimension_numbers = #tpu.dot_dimension_numbers<[1], [0], [0], [1], [0, 0, 1, 1], [], []>} : vector<128x32xbf16>, vector<32x32xbf16>, vector<128x32xf32> -> vector<128x32xf32>
    %869 = arith.addf %864, %868 : vector<128x32xf32>
    %c1712 = arith.constant 1712 : index
    %c0_268 = arith.constant 0 : index
    %870 = vector.load %arg5[%c1712, %c0_268] : memref<1792x128xbf16, #tpu.memory_space<vmem>>, vector<32x128xbf16>
    %871 = vector.extract_strided_slice %870 {offsets = [0, 0], sizes = [32, 32], strides = [1, 1]} : vector<32x128xbf16> to vector<32x32xbf16>
    %872 = vector.extract_strided_slice %834 {offsets = [1, 0], sizes = [127, 32], strides = [1, 1]} : vector<128x32xf32> to vector<127x32xf32>
    %873 = vector.extract_strided_slice %834 {offsets = [0, 0], sizes = [1, 32], strides = [1, 1]} : vector<128x32xf32> to vector<1x32xf32>
    %874 = tpu.concatenate %872, %873 in 0 : vector<127x32xf32>, vector<1x32xf32> -> vector<128x32xf32>
    %875 = tpu.iota {dimensions = array<i32: 0>} : vector<128x1xi32>
    %c64_i32_269 = arith.constant 64 : i32
    %c0_i32_270 = arith.constant 0 : i32
    %876 = arith.cmpi eq, %c64_i32_269, %c0_i32_270 : i32
    %c1_i32_271 = arith.constant 1 : i32
    %877 = arith.select %876, %c1_i32_271, %c64_i32_269 : i32
    %878 = vector.broadcast %877 : i32 to vector<128x1xi32>
    %879 = arith.remsi %875, %878 : vector<128x1xi32>
    %c0_i32_272 = arith.constant 0 : i32
    %880 = vector.broadcast %c0_i32_272 : i32 to vector<128x1xi32>
    %881 = arith.cmpi ne, %879, %880 : vector<128x1xi32>
    %c0_i32_273 = arith.constant 0 : i32
    %882 = vector.broadcast %c0_i32_273 : i32 to vector<128x1xi32>
    %883 = arith.cmpi slt, %879, %882 : vector<128x1xi32>
    %c0_i32_274 = arith.constant 0 : i32
    %884 = arith.cmpi slt, %877, %c0_i32_274 : i32
    %885 = vector.broadcast %884 : i1 to vector<128x1xi1>
    %886 = vector.broadcast %885 : vector<128x1xi1> to vector<128x1xi1>
    %887 = arith.xori %883, %886 : vector<128x1xi1>
    %888 = arith.andi %887, %881 : vector<128x1xi1>
    %889 = vector.broadcast %877 : i32 to vector<128x1xi32>
    %890 = arith.addi %879, %889 : vector<128x1xi32>
    %891 = arith.select %888, %890, %879 : vector<128x1xi1>, vector<128x1xi32>
    %c63_i32_275 = arith.constant 63 : i32
    %892 = vector.broadcast %c63_i32_275 : i32 to vector<128x1xi32>
    %893 = arith.cmpi slt, %891, %892 : vector<128x1xi32>
    %cst_276 = arith.constant 0.000000e+00 : f32
    %894 = vector.shape_cast %893 : vector<128x1xi1> to vector<128x1xi1>
    %895 = vector.broadcast %894 : vector<128x1xi1> to vector<128x32xi1>
    %896 = vector.broadcast %cst_276 : f32 to vector<128x32xf32>
    %897 = arith.select %895, %874, %896 : vector<128x32xi1>, vector<128x32xf32>
    %898 = arith.truncf %897 : vector<128x32xf32> to vector<128x32xbf16>
    %cst_277 = arith.constant dense<0.000000e+00> : vector<128x32xf32>
    %899 = tpu.matmul %898, %871, %cst_277 {dimension_numbers = #tpu.dot_dimension_numbers<[1], [0], [0], [1], [0, 0, 1, 1], [], []>} : vector<128x32xbf16>, vector<32x32xbf16>, vector<128x32xf32> -> vector<128x32xf32>
    %900 = arith.addf %869, %899 : vector<128x32xf32>
    %c1744 = arith.constant 1744 : index
    %c0_278 = arith.constant 0 : index
    %901 = vector.load %arg5[%c1744, %c0_278] : memref<1792x128xbf16, #tpu.memory_space<vmem>>, vector<1x128xbf16>
    %902 = vector.extract_strided_slice %901 {offsets = [0, 0], sizes = [1, 32], strides = [1, 1]} : vector<1x128xbf16> to vector<1x32xbf16>
    %903 = arith.extf %902 : vector<1x32xbf16> to vector<1x32xf32>
    %904 = vector.broadcast %903 : vector<1x32xf32> to vector<128x32xf32>
    %905 = arith.addf %900, %904 : vector<128x32xf32>
    %906 = arith.addf %753, %905 : vector<128x32xf32>
    %cst_279 = arith.constant 0.000000e+00 : f32
    %907 = vector.broadcast %cst_279 : f32 to vector<128x32xf32>
    %908 = arith.cmpf oge, %906, %907 : vector<128x32xf32>
    %cst_280 = arith.constant 1.000000e-01 : f32
    %909 = vector.broadcast %cst_280 : f32 to vector<128x32xf32>
    %910 = arith.mulf %909, %906 : vector<128x32xf32>
    %911 = arith.select %908, %906, %910 : vector<128x32xi1>, vector<128x32xf32>
    %c1760 = arith.constant 1760 : index
    %c0_281 = arith.constant 0 : index
    %912 = vector.load %arg5[%c1760, %c0_281] : memref<1792x128xbf16, #tpu.memory_space<vmem>>, vector<1x128xbf16>
    %913 = vector.extract_strided_slice %912 {offsets = [0, 0], sizes = [1, 32], strides = [1, 1]} : vector<1x128xbf16> to vector<1x32xbf16>
    %914 = vector.extract_strided_slice %911 {offsets = [127, 0], sizes = [1, 32], strides = [1, 1]} : vector<128x32xf32> to vector<1x32xf32>
    %915 = vector.extract_strided_slice %911 {offsets = [0, 0], sizes = [127, 32], strides = [1, 1]} : vector<128x32xf32> to vector<127x32xf32>
    %916 = tpu.concatenate %914, %915 in 0 : vector<1x32xf32>, vector<127x32xf32> -> vector<128x32xf32>
    %917 = tpu.iota {dimensions = array<i32: 0>} : vector<128x1xi32>
    %c64_i32_282 = arith.constant 64 : i32
    %c0_i32_283 = arith.constant 0 : i32
    %918 = arith.cmpi eq, %c64_i32_282, %c0_i32_283 : i32
    %c1_i32_284 = arith.constant 1 : i32
    %919 = arith.select %918, %c1_i32_284, %c64_i32_282 : i32
    %920 = vector.broadcast %919 : i32 to vector<128x1xi32>
    %921 = arith.remsi %917, %920 : vector<128x1xi32>
    %c0_i32_285 = arith.constant 0 : i32
    %922 = vector.broadcast %c0_i32_285 : i32 to vector<128x1xi32>
    %923 = arith.cmpi ne, %921, %922 : vector<128x1xi32>
    %c0_i32_286 = arith.constant 0 : i32
    %924 = vector.broadcast %c0_i32_286 : i32 to vector<128x1xi32>
    %925 = arith.cmpi slt, %921, %924 : vector<128x1xi32>
    %c0_i32_287 = arith.constant 0 : i32
    %926 = arith.cmpi slt, %919, %c0_i32_287 : i32
    %927 = vector.broadcast %926 : i1 to vector<128x1xi1>
    %928 = vector.broadcast %927 : vector<128x1xi1> to vector<128x1xi1>
    %929 = arith.xori %925, %928 : vector<128x1xi1>
    %930 = arith.andi %929, %923 : vector<128x1xi1>
    %931 = vector.broadcast %919 : i32 to vector<128x1xi32>
    %932 = arith.addi %921, %931 : vector<128x1xi32>
    %933 = arith.select %930, %932, %921 : vector<128x1xi1>, vector<128x1xi32>
    %c1_i32_288 = arith.constant 1 : i32
    %934 = vector.broadcast %c1_i32_288 : i32 to vector<128x1xi32>
    %935 = arith.cmpi sge, %933, %934 : vector<128x1xi32>
    %cst_289 = arith.constant 0.000000e+00 : f32
    %936 = vector.shape_cast %935 : vector<128x1xi1> to vector<128x1xi1>
    %937 = vector.broadcast %936 : vector<128x1xi1> to vector<128x32xi1>
    %938 = vector.broadcast %cst_289 : f32 to vector<128x32xf32>
    %939 = arith.select %937, %916, %938 : vector<128x32xi1>, vector<128x32xf32>
    %940 = arith.truncf %939 : vector<128x32xf32> to vector<128x32xbf16>
    %cst_290 = arith.constant dense<0.000000e+00> : vector<1x128xf32>
    %941 = tpu.matmul %913, %940, %cst_290 {dimension_numbers = #tpu.dot_dimension_numbers<[1], [1], [0], [0], [0, 0, 1, 0], [], []>} : vector<1x32xbf16>, vector<128x32xbf16>, vector<1x128xf32> -> vector<1x128xf32>
    %c1761 = arith.constant 1761 : index
    %c0_291 = arith.constant 0 : index
    %942 = vector.load %arg5[%c1761, %c0_291] : memref<1792x128xbf16, #tpu.memory_space<vmem>>, vector<1x128xbf16>
    %943 = vector.extract_strided_slice %942 {offsets = [0, 0], sizes = [1, 32], strides = [1, 1]} : vector<1x128xbf16> to vector<1x32xbf16>
    %944 = arith.truncf %911 : vector<128x32xf32> to vector<128x32xbf16>
    %cst_292 = arith.constant dense<0.000000e+00> : vector<1x128xf32>
    %945 = tpu.matmul %943, %944, %cst_292 {dimension_numbers = #tpu.dot_dimension_numbers<[1], [1], [0], [0], [0, 0, 1, 0], [], []>} : vector<1x32xbf16>, vector<128x32xbf16>, vector<1x128xf32> -> vector<1x128xf32>
    %946 = arith.addf %941, %945 : vector<1x128xf32>
    %c1762 = arith.constant 1762 : index
    %c0_293 = arith.constant 0 : index
    %947 = vector.load %arg5[%c1762, %c0_293] : memref<1792x128xbf16, #tpu.memory_space<vmem>>, vector<1x128xbf16>
    %948 = vector.extract_strided_slice %947 {offsets = [0, 0], sizes = [1, 32], strides = [1, 1]} : vector<1x128xbf16> to vector<1x32xbf16>
    %949 = vector.extract_strided_slice %911 {offsets = [1, 0], sizes = [127, 32], strides = [1, 1]} : vector<128x32xf32> to vector<127x32xf32>
    %950 = vector.extract_strided_slice %911 {offsets = [0, 0], sizes = [1, 32], strides = [1, 1]} : vector<128x32xf32> to vector<1x32xf32>
    %951 = tpu.concatenate %949, %950 in 0 : vector<127x32xf32>, vector<1x32xf32> -> vector<128x32xf32>
    %952 = tpu.iota {dimensions = array<i32: 0>} : vector<128x1xi32>
    %c64_i32_294 = arith.constant 64 : i32
    %c0_i32_295 = arith.constant 0 : i32
    %953 = arith.cmpi eq, %c64_i32_294, %c0_i32_295 : i32
    %c1_i32_296 = arith.constant 1 : i32
    %954 = arith.select %953, %c1_i32_296, %c64_i32_294 : i32
    %955 = vector.broadcast %954 : i32 to vector<128x1xi32>
    %956 = arith.remsi %952, %955 : vector<128x1xi32>
    %c0_i32_297 = arith.constant 0 : i32
    %957 = vector.broadcast %c0_i32_297 : i32 to vector<128x1xi32>
    %958 = arith.cmpi ne, %956, %957 : vector<128x1xi32>
    %c0_i32_298 = arith.constant 0 : i32
    %959 = vector.broadcast %c0_i32_298 : i32 to vector<128x1xi32>
    %960 = arith.cmpi slt, %956, %959 : vector<128x1xi32>
    %c0_i32_299 = arith.constant 0 : i32
    %961 = arith.cmpi slt, %954, %c0_i32_299 : i32
    %962 = vector.broadcast %961 : i1 to vector<128x1xi1>
    %963 = vector.broadcast %962 : vector<128x1xi1> to vector<128x1xi1>
    %964 = arith.xori %960, %963 : vector<128x1xi1>
    %965 = arith.andi %964, %958 : vector<128x1xi1>
    %966 = vector.broadcast %954 : i32 to vector<128x1xi32>
    %967 = arith.addi %956, %966 : vector<128x1xi32>
    %968 = arith.select %965, %967, %956 : vector<128x1xi1>, vector<128x1xi32>
    %c63_i32_300 = arith.constant 63 : i32
    %969 = vector.broadcast %c63_i32_300 : i32 to vector<128x1xi32>
    %970 = arith.cmpi slt, %968, %969 : vector<128x1xi32>
    %cst_301 = arith.constant 0.000000e+00 : f32
    %971 = vector.shape_cast %970 : vector<128x1xi1> to vector<128x1xi1>
    %972 = vector.broadcast %971 : vector<128x1xi1> to vector<128x32xi1>
    %973 = vector.broadcast %cst_301 : f32 to vector<128x32xf32>
    %974 = arith.select %972, %951, %973 : vector<128x32xi1>, vector<128x32xf32>
    %975 = arith.truncf %974 : vector<128x32xf32> to vector<128x32xbf16>
    %cst_302 = arith.constant dense<0.000000e+00> : vector<1x128xf32>
    %976 = tpu.matmul %948, %975, %cst_302 {dimension_numbers = #tpu.dot_dimension_numbers<[1], [1], [0], [0], [0, 0, 1, 0], [], []>} : vector<1x32xbf16>, vector<128x32xbf16>, vector<1x128xf32> -> vector<1x128xf32>
    %977 = arith.addf %946, %976 : vector<1x128xf32>
    %c1776 = arith.constant 1776 : index
    %c0_303 = arith.constant 0 : index
    %978 = vector.load %arg5[%c1776, %c0_303] : memref<1792x128xbf16, #tpu.memory_space<vmem>>, vector<1x128xbf16>
    %979 = vector.extract_strided_slice %978 {offsets = [0, 0], sizes = [1, 1], strides = [1, 1]} : vector<1x128xbf16> to vector<1x1xbf16>
    %980 = arith.extf %979 : vector<1x1xbf16> to vector<1x1xf32>
    %981 = vector.broadcast %980 : vector<1x1xf32> to vector<1x128xf32>
    %982 = arith.addf %977, %981 : vector<1x128xf32>
    %983 = math.tanh %982 : vector<1x128xf32>
    %c0_304 = arith.constant 0 : index
    %c0_305 = arith.constant 0 : index
    %984 = vector.load %arg6[%c0_304, %c0_305] : memref<1x128xf32, #tpu.memory_space<vmem>>, vector<1x128xf32>
    tpu.vector_store %arg6[%c0_304, %c0_305], %983 {strides = array<i32>} : memref<1x128xf32, #tpu.memory_space<vmem>>, vector<1x128xf32>,
    return
  }
  func.func @transform_0(%arg0: i32) -> (i32, i32) {
    %c0_i32 = arith.constant 0 : i32
    %c0_i32_0 = arith.constant 0 : i32
    %c0_i32_1 = arith.constant 0 : i32
    return %c0_i32, %c0_i32_0 : i32, i32
  }
  func.func @transform_1(%arg0: i32) -> (i32, i32) {
    %c0_i32 = arith.constant 0 : i32
    %c0_i32_0 = arith.constant 0 : i32
    %c0_i32_1 = arith.constant 0 : i32
    return %c0_i32, %c0_i32_0 : i32, i32
  }
  func.func @transform_2(%arg0: i32) -> (i32, i32) {
    %c0_i32 = arith.constant 0 : i32
    %c0_i32_0 = arith.constant 0 : i32
    %c0_i32_1 = arith.constant 0 : i32
    return %c0_i32, %c0_i32_0 : i32, i32
  }
  func.func @transform_3(%arg0: i32) -> (i32, i32) {
    %c0_i32 = arith.constant 0 : i32
    %c0_i32_0 = arith.constant 0 : i32
    %c0_i32_1 = arith.constant 0 : i32
    return %c0_i32, %c0_i32_0 : i32, i32
  }
  func.func @transform_4(%arg0: i32) -> (i32, i32) {
    %c0_i32 = arith.constant 0 : i32
    %c0_i32_0 = arith.constant 0 : i32
    %c0_i32_1 = arith.constant 0 : i32
    return %c0_i32, %c0_i32_0 : i32, i32
  }
  func.func @transform_5(%arg0: i32) -> (i32, i32) {
    %c0_i32 = arith.constant 0 : i32
    %c0_i32_0 = arith.constant 0 : i32
    %c0_i32_1 = arith.constant 0 : i32
    return %c0_i32, %c0_i32_0 : i32, i32
  }
}

</mosaic_0001>

<bundles_post_ra>
// kernel: forward.1
= control target key start
LH: loop header
LB: loop body
LE: loop exit
PB: predicated region body
PF: predicated region fallthrough
CT: control target
= control target key end

     0   :  { %10 = vsyncpa [#allocation4], 0  ;;  %s7562_s18 = smov [#allocation3]   ;;  %s8985_s0 = inlined_call_operand.vmem [shape: s32[16,1], index: 0, kind: input, shape index: {}]   ;;  %s8986_s1 = inlined_call_operand.vmem [shape: s32[16,1], index: 1, kind: input, shape index: {}]   ;;  %s8987_s2 = inlined_call_operand.vmem [shape: f32[32,16], index: 2, kind: input, shape index: {}]   ;;  %s8988_s3 = inlined_call_operand.vmem [shape: f32[32,32], index: 3, kind: input, shape index: {}]   ;;  %s8989_s4 = inlined_call_operand.hbm [shape: bf16[1792,128], index: 4, kind: input, shape index: {}]   ;;  %s8990_s5 = inlined_call_operand.vmem [shape: f32[1,128], index: 5, kind: output, shape index: {}]  }
   0x1   :  { %s24_s19 = sshll.u32 %s7562_s18, 4  ;;  %s25_s19 = int_to_ptr.vmem [resolvable:$true] %s24_s19 }
   0x2   :  { %s7548_s20 = scalar_lea.vmem %s25_s19, 14336  ;;  %p7553_p1 = scmp.lt.s32.totalorder %s25_s19, %s25_s19 }
   0x3   :  { %p7549_p0 = scmp.ne.s32.totalorder %s25_s19, %s7548_s20  ;;  %p7554_p2 = scmp.lt.s32.totalorder %s7548_s20, %s7548_s20 }
   0x5   :  { %p7555_p3 = por %p7554_p2, %p7553_p1 }
   0x7   :  { %p7556_p4 = pnand %p7555_p3, %p7549_p0 }
   0x9   :  { %7559 = shalt.err (!%p7556_p4)
}
   0xa   :  { %s7563_s21 = smov 64   ;;  %s7564_s22 = smov 4  }
   0xb   :  { %30 = dma.hbm_to_vmem [thread:$0]  %s8989_s4, 14336, %s25_s19, [#allocation4], %s7563_s21, %s7563_s21, %s7564_s22  }
   0xc   :  { %7560 = dma.done.wait [#allocation4], 14336  }
   0xd   :  { %7561 = vsyncadd [#allocation4], 4294952960  ;;  %v59_v0 = vlaneseq  ;;  %vm140_vm0 = vcmask 130048   ;;  %vm47_vm1 = vcmask 1040384   ;;  %vm259_vm2 = vcmask 1046528   ;;  %v7341_v8 = vld [vmem:[#allocation3 + $0x50] sm:$0xff]  }
   0xe   :  { %v7342_v10 = vld [vmem:[#allocation3 + $0x48] sm:$0xff]   ;;  %6802 = vmatprep.subr.bf16.mxu0 %v7341_v8  ;;  %v35_v12 = vld [vmem:[%s8987_s2] sm:$0xff]  ;;  %v37_v14 = vld [vmem:[%s8987_s2 + $0x10] sm:$0xff]  ;;  %v8991_v46 = vmov 0.0   ;;  %vm7566_vm7 = vmmov 0   ;;  %v7567_v49 = vmov 0  }
   0xf   :  { %v7610_v1 = vshrl.u32 %v59_v0, 7  ;;  %v36_v13 = vld [vmem:[%s8987_s2 + $0x8] sm:$0xff]  ;;  %6803 = vmatpush3.bf16.msra.mxu0 %v7341_v8  ;;  %6808 = vmatprep.subr.bf16.mxu1 %v7342_v10  ;;  %v48_v18 = vrot.slane %v35_v12, 7  ;;  %v260_v21 = vrot.slane %v35_v12, 1  ;;  %v38_v22 = vld [vmem:[%s8987_s2 + $0x18] sm:$0xff]  ;;  %v51_v24 = vrot.slane %v37_v14, 7 }
  0x10   :  { %v49_v19 = vrot.slane %v36_v13, 7  ;;  %v132_v20 = vpack.c.bf16 %v36_v13, %v35_v12  ;;  %6809 = vmatpush3.bf16.msra.mxu1 %v7342_v10  ;;  %v261_v23 = vrot.slane %v36_v13, 1  ;;  %v133_v25 = vpack.c.bf16 %v38_v22, %v37_v14  ;;  %v7343_v27 = vld [vmem:[#allocation3 + $0x58] sm:$0xff]   ;;  %v557_v47 = vld [vmem:[%s8985_s0] sm:$0xff]  ;;  %v7344_v48 = vld [vmem:[#allocation3 + $0x208] sm:$0xff]   ;;  %7339 = vset.pattern.permute.xlu0 %v7567_v49  ;;  %s7569_s10 = smov 80  }
  0x11   :  { %v68_v2 = vand.u32 15, %v7610_v1  ;;  %v62_v3 = vadd.s32 16, %v7610_v1  ;;  %v61_v4 = vadd.s32 8, %v7610_v1  ;;  %v63_v5 = vadd.s32 24, %v7610_v1  ;;  %6814 = vmatprep.subr.bf16.mxu0 %v7343_v27  ;;  %6820 = vmatprep.subr.bf16.mxu1 %v8991_v46  ;;  %v7345_v50 = vld [vmem:[#allocation3 + $0x200] sm:$0xff]   ;;  %v558_v51 = vld [vmem:[%s8985_s0 + $0x8] sm:$0xff] }
  0x12   :  { %v263_v26 = vrot.slane %v37_v14, 1  ;;  %6804 = vmatprep.mubr.msk.bf16.mxu0 %vm140_vm0, %v132_v20  ;;  %v265_v28 = vrot.slane %v38_v22, 1  ;;  %v42_v29 = vrot.slane %v38_v22, 7  ;;  %v50_v30 = vsel %vm47_vm1, %v48_v18, %v49_v19  ;;  %7340 = vset.pattern.permute.xlu1 %v7567_v49  ;;  %v356_v54 = vld [vmem:[#allocation3 + $0x60] sm:$0x1]  ;;  %s7568_s0 = smov 96  }
  0x13   :  { %v82_v6 = vand.u32 15, %v62_v3  ;;  %v75_v7 = vand.u32 15, %v61_v4  ;;  %v89_v9 = vand.u32 15, %v63_v5  ;;  %vm7616_vm3 = vcmp.ge.s32.totalorder %v68_v2, 1  ;;  %6805 = vmatmul.mubr.msk.bf16.vlgmr.msra.gmra.mxu0 %vm140_vm0, %v133_v25  ;;  %562 = vperm.xlu0 %7339, %v557_v47   ;;  %s7570_s11 = smov 112   ;;  %s7571_s12 = smov 48  }
  0x14   :  { %v52_v31 = vsel %vm47_vm1, %v49_v19, %v51_v24  ;;  %v262_v32 = vsel %vm259_vm2, %v260_v21, %v261_v23  ;;  %v264_v33 = vsel %vm259_vm2, %v261_v23, %v263_v26  ;;  %v58_v34 = vsel %vm47_vm1, %v42_v29, %v48_v18  ;;  %6815 = vmatpush3.bf16.msra.mxu0 %v7343_v27  ;;  %s7573_s4 = smov 32  }
  0x15   :  { %vm7629_vm4 = vcmp.ge.s32.totalorder %v82_v6, 1  ;;  %vm7633_vm5 = vcmp.lt.s32.totalorder %v75_v7, 15  ;;  %vm7637_vm6 = vcmp.lt.s32.totalorder %v89_v9, 15  ;;  %v53_v35 = vsel %vm47_vm1, %v51_v24, %v42_v29  ;;  %6828 = vmatprep.subr.bf16.mxu0 %v8991_v46 }
  0x16   :  { %v126_v36 = vsel %vm7629_vm4, %v52_v31, 0.0  ;;  %v286_v37 = vsel %vm7633_vm5, %v264_v33, 0.0  ;;  %v124_v38 = vsel %vm7616_vm3, %v58_v34, 0.0  ;;  %v266_v41 = vsel %vm259_vm2, %v263_v26, %v265_v28 }
  0x17   :  { %v129_v39 = vpack.c.bf16 %v53_v35, %v126_v36  ;;  %v289_v40 = vpack.c.bf16 %v286_v37, %v262_v32  ;;  %v128_v42 = vpack.c.bf16 %v50_v30, %v124_v38  ;;  %v272_v43 = vsel %vm259_vm2, %v265_v28, %v260_v21  ;;  %565 = vperm.xlu0 %7339, %v558_v51   ;;  %v370_v28 = vld [vmem:[#allocation3 + $0x10] sm:$0x1]  ;;  %v7346_v30 = vld [vmem:[#allocation3 + $0x80] sm:$0xff]   ;;  %v7347_v35 = vld [vmem:[#allocation3 + $0x78] sm:$0xff]  }
  0x18   :  { %v288_v44 = vsel %vm7637_vm6, %v272_v43, 0.0  ;;  %v7681_v56 = vsub.s32 0, %v7610_v1  ;;  %v357_v57 = vunpack.c.l.bf16 %v356_v54  ;;  %vm373_vm8 = vcmask 261120   ;;  %v7350_v43 = vld [vmem:[#allocation3 + $0x18] sm:$0xff]   ;;  %v7351_v54 = vld [vmem:[#allocation3 + $0x20] sm:$0xff]  }
  0x19   :  { %6816 = vmatprep.mubr.msk.bf16.mxu0 %vm140_vm0, %v289_v40  ;;  %6810 = vmatprep.mubr.msk.bf16.mxu1 %vm140_vm0, %v128_v42  ;;  %v290_v45 = vpack.c.bf16 %v288_v44, %v266_v41  ;;  %v7691_v37 = vand.u32 127, %v59_v0  ;;  %v7349_v40 = vld [vmem:[#allocation3 + $0x68] sm:$0xff]   ;;  %vm606_vm11 = vcmask 523264   ;;  %vm498_vm12 = vcmask 15360   ;;  %v422_v44 = vld [vmem:[#allocation3 + $0x210] sm:$0x1] }
  0x1a   :  { %6811 = vmatmul.mubr.msk.bf16.vlgmr.msra.gmra.mxu1 %vm140_vm0, %v129_v39  ;;  %v361_v2 = vrot.slane %v357_v57, %v7681_v56  ;;  %v7348_v39 = vld [vmem:[#allocation3 + $0x70] sm:$0xff]   ;;  %v7352_v57 = vld [vmem:[#allocation3] sm:$0xff]   ;;  %vm753_vm13 = vcmask 392192  }
  0x1b   :  { %6817 = vmatmul.mubr.msk.bf16.vlgmr.msra.gmra.mxu0 %vm140_vm0, %v290_v45  ;;  %6824 = vmatprep.mubr.msk.bf16.mxu1 %vm7566_vm7, %v8991_v46  ;;  %v423_v45 = vunpack.c.l.bf16 %v422_v44 }
  0x1c   :  { %6832 = vmatprep.mubr.msk.bf16.mxu0 %vm7566_vm7, %v8991_v46  ;;  %6829 = vmatpush3.bf16.msra.mxu0 %v7344_v48 }
  0x1d   :  { %6830 = vmatprep.subr.bf16.mxu0 %v8991_v46  ;;  %v427_v47 = vrot.slane %v423_v45, %v7681_v56 }
  0x20   :  { %6831 = vmatpush3.bf16.msra.mxu0 %v7345_v50 }
  0x21   :  { %6842 = vmatprep.subr.bf16.mxu0 %v8991_v46 }
  0x8e   :  { %v563_v33 = vpop.permute.xlu0 %562 }
  0x8f   :  { %vm567_vm9 = vcmp.eq.s32.totalorder %v563_v33, %v7691_v37 }
  0x90   :  { %v6323_v41 = vsel %vm567_vm9, 1.0, %v8991_v46  ;;  %vm2178_vm9 = vcmask 408576  }
  0x92   :  { %v566_v38 = vpop.permute.xlu0 %565 }
  0x93   :  { %vm568_vm10 = vcmp.eq.s32.totalorder %v566_v38, %v7691_v37 }
  0x94   :  { %v6324_v42 = vsel %vm568_vm10, 1.0, %v8991_v46 }
  0x95   :  { %v581_v0 = vpack.c.bf16 %v6324_v42, %v6323_v41 }
  0xd3   :  { %v6806_v52 = vpop.f32.mrf.mxu0 }
  0xd5   :  { %v181_v53 = vpop.f32.mrf.mxu0 }
  0xd7   :  { %v6807_v55 = vpop.f32.mrf.mxu0 }
  0xd9   :  { %v184_v59 = vpop.f32.mrf.mxu0 }
  0xda   :  { %v6812_v58 = vpop.f32.mrf.mxu1 }
  0xdb   :  { %v251_v60 = vadd.f32 %v6812_v58, %v6806_v52  ;;  %v6818_v62 = vpop.f32.mrf.mxu0 }
  0xdc   :  { %v242_v61 = vpop.f32.mrf.mxu1 }
  0xdd   :  { %v354_v63 = vadd.f32 %v6818_v62, %v251_v60  ;;  %v337_v4 = vpop.f32.mrf.mxu0  ;;  %v243_v5 = vadd.f32 %v242_v61, %v181_v53 }
  0xde   :  { %v6813_v3 = vpop.f32.mrf.mxu1 }
  0xdf   :  { %v254_v6 = vadd.f32 %v6813_v3, %v6807_v55  ;;  %v6819_v8 = vpop.f32.mrf.mxu0  ;;  %v364_v10 = vadd.f32 %v361_v2, %v354_v63  ;;  %v352_v12 = vadd.f32 %v337_v4, %v243_v5  ;;  %v7353_v63 = vld [vmem:[#allocation3 + $0x8] sm:$0xff]   ;;  %v7355_v3 = vld [vmem:[#allocation3 + $0xb0] sm:$0xff]  }
  0xe0   :  { %v245_v7 = vpop.f32.mrf.mxu1  ;;  %v7356_v4 = vld [vmem:[#allocation3 + $0xa8] sm:$0xff]  }
  0xe1   :  { %v246_v9 = vadd.f32 %v245_v7, %v184_v59  ;;  %v355_v13 = vadd.f32 %v6819_v8, %v254_v6  ;;  %v340_v14 = vpop.f32.mrf.mxu0  ;;  %v368_v20 = vmax.f32 %v364_v10, 0.0  ;;  %v362_v21 = vadd.f32 %v361_v2, %v352_v12 }
  0xe3   :  { %v365_v18 = vadd.f32 %v361_v2, %v355_v13  ;;  %v353_v19 = vadd.f32 %v340_v14, %v246_v9  ;;  %v366_v26 = vmax.f32 %v362_v21, 0.0  ;;  %v729_v21 = vld [vmem:[#allocation3 + $0xc0] sm:$0x1] }
  0xe5   :  { %v369_v22 = vmax.f32 %v365_v18, 0.0  ;;  %v363_v23 = vadd.f32 %v361_v2, %v353_v19  ;;  %v7354_v2 = vld [vmem:[#allocation3 + $0xb8] sm:$0xff]   ;;  %v7357_v19 = vld [vmem:[#allocation3 + $0xd0] sm:$0xff]  }
  0xe7   :  { %v372_v24 = vpack.c.bf16 %v369_v22, %v368_v20  ;;  %v367_v25 = vmax.f32 %v363_v23, 0.0  ;;  %v7358_v20 = vld [vmem:[#allocation3 + $0xc8] sm:$0xff]   ;;  %v730_v22 = vunpack.c.l.bf16 %v729_v21 }
  0xe9   :  { %6821 = vmatpush3.bf16.msra.mxu1 %v372_v24  ;;  %v371_v27 = vpack.c.bf16 %v367_v25, %v366_v26  ;;  %v734_v25 = vrot.slane %v730_v22, %v7681_v56 }
  0xea   :  { %6822 = vmatprep.subr.bf16.mxu1 %v8991_v46 }
  0xed   :  { %6823 = vmatpush3.bf16.msra.mxu1 %v371_v27 }
  0xf0   :  { %6825 = vmatmul.mubr.msk.bf16.vlgmr.msra.gmra.mxu1 %vm373_vm8, %v370_v28 }
  0xf1   :  { %6838 = vmatprep.mubr.msk.bf16.mxu1 %vm498_vm12, %v7350_v43 }
 0x1b0   :  { %v411_v29 = vpop.f32.mrf.mxu1 }
 0x1b1   :  { %v421_v31 = vpack.c.bf16 %v411_v29, %v411_v29 }
 0x1b2   :  { %v6826_v32 = vpop.f32.mrf.mxu1 }
 0x1b3   :  { %6833 = vmatmul.mubr.msk.bf16.vlgmr.msra.gmra.mxu0 %vm373_vm8, %v421_v31 }
 0x1b4   :  { %6843 = vmatpush3.bf16.msra.mxu0 %v7346_v30  ;;  %v414_v34 = vpop.f32.mrf.mxu1  ;;  %6850 = vmatprep.mubr.msk.bf16.mxu0 %vm7566_vm7, %v8991_v46 }
 0x1b5   :  { %6844 = vmatprep.subr.bf16.mxu0 %v8991_v46  ;;  %v815_v34 = vld [vmem:[#allocation3 + $0xd8] sm:$0x1] }
 0x1b6   :  { %v6827_v36 = vpop.f32.mrf.mxu1 }
 0x1b8   :  { %6845 = vmatpush3.bf16.msra.mxu0 %v7347_v35  ;;  %v816_v35 = vunpack.c.l.bf16 %v815_v34 }
 0x1b9   :  { %6846 = vmatprep.subr.bf16.mxu0 %v8991_v46 }
 0x1ba   :  { %v820_v38 = vrot.slane %v816_v35, %v7681_v56 }
 0x1bc   :  { %6847 = vmatpush3.bf16.msra.mxu0 %v7348_v39 }
 0x1bd   :  { %6848 = vmatprep.subr.bf16.mxu0 %v8991_v46 }
 0x1c0   :  { %6849 = vmatpush3.bf16.msra.mxu0 %v7349_v40 }
 0x1c1   :  { %6870 = vmatprep.subr.bf16.mxu0 %v7357_v19 }
 0x1c3   :  { %6851 = vmatmul.mubr.msk.bf16.vlgmr.msra.gmra.mxu0 %vm606_vm11, %v581_v0 }
 0x1c4   :  { %6871 = vmatpush3.bf16.msra.mxu0 %v7357_v19 }
 0x1c5   :  { %6872 = vmatprep.subr.bf16.mxu0 %v7358_v20 }
 0x1c8   :  { %6873 = vmatpush3.bf16.msra.mxu0 %v7358_v20 }
 0x273   :  { %v477_v48 = vpop.f32.mrf.mxu0 }
 0x274   :  { %v478_v49 = vadd.f32 %v477_v48, %v427_v47 }
 0x275   :  { %v6834_v50 = vpop.f32.mrf.mxu0 }
 0x276   :  { %v487_v51 = vpack.c.bf16 %v478_v49, %v478_v49 }
 0x277   :  { %v480_v52 = vpop.f32.mrf.mxu0 }
 0x278   :  { %v506_v53 = vsel %vm47_vm1, %v487_v51, 0  ;;  %7320 = vmatprep.subr.msk.bf16.mxu1 %vm47_vm1, %v487_v51  ;;  %v7747_v52 = vld [vmem:[#allocation3 + $0x28] sm:$0xff]  }
 0x279   :  { %v6835_v55 = vpop.f32.mrf.mxu0  ;;  %6837 = vmatpush3.bf16.msra.mxu1 %v506_v53  ;;  %v7749_v53 = vld [vmem:[#allocation3 + $0x30] sm:$0xff]  }
 0x27c   :  { %6839 = vmatmul.mubr.msk.bf16.vlgmr.msra.gmra.mxu1 %vm498_vm12, %v7351_v54  ;;  %v6533_v54 = vunpack.c.l.bf16 %v7747_v52 }
 0x27d   :  { %6856 = vmatprep.mubr.msk.bf16.mxu1 %vm140_vm0, %v7352_v57  ;;  %v6537_v57 = vunpack.c.l.bf16 %v7749_v53 }
 0x283   :  { %v644_v58 = vpop.f32.mrf.mxu0 }
 0x285   :  { %v6852_v59 = vpop.f32.mrf.mxu0 }
 0x287   :  { %v647_v60 = vpop.f32.mrf.mxu0 }
 0x288   :  { %v655_v61 = vpack.c.bf16 %v647_v60, %v644_v58  ;;  %v6534_v60 = vunpack.c.h.bf16 %v7747_v52 }
 0x289   :  { %v6853_v62 = vpop.f32.mrf.mxu0 }
 0x28a   :  { %6854 = vmatprep.subr.bf16.mxu1 %v655_v61 }
 0x28b   :  { %6855 = vmatpush3.bf16.msra.mxu1 %v655_v61 }
 0x28c   :  { %6860 = vmatprep.subr.bf16.mxu1 %v7354_v2 }
 0x28e   :  { %6857 = vmatmul.mubr.msk.bf16.vlgmr.msra.gmra.mxu1 %vm140_vm0, %v7353_v63  ;;  %v6538_v63 = vunpack.c.h.bf16 %v7749_v53 }
 0x28f   :  { %6861 = vmatpush3.bf16.msra.mxu1 %v7354_v2 }
 0x290   :  { %6862 = vmatprep.subr.bf16.mxu1 %v7355_v3 }
 0x293   :  { %6863 = vmatpush3.bf16.msra.mxu1 %v7355_v3 }
 0x294   :  { %6864 = vmatprep.subr.bf16.mxu1 %v7356_v4 }
 0x297   :  { %6865 = vmatpush3.bf16.msra.mxu1 %v7356_v4 }
 0x33c   :  { %v7707_v5 = vpop.f32.mrf.mxu1 }
 0x33e   :  { %v7709_v6 = vpop.f32.mrf.mxu1 }
 0x340   :  { %v7711_v7 = vpop.f32.mrf.mxu1 }
 0x342   :  { %v7713_v8 = vpop.f32.mrf.mxu1 }
 0x34e   :  { %v6858_v9 = vpop.f32.mrf.mxu1 }
 0x350   :  { %v706_v10 = vpop.f32.mrf.mxu1 }
 0x352   :  { %v6859_v12 = vpop.f32.mrf.mxu1 }
 0x353   :  { %v728_v18 = vpack.c.bf16 %v6859_v12, %v6858_v9 }
 0x354   :  { %v709_v13 = vpop.f32.mrf.mxu1 }
 0x355   :  { %v727_v14 = vpack.c.bf16 %v709_v13, %v706_v10 }
 0x357   :  { %6866 = vmatprep.mubr.msk.bf16.mxu1 %vm753_vm13, %v727_v14 }
 0x358   :  { %6867 = vmatmul.mubr.msk.bf16.vlgmr.msra.gmra.mxu1 %vm753_vm13, %v728_v18 }
 0x418   :  { %v6868_v23 = vpop.f32.mrf.mxu1 }
 0x419   :  { %v7722_v31 = vadd.f32 %v6868_v23, %v734_v25 }
 0x41a   :  { %v794_v24 = vpop.f32.mrf.mxu1 }
 0x41b   :  { %v7718_v29 = vadd.f32 %v794_v24, %v734_v25 }
 0x41c   :  { %v6869_v26 = vpop.f32.mrf.mxu1 }
 0x41d   :  { %v7716_v27 = vadd.f32 %v6869_v26, %v734_v25 }
 0x41e   :  { %v797_v28 = vpop.f32.mrf.mxu1 }
 0x41f   :  { %v7720_v30 = vadd.f32 %v797_v28, %v734_v25  ;;  %v814_v33 = vpack.c.bf16 %v7716_v27, %v7722_v31 }
 0x421   :  { %v813_v32 = vpack.c.bf16 %v7720_v30, %v7718_v29 }
 0x423   :  { %6874 = vmatprep.mubr.msk.bf16.mxu0 %vm373_vm8, %v813_v32 }
 0x424   :  { %6875 = vmatmul.mubr.msk.bf16.vlgmr.msra.gmra.mxu0 %vm373_vm8, %v814_v33 }
 0x4e4   :  { %v6876_v36 = vpop.f32.mrf.mxu0 }
 0x4e5   :  { %v882_v41 = vadd.f32 %v6876_v36, %v820_v38 }
 0x4e6   :  { %v873_v39 = vpop.f32.mrf.mxu0 }
 0x4e7   :  { %v874_v43 = vadd.f32 %v873_v39, %v820_v38 }
 0x4e8   :  { %v6877_v40 = vpop.f32.mrf.mxu0 }
 0x4e9   :  { %v885_v42 = vadd.f32 %v6877_v40, %v820_v38 }
 0x4ea   :  { %v876_v0 = vpop.f32.mrf.mxu0 }
 0x4eb   :  { %v7731_v44 = vpack.c.bf16 %v885_v42, %v882_v41  ;;  %v877_v45 = vadd.f32 %v876_v0, %v820_v38 }
 0x4ed   :  { %v7733_v47 = vpack.c.bf16 %v877_v45, %v874_v43  ;;  %906 = vrot.lane.b32.xlu1 %v7731_v44, %s7568_s0 }
 0x4ef   :  { %6882 = vmatprep.mubr.msk.bf16.mxu1 %vm140_vm0, %v7733_v47 }
 0x4f1   :  { %904 = vrot.lane.b32.xlu1 %v7733_v47, %s7568_s0 }
 0x55f   :  { %v907_v48 = vpop.permute.xlu1 %906 }
 0x560   :  { %7321 = vmatprep.subr.msk.bf16.mxu1 %vm140_vm0, %v907_v48  ;;  %v918_v49 = vsel %vm140_vm0, %v907_v48, 0 }
 0x561   :  { %6879 = vmatpush3.bf16.xpose.msra.mxu1 %v918_v49 }
 0x563   :  { %v905_v50 = vpop.permute.xlu1 %904 }
 0x564   :  { %7322 = vmatprep.subr.msk.bf16.mxu1 %vm140_vm0, %v905_v50  ;;  %v915_v51 = vsel %vm140_vm0, %v905_v50, 0 }
 0x569   :  { %6881 = vmatpush3.bf16.xpose.msra.mxu1 %v915_v51 }
 0x570   :  { %6883 = vmatmul.mubr.msk.bf16.vlgmr.msra.gmra.mxu1 %vm140_vm0, %v7731_v44 }
 0x630   :  { %v6884_v55 = vpop.f32.mrf.mxu1 }
 0x631   :  { %v963_v62 = vadd.f32 %v6884_v55, %v6537_v57 }
 0x632   :  { %v954_v58 = vpop.f32.mrf.mxu1 }
 0x633   :  { %v955_v59 = vadd.f32 %v6533_v54, %v954_v58  ;;  %v975_v12 = vsel %vm373_vm8, %v963_v62, -inf }
 0x634   :  { %v6885_v61 = vpop.f32.mrf.mxu1 }
 0x635   :  { %v969_v2 = vsel %vm373_vm8, %v955_v59, -inf  ;;  %v966_v9 = vadd.f32 %v6885_v61, %v6538_v63 }
 0x636   :  { %v957_v3 = vpop.f32.mrf.mxu1  ;;  %970 = vmax.xlane.f32.xlu0 %v969_v2 }
 0x637   :  { %v958_v4 = vadd.f32 %v6534_v60, %v957_v3  ;;  %v978_v13 = vsel %vm373_vm8, %v966_v9, -inf }
 0x639   :  { %v972_v10 = vsel %vm373_vm8, %v958_v4, -inf }
 0x63a   :  { %973 = vmax.xlane.f32.xlu1 %v972_v10  ;;  %976 = vmax.xlane.f32.xlu0 %v975_v12 }
 0x63e   :  { %979 = vmax.xlane.f32.xlu0 %v978_v13 }
 0x64b   :  { %1017 = vrot.lane.b32.xlu1 %v7731_v44, %s7563_s21 }
 0x6bf   :  { %v971_v14 = vpop.xlane.xlu0 %970 }
 0x6c0   :  { %v981_v18 = vsub.f32 %v955_v59, %v971_v14 }
 0x6c2   :  { %v985_v24 = vmul.f32 1.442695, %v981_v18 }
 0x6c3   :  { %v974_v19 = vpop.xlane.xlu1 %973  ;;  %v977_v20 = vpop.xlane.xlu0 %976 }
 0x6c4   :  { %v983_v21 = vsub.f32 %v963_v62, %v977_v20  ;;  %v982_v22 = vsub.f32 %v958_v4, %v974_v19  ;;  %v7359_v19 = vld [vmem:[#allocation3 + $0xe0] sm:$0xff]  }
 0x6c6   :  { %v989_v23 = vmul.f32 1.442695, %v983_v21  ;;  %v987_v32 = vmul.f32 1.442695, %v982_v22 }
 0x6c7   :  { %v1018_v25 = vpop.permute.xlu1 %1017  ;;  %v980_v26 = vpop.xlane.xlu0 %979 }
 0x6c8   :  { %v984_v28 = vsub.f32 %v966_v9, %v980_v26  ;;  %6886 = vmatprep.subr.bf16.mxu0 %v1018_v25  ;;  %7426 = vpow2.f32 %v989_v23 }
 0x6c9   :  { %6887 = vmatpush3.bf16.msra.mxu0 %v1018_v25  ;;  %7428 = vpow2.f32 %v985_v24 }
 0x6ca   :  { %v991_v33 = vmul.f32 1.442695, %v984_v28 }
 0x6cc   :  { %7430 = vpow2.f32 %v991_v33 }
 0x6cd   :  { %7432 = vpow2.f32 %v987_v32 }
 0x6d5   :  { %v7427_v34 = vpop.eup %7426 }
 0x6d6   :  { %v999_v35 = vsel %vm373_vm8, %v7427_v34, 0.0  ;;  %v7429_v36 = vpop.eup %7428 }
 0x6d7   :  { %1000 = vadd.xlane.f32.xlu1 %v999_v35  ;;  %v993_v41 = vsel %vm373_vm8, %v7429_v36, 0.0 }
 0x6d9   :  { %v7431_v38 = vpop.eup %7430 }
 0x6da   :  { %v1002_v39 = vsel %vm373_vm8, %v7431_v38, 0.0  ;;  %v7433_v40 = vpop.eup %7432 }
 0x6db   :  { %1003 = vadd.xlane.f32.xlu0 %v1002_v39  ;;  %994 = vadd.xlane.f32.xlu1 %v993_v41  ;;  %v996_v42 = vsel %vm373_vm8, %v7433_v40, 0.0 }
 0x6df   :  { %997 = vadd.xlane.f32.xlu0 %v996_v42 }
 0x6ec   :  { %1084 = vrot.lane.b32.xlu1 %v7731_v44, %s7569_s10 }
 0x6f0   :  { %1082 = vrot.lane.b32.xlu1 %v7733_v47, %s7569_s10 }
 0x6f4   :  { %1080 = vrot.lane.b32.xlu1 %v7731_v44, %s7570_s11 }
 0x6f5   :  { %1015 = vrot.lane.b32.xlu0 %v7733_v47, %s7563_s21 }
 0x6f9   :  { %1078 = vrot.lane.b32.xlu0 %v7733_v47, %s7570_s11 }
 0x760   :  { %v1001_v0 = vpop.xlane.xlu1 %1000 }
 0x764   :  { %v1004_v43 = vpop.xlane.xlu0 %1003  ;;  %v995_v45 = vpop.xlane.xlu1 %994 }
 0x765   :  { %7434 = vrcp.f32 %v1004_v43 }
 0x766   :  { %7436 = vrcp.f32 %v995_v45 }
 0x767   :  { %7438 = vrcp.f32 %v1001_v0 }
 0x768   :  { %v998_v48 = vpop.xlane.xlu0 %997  ;;  %v1085_v50 = vpop.permute.xlu1 %1084 }
 0x769   :  { %7440 = vrcp.f32 %v998_v48  ;;  %v1096_v10 = vsel %vm140_vm0, %v1085_v50, 0 }
 0x76c   :  { %v1016_v49 = vpop.permute.xlu0 %1015  ;;  %v1083_v13 = vpop.permute.xlu1 %1082 }
 0x76d   :  { %6888 = vmatprep.subr.bf16.mxu0 %v1016_v49  ;;  %v1093_v14 = vsel %vm140_vm0, %v1083_v13, 0 }
 0x76e   :  { %6889 = vmatpush3.bf16.msra.mxu0 %v1016_v49 }
 0x76f   :  { %7323 = vmatprep.subr.msk.bf16.mxu0 %vm140_vm0, %v1085_v50 }
 0x770   :  { %v1079_v12 = vpop.permute.xlu0 %1078  ;;  %v1081_v18 = vpop.permute.xlu1 %1080 }
 0x772   :  { %v7435_v51 = vpop.eup %7434 }
 0x773   :  { %v7437_v55 = vpop.eup %7436  ;;  %v1012_v61 = vmul.f32 %v7435_v51, %v7431_v38 }
 0x774   :  { %v7439_v58 = vpop.eup %7438  ;;  %v1009_v62 = vmul.f32 %v7437_v55, %v7429_v36 }
 0x775   :  { %v1011_v3 = vmul.f32 %v7439_v58, %v7427_v34 }
 0x776   :  { %v7441_v59 = vpop.eup %7440 }
 0x777   :  { %v1010_v2 = vmul.f32 %v7441_v59, %v7433_v40  ;;  %v1014_v9 = vpack.c.bf16 %v1012_v61, %v1011_v3 }
 0x779   :  { %v1013_v4 = vpack.c.bf16 %v1010_v2, %v1009_v62 }
 0x77b   :  { %6890 = vmatprep.mubr.msk.bf16.mxu0 %vm373_vm8, %v1013_v4 }
 0x77c   :  { %6891 = vmatmul.mubr.msk.bf16.vlgmr.msra.gmra.mxu0 %vm373_vm8, %v1014_v9 }
 0x77d   :  { %6895 = vmatpush3.bf16.xpose.msra.mxu0 %v1096_v10  ;;  %6898 = vmatprep.mubr.msk.bf16.mxu0 %vm140_vm0, %v1079_v12 }
 0x77e   :  { %7324 = vmatprep.subr.msk.bf16.mxu0 %vm140_vm0, %v1083_v13 }
 0x785   :  { %6897 = vmatpush3.bf16.xpose.msra.mxu0 %v1093_v14 }
 0x786   :  { %6916 = vmatprep.subr.bf16.mxu0 %v7359_v19 }
 0x78c   :  { %6899 = vmatmul.mubr.msk.bf16.vlgmr.msra.gmra.mxu0 %vm140_vm0, %v1081_v18 }
 0x78d   :  { %6917 = vmatpush3.bf16.msra.mxu0 %v7359_v19 }
 0x83c   :  { %v6892_v20 = vpop.f32.mrf.mxu0 }
 0x83e   :  { %v1061_v21 = vpop.f32.mrf.mxu0 }
 0x840   :  { %v6893_v22 = vpop.f32.mrf.mxu0 }
 0x841   :  { %v1077_v25 = vpack.c.bf16 %v6893_v22, %v6892_v20 }
 0x842   :  { %v1064_v23 = vpop.f32.mrf.mxu0 }
 0x843   :  { %v1076_v24 = vpack.c.bf16 %v1064_v23, %v1061_v21 }
 0x845   :  { %6918 = vmatprep.mubr.msk.bf16.mxu0 %vm140_vm0, %v1076_v24 }
 0x846   :  { %6919 = vmatmul.mubr.msk.bf16.vlgmr.msra.gmra.mxu0 %vm140_vm0, %v1077_v25 }
 0x84c   :  { %v6900_v26 = vpop.f32.mrf.mxu0 }
 0x84d   :  { %v1141_v34 = vadd.f32 %v6900_v26, %v6537_v57  ;;  %v7360_v26 = vld [vmem:[#allocation3 + $0xe8] sm:$0xff]  }
 0x84e   :  { %v1132_v28 = vpop.f32.mrf.mxu0 }
 0x84f   :  { %v1133_v32 = vadd.f32 %v6533_v54, %v1132_v28  ;;  %v1153_v41 = vsel %vm373_vm8, %v1141_v34, -inf }
 0x850   :  { %v6901_v33 = vpop.f32.mrf.mxu0 }
 0x851   :  { %v1147_v35 = vsel %vm373_vm8, %v1133_v32, -inf  ;;  %v1144_v39 = vadd.f32 %v6901_v33, %v6538_v63 }
 0x852   :  { %v1135_v36 = vpop.f32.mrf.mxu0  ;;  %1148 = vmax.xlane.f32.xlu0 %v1147_v35 }
 0x853   :  { %v1136_v38 = vadd.f32 %v6534_v60, %v1135_v36  ;;  %v1156_v54 = vsel %vm373_vm8, %v1144_v39, -inf }
 0x855   :  { %v1150_v40 = vsel %vm373_vm8, %v1136_v38, -inf }
 0x856   :  { %1151 = vmax.xlane.f32.xlu1 %v1150_v40  ;;  %1154 = vmax.xlane.f32.xlu0 %v1153_v41 }
 0x85a   :  { %1157 = vmax.xlane.f32.xlu0 %v1156_v54 }
 0x8db   :  { %v1149_v57 = vpop.xlane.xlu0 %1148 }
 0x8dc   :  { %v1159_v42 = vsub.f32 %v1133_v32, %v1149_v57 }
 0x8de   :  { %v1163_v60 = vmul.f32 1.442695, %v1159_v42 }
 0x8df   :  { %v1152_v0 = vpop.xlane.xlu1 %1151  ;;  %v1155_v43 = vpop.xlane.xlu0 %1154 }
 0x8e0   :  { %v1161_v45 = vsub.f32 %v1141_v34, %v1155_v43  ;;  %v1160_v48 = vsub.f32 %v1136_v38, %v1152_v0 }
 0x8e2   :  { %v1167_v52 = vmul.f32 1.442695, %v1161_v45  ;;  %v1165_v63 = vmul.f32 1.442695, %v1160_v48 }
 0x8e3   :  { %v1158_v49 = vpop.xlane.xlu0 %1157 }
 0x8e4   :  { %v1162_v53 = vsub.f32 %v1144_v39, %v1158_v49  ;;  %7442 = vpow2.f32 %v1167_v52  ;;  %v1378_v39 = vld [vmem:[#allocation3 + $0xf0] sm:$0x1] }
 0x8e5   :  { %7444 = vpow2.f32 %v1163_v60  ;;  %v1379_v40 = vunpack.c.l.bf16 %v1378_v39  ;;  %v7365_v39 = vld [vmem:[#allocation3 + $0x108] sm:$0xff]  }
 0x8e6   :  { %v1169_v50 = vmul.f32 1.442695, %v1162_v53 }
 0x8e7   :  { %v1383_v42 = vrot.slane %v1379_v40, %v7681_v56 }
 0x8e8   :  { %7446 = vpow2.f32 %v1169_v50 }
 0x8e9   :  { %7448 = vpow2.f32 %v1165_v63 }
 0x8f1   :  { %v7443_v51 = vpop.eup %7442 }
 0x8f2   :  { %v1177_v55 = vsel %vm373_vm8, %v7443_v51, 0.0  ;;  %v7445_v58 = vpop.eup %7444 }
 0x8f3   :  { %1178 = vadd.xlane.f32.xlu1 %v1177_v55  ;;  %v1171_v2 = vsel %vm373_vm8, %v7445_v58, 0.0 }
 0x8f5   :  { %v7447_v59 = vpop.eup %7446 }
 0x8f6   :  { %v1180_v61 = vsel %vm373_vm8, %v7447_v59, 0.0  ;;  %v7449_v62 = vpop.eup %7448 }
 0x8f7   :  { %1181 = vadd.xlane.f32.xlu0 %v1180_v61  ;;  %1172 = vadd.xlane.f32.xlu1 %v1171_v2  ;;  %v1174_v3 = vsel %vm373_vm8, %v7449_v62, 0.0 }
 0x8fb   :  { %1175 = vadd.xlane.f32.xlu0 %v1174_v3 }
 0x906   :  { %v6920_v38 = vpop.f32.mrf.mxu0 }
 0x908   :  { %1195 = vrot.lane.b32.xlu1 %v7731_v44, %s7571_s12  ;;  %v1363_v41 = vpop.f32.mrf.mxu0 }
 0x90a   :  { %v6921_v0 = vpop.f32.mrf.mxu0 }
 0x90c   :  { %v1366_v53 = vpop.f32.mrf.mxu0 }
 0x911   :  { %1193 = vrot.lane.b32.xlu0 %v7733_v47, %s7571_s12 }
 0x97c   :  { %v1179_v4 = vpop.xlane.xlu1 %1178 }
 0x980   :  { %v1182_v9 = vpop.xlane.xlu0 %1181  ;;  %v1173_v10 = vpop.xlane.xlu1 %1172 }
 0x981   :  { %7450 = vrcp.f32 %v1182_v9 }
 0x982   :  { %7452 = vrcp.f32 %v1173_v10 }
 0x983   :  { %7454 = vrcp.f32 %v1179_v4 }
 0x984   :  { %v1176_v12 = vpop.xlane.xlu0 %1175  ;;  %v1196_v13 = vpop.permute.xlu1 %1195 }
 0x985   :  { %7456 = vrcp.f32 %v1176_v12  ;;  %6902 = vmatprep.subr.bf16.mxu1 %v1196_v13 }
 0x986   :  { %6903 = vmatpush3.bf16.msra.mxu1 %v1196_v13 }
 0x988   :  { %v1194_v14 = vpop.permute.xlu0 %1193 }
 0x989   :  { %6904 = vmatprep.subr.bf16.mxu1 %v1194_v14 }
 0x98a   :  { %6905 = vmatpush3.bf16.msra.mxu1 %v1194_v14 }
 0x98b   :  { %6910 = vmatprep.subr.bf16.mxu1 %v7360_v26 }
 0x98e   :  { %v7451_v18 = vpop.eup %7450 }
 0x98f   :  { %v7453_v19 = vpop.eup %7452  ;;  %v1190_v21 = vmul.f32 %v7451_v18, %v7447_v59 }
 0x990   :  { %v7455_v20 = vpop.eup %7454  ;;  %v1187_v47 = vmul.f32 %v7453_v19, %v7445_v58 }
 0x991   :  { %v1189_v23 = vmul.f32 %v7455_v20, %v7443_v51 }
 0x992   :  { %v7457_v44 = vpop.eup %7456 }
 0x993   :  { %v1188_v22 = vmul.f32 %v7457_v44, %v7449_v62  ;;  %v1192_v25 = vpack.c.bf16 %v1190_v21, %v1189_v23 }
 0x995   :  { %v1191_v24 = vpack.c.bf16 %v1188_v22, %v1187_v47 }
 0x997   :  { %6906 = vmatprep.mubr.msk.bf16.mxu1 %vm373_vm8, %v1191_v24 }
 0x998   :  { %6907 = vmatmul.mubr.msk.bf16.vlgmr.msra.gmra.mxu1 %vm373_vm8, %v1192_v25 }
 0x999   :  { %6911 = vmatpush3.bf16.msra.mxu1 %v7360_v26 }
 0xa58   :  { %v6908_v28 = vpop.f32.mrf.mxu1 }
 0xa5a   :  { %v1239_v32 = vpop.f32.mrf.mxu1 }
 0xa5c   :  { %v6909_v33 = vpop.f32.mrf.mxu1 }
 0xa5d   :  { %v1255_v36 = vpack.c.bf16 %v6909_v33, %v6908_v28  ;;  %v2136_v33 = vld [vmem:[%s8986_s1 + $0x8] sm:$0xff] }
 0xa5e   :  { %v1242_v34 = vpop.f32.mrf.mxu1 }
 0xa5f   :  { %v1254_v35 = vpack.c.bf16 %v1242_v34, %v1239_v32  ;;  %v2135_v32 = vld [vmem:[%s8986_s1] sm:$0xff] }
 0xa60   :  { %v7361_v34 = vld [vmem:[#allocation3 + $0x120] sm:$0xff]  }
 0xa61   :  { %6912 = vmatprep.mubr.msk.bf16.mxu1 %vm140_vm0, %v1254_v35  ;;  %6922 = vmatprep.subr.bf16.mxu1 %v7361_v34  ;;  %v7362_v35 = vld [vmem:[#allocation3 + $0x118] sm:$0xff]  }
 0xa62   :  { %6913 = vmatmul.mubr.msk.bf16.vlgmr.msra.gmra.mxu1 %vm140_vm0, %v1255_v36  ;;  %v7363_v36 = vld [vmem:[#allocation3 + $0x110] sm:$0xff]  }
 0xa63   :  { %6923 = vmatpush3.bf16.msra.mxu1 %v7361_v34  ;;  %6930 = vmatprep.subr.bf16.mxu0 %v7363_v36 }
 0xa64   :  { %6924 = vmatprep.subr.bf16.mxu1 %v7362_v35  ;;  %6931 = vmatpush3.bf16.msra.mxu0 %v7363_v36 }
 0xa65   :  { %6932 = vmatprep.subr.bf16.mxu0 %v7365_v39 }
 0xa67   :  { %6925 = vmatpush3.bf16.msra.mxu1 %v7362_v35 }
 0xa68   :  { %6933 = vmatpush3.bf16.msra.mxu0 %v7365_v39 }
 0xb22   :  { %v6914_v54 = vpop.f32.mrf.mxu1 }
 0xb23   :  { %v1372_v57 = vadd.f32 %v6920_v38, %v6914_v54  ;;  %v7834_v38 = vld [vmem:[#allocation3 + $0x130] sm:$0xff]  }
 0xb24   :  { %v1302_v43 = vpop.f32.mrf.mxu1  ;;  %6938 = vmatprep.subr.bf16.mxu1 %v7834_v38 }
 0xb25   :  { %v1364_v45 = vadd.f32 %v1363_v41, %v1302_v43  ;;  %v1386_v52 = vadd.f32 %v1383_v42, %v1372_v57 }
 0xb26   :  { %v6915_v48 = vpop.f32.mrf.mxu1 }
 0xb27   :  { %v1384_v60 = vadd.f32 %v1383_v42, %v1364_v45  ;;  %v1375_v49 = vadd.f32 %v6921_v0, %v6915_v48  ;;  %v1390_v61 = vadd.f32 %v1386_v52, %v7722_v31 }
 0xb28   :  { %v1305_v63 = vpop.f32.mrf.mxu1 }
 0xb29   :  { %v1367_v50 = vadd.f32 %v1366_v53, %v1305_v63  ;;  %v1388_v51 = vadd.f32 %v1384_v60, %v7718_v29  ;;  %v1387_v55 = vadd.f32 %v1383_v42, %v1375_v49  ;;  %v1400_v2 = vsel %vm373_vm8, %v1390_v61, 0.0  ;;  %v1392_v49 = vld [vmem:[#allocation3 + $0xf8] sm:$0x1] }
 0xb2a   :  { %v1447_v63 = vunpack.c.l.bf16 %v1392_v49  ;;  %v7369_v49 = vld [vmem:[#allocation3 + $0x170] sm:$0xff]  }
 0xb2b   :  { %v1385_v58 = vadd.f32 %v1383_v42, %v1367_v50  ;;  %v1394_v59 = vsel %vm373_vm8, %v1388_v51, 0.0  ;;  %v1391_v4 = vadd.f32 %v1387_v55, %v7716_v27  ;;  %v1393_v50 = vld [vmem:[#allocation3 + $0x100] sm:$0x1] }
 0xb2c   :  { %1395 = vadd.xlane.f32.xlu1 %v1394_v59  ;;  %v1456_v55 = vunpack.c.l.bf16 %v1393_v50  ;;  %v7372_v50 = vld [vmem:[#allocation3 + $0x148] sm:$0xff]  }
 0xb2d   :  { %v1389_v62 = vadd.f32 %v1385_v58, %v7720_v30  ;;  %v1403_v9 = vsel %vm373_vm8, %v1391_v4, 0.0 }
 0xb2f   :  { %v1397_v3 = vsel %vm373_vm8, %v1389_v62, 0.0 }
 0xb30   :  { %1401 = vadd.xlane.f32.xlu1 %v1400_v2  ;;  %1398 = vadd.xlane.f32.xlu0 %v1397_v3 }
 0xb34   :  { %1404 = vadd.xlane.f32.xlu0 %v1403_v9 }
 0xbb5   :  { %v1396_v29 = vpop.xlane.xlu1 %1395 }
 0xbb6   :  { %v1407_v10 = vmul.f32 0.03125, %v1396_v29 }
 0xbb8   :  { %v1411_v12 = vsub.f32 %v1388_v51, %v1407_v10  ;;  %v1451_v51 = vrot.slane %v1447_v63, %v7681_v56  ;;  %v7371_v63 = vld [vmem:[#allocation3 + $0x168] sm:$0xff]  }
 0xbb9   :  { %v1402_v13 = vpop.xlane.xlu1 %1401  ;;  %v1399_v14 = vpop.xlane.xlu0 %1398 }
 0xbba   :  { %v1409_v31 = vmul.f32 0.03125, %v1402_v13  ;;  %v1408_v18 = vmul.f32 0.03125, %v1399_v14  ;;  %v1415_v19 = vmul.f32 %v1411_v12, %v1411_v12 }
 0xbbc   :  { %v1413_v30 = vsub.f32 %v1390_v61, %v1409_v31  ;;  %v1412_v20 = vsub.f32 %v1389_v62, %v1408_v18  ;;  %v1419_v44 = vsel %vm373_vm8, %v1415_v19, 0.0  ;;  %v1460_v61 = vrot.slane %v1456_v55, %v7681_v56  ;;  %v7374_v55 = vld [vmem:[#allocation3 + $0x140] sm:$0xff]  }
 0xbbd   :  { %1420 = vadd.xlane.f32.xlu1 %v1419_v44  ;;  %v1405_v21 = vpop.xlane.xlu0 %1404 }
 0xbbe   :  { %v1410_v27 = vmul.f32 0.03125, %v1405_v21  ;;  %v1417_v47 = vmul.f32 %v1413_v30, %v1413_v30  ;;  %v1416_v22 = vmul.f32 %v1412_v20, %v1412_v20 }
 0xbc0   :  { %v1414_v23 = vsub.f32 %v1391_v4, %v1410_v27  ;;  %v1425_v24 = vsel %vm373_vm8, %v1417_v47, 0.0  ;;  %v1422_v25 = vsel %vm373_vm8, %v1416_v22, 0.0 }
 0xbc1   :  { %1426 = vadd.xlane.f32.xlu1 %v1425_v24  ;;  %1423 = vadd.xlane.f32.xlu0 %v1422_v25 }
 0xbc2   :  { %v1418_v26 = vmul.f32 %v1414_v23, %v1414_v23 }
 0xbc4   :  { %v1428_v28 = vsel %vm373_vm8, %v1418_v26, 0.0 }
 0xbc5   :  { %1429 = vadd.xlane.f32.xlu0 %v1428_v28 }
 0xbd2   :  { %2138 = vperm.xlu1 %7340, %v2135_v32  }
 0xbdb   :  { %2141 = vperm.xlu0 %7339, %v2136_v33   ;;  %v7366_v33 = vld [vmem:[#allocation3 + $0x128] sm:$0xff]  }
 0xc46   :  { %v1421_v40 = vpop.xlane.xlu1 %1420 }
 0xc47   :  { %v1431_v41 = vmul.f32 0.03125, %v1421_v40 }
 0xc49   :  { %v1435_v54 = vadd.f32 1e-05, %v1431_v41 }
 0xc4a   :  { %v1427_v57 = vpop.xlane.xlu1 %1426  ;;  %v1424_v42 = vpop.xlane.xlu0 %1423 }
 0xc4b   :  { %7458 = vrsqrt.f32 %v1435_v54  ;;  %v1433_v0 = vmul.f32 0.03125, %v1427_v57  ;;  %v1432_v43 = vmul.f32 0.03125, %v1424_v42 }
 0xc4d   :  { %v1437_v45 = vadd.f32 1e-05, %v1433_v0  ;;  %v1436_v48 = vadd.f32 1e-05, %v1432_v43 }
 0xc4e   :  { %v1430_v52 = vpop.xlane.xlu0 %1429 }
 0xc4f   :  { %7460 = vrsqrt.f32 %v1437_v45  ;;  %v1434_v60 = vmul.f32 0.03125, %v1430_v52  ;;  %v7367_v52 = vld [vmem:[#allocation3 + $0x178] sm:$0xff]  }
 0xc50   :  { %7462 = vrsqrt.f32 %v1436_v48  ;;  %6946 = vmatprep.subr.bf16.mxu0 %v7367_v52 }
 0xc51   :  { %v1438_v53 = vadd.f32 1e-05, %v1434_v60  ;;  %v7368_v60 = vld [vmem:[#allocation3 + $0x158] sm:$0xff]  }
 0xc53   :  { %7464 = vrsqrt.f32 %v1438_v53  ;;  %v7370_v53 = vld [vmem:[#allocation3 + $0x150] sm:$0xff]  }
 0xc58   :  { %v7459_v58 = vpop.eup %7458 }
 0xc59   :  { %v1443_v59 = vmul.f32 %v7459_v58, %v1411_v12  ;;  %v7375_v58 = vld [vmem:[#allocation3 + $0x198] sm:$0xff]  }
 0xc5b   :  { %v1452_v62 = vmul.f32 %v1451_v51, %v1443_v59 }
 0xc5c   :  { %v7461_v2 = vpop.eup %7460 }
 0xc5d   :  { %v7463_v3 = vpop.eup %7462  ;;  %v1445_v4 = vmul.f32 %v7461_v2, %v1413_v30  ;;  %v7839_v10 = vadd.f32 %v1460_v61, %v1452_v62  ;;  %v1726_v62 = vld [vmem:[#allocation3 + $0x138] sm:$0x1] }
 0xc5e   :  { %v1444_v9 = vmul.f32 %v7463_v3, %v1412_v20 }
 0xc5f   :  { %v1454_v29 = vmul.f32 %v1451_v51, %v1445_v4  ;;  %v1636_v12 = vrot.slane %v7839_v10, 1  ;;  %v1475_v32 = vrot.slane %v7839_v10, 7  ;;  %v1727_v4 = vunpack.c.l.bf16 %v1726_v62 }
 0xc60   :  { %v7465_v13 = vpop.eup %7464  ;;  %v1453_v14 = vmul.f32 %v1451_v51, %v1444_v9 }
 0xc61   :  { %v7841_v31 = vadd.f32 %v1460_v61, %v1454_v29  ;;  %v1446_v18 = vmul.f32 %v7465_v13, %v1414_v23 }
 0xc62   :  { %v7843_v19 = vadd.f32 %v1460_v61, %v1453_v14 }
 0xc63   :  { %v1455_v44 = vmul.f32 %v1451_v51, %v1446_v18  ;;  %v1639_v21 = vrot.slane %v7841_v31, 1  ;;  %v1478_v47 = vrot.slane %v7841_v31, 7  ;;  %v7373_v51 = vld [vmem:[#allocation3 + $0x160] sm:$0xff]  }
 0xc64   :  { %v1496_v27 = vpack.c.bf16 %v7843_v19, %v7839_v10  ;;  %v1637_v30 = vrot.slane %v7843_v19, 1  ;;  %v1476_v20 = vrot.slane %v7843_v19, 7 }
 0xc65   :  { %v7852_v22 = vadd.f32 %v1460_v61, %v1455_v44 }
 0xc66   :  { %6926 = vmatprep.mubr.msk.bf16.mxu1 %vm373_vm8, %v1496_v27  ;;  %v1638_v23 = vsel %vm259_vm2, %v1636_v12, %v1637_v30  ;;  %v1640_v24 = vsel %vm259_vm2, %v1637_v30, %v1639_v21  ;;  %v1479_v35 = vsel %vm47_vm1, %v1476_v20, %v1478_v47  ;;  %v1477_v41 = vsel %vm47_vm1, %v1475_v32, %v1476_v20 }
 0xc67   :  { %v1497_v25 = vpack.c.bf16 %v7852_v22, %v7841_v31  ;;  %v1650_v26 = vsel %vm7633_vm5, %v1640_v24, 0.0  ;;  %v1470_v28 = vrot.slane %v7852_v22, 7  ;;  %v1641_v36 = vrot.slane %v7852_v22, 1 }
 0xc68   :  { %v1653_v34 = vpack.c.bf16 %v1650_v26, %v1638_v23  ;;  %v1488_v0 = vsel %vm7629_vm4, %v1479_v35, 0.0 }
 0xc69   :  { %6927 = vmatmul.mubr.msk.bf16.vlgmr.msra.gmra.mxu1 %vm373_vm8, %v1497_v25  ;;  %v1485_v39 = vsel %vm47_vm1, %v1470_v28, %v1475_v32  ;;  %v1480_v40 = vsel %vm47_vm1, %v1478_v47, %v1470_v28  ;;  %v1648_v57 = vsel %vm259_vm2, %v1641_v36, %v1636_v12  ;;  %v1642_v45 = vsel %vm259_vm2, %v1639_v21, %v1641_v36 }
 0xc6a   :  { %6939 = vmatpush3.bf16.msra.mxu1 %v7834_v38  ;;  %6942 = vmatprep.mubr.msk.bf16.mxu1 %vm373_vm8, %v1653_v34  ;;  %v1486_v54 = vsel %vm7616_vm3, %v1485_v39, 0.0  ;;  %v1491_v43 = vpack.c.bf16 %v1480_v40, %v1488_v0  ;;  %v1652_v38 = vsel %vm7637_vm6, %v1648_v57, 0.0  ;;  %v1731_v12 = vrot.slane %v1727_v4, %v7681_v56 }
 0xc6b   :  { %v1490_v42 = vpack.c.bf16 %v1477_v41, %v1486_v54  ;;  %6940 = vmatprep.subr.bf16.mxu1 %v7366_v33  ;;  %v1654_v48 = vpack.c.bf16 %v1652_v38, %v1642_v45 }
 0xc6d   :  { %6934 = vmatprep.mubr.msk.bf16.mxu0 %vm373_vm8, %v1490_v42 }
 0xc6e   :  { %6935 = vmatmul.mubr.msk.bf16.vlgmr.msra.gmra.mxu0 %vm373_vm8, %v1491_v43  ;;  %6941 = vmatpush3.bf16.msra.mxu1 %v7366_v33 }
 0xc6f   :  { %6947 = vmatpush3.bf16.msra.mxu0 %v7367_v52  ;;  %6958 = vmatprep.subr.bf16.mxu1 %v7368_v60 }
 0xc70   :  { %6948 = vmatprep.subr.bf16.mxu0 %v7369_v49 }
 0xc71   :  { %6943 = vmatmul.mubr.msk.bf16.vlgmr.msra.gmra.mxu1 %vm373_vm8, %v1654_v48 }
 0xc72   :  { %6959 = vmatpush3.bf16.msra.mxu1 %v7368_v60 }
 0xc73   :  { %6949 = vmatpush3.bf16.msra.mxu0 %v7369_v49  ;;  %6960 = vmatprep.subr.bf16.mxu1 %v7370_v53  ;;  %v7377_v49 = vld [vmem:[#allocation3 + $0xa0] ss:$0 sps:$4 sm:$0x11]  }
 0xc74   :  { %6950 = vmatprep.subr.bf16.mxu0 %v7371_v63 }
 0xc76   :  { %6961 = vmatpush3.bf16.msra.mxu1 %v7370_v53 }
 0xc77   :  { %6951 = vmatpush3.bf16.msra.mxu0 %v7371_v63  ;;  %6962 = vmatprep.subr.bf16.mxu1 %v7372_v50  ;;  %v7376_v63 = vld [vmem:[#allocation3 + $0x190] sm:$0xff]  }
 0xc78   :  { %6952 = vmatprep.subr.bf16.mxu0 %v7373_v51 }
 0xc7a   :  { %6963 = vmatpush3.bf16.msra.mxu1 %v7372_v50 }
 0xc7b   :  { %6953 = vmatpush3.bf16.msra.mxu0 %v7373_v51  ;;  %6964 = vmatprep.subr.bf16.mxu1 %v7374_v55 }
 0xc7c   :  { %6970 = vmatprep.subr.bf16.mxu0 %v7375_v58 }
 0xc7e   :  { %6965 = vmatpush3.bf16.msra.mxu1 %v7374_v55 }
 0xc7f   :  { %6982 = vmatprep.subr.bf16.mxu1 %v8991_v46 }
 0xd29   :  { %v6928_v59 = vpop.f32.mrf.mxu1 }
 0xd2b   :  { %v1550_v61 = vpop.f32.mrf.mxu1 }
 0xd2d   :  { %v6929_v2 = vpop.f32.mrf.mxu1 }
 0xd2e   :  { %v6936_v3 = vpop.f32.mrf.mxu0 }
 0xd2f   :  { %v1626_v9 = vadd.f32 %v6936_v3, %v6928_v59  ;;  %v1553_v29 = vpop.f32.mrf.mxu1 }
 0xd30   :  { %v1617_v13 = vpop.f32.mrf.mxu0 }
 0xd31   :  { %v1618_v14 = vadd.f32 %v1617_v13, %v1550_v61  ;;  %v6944_v18 = vpop.f32.mrf.mxu1  ;;  %v7378_v13 = vld [vmem:[#allocation3 + $0x188] sm:$0xff]  }
 0xd32   :  { %v1724_v44 = vadd.f32 %v6944_v18, %v1626_v9  ;;  %v6937_v21 = vpop.f32.mrf.mxu0  ;;  %v7379_v18 = vld [vmem:[#allocation3 + $0x98] sm:$0xff]  }
 0xd33   :  { %v1629_v27 = vadd.f32 %v6937_v21, %v6929_v2  ;;  %v1707_v30 = vpop.f32.mrf.mxu1 }
 0xd34   :  { %v1722_v20 = vadd.f32 %v1707_v30, %v1618_v14  ;;  %v1620_v47 = vpop.f32.mrf.mxu0  ;;  %v1734_v25 = vadd.f32 %v1731_v12, %v1724_v44  ;;  %v2139_v44 = vpop.permute.xlu1 %2138 }
 0xd35   :  { %v1621_v23 = vadd.f32 %v1620_v47, %v1553_v29  ;;  %v6945_v24 = vpop.f32.mrf.mxu1  ;;  %v2183_v29 = vsel %vm47_vm1, %v7377_v49, 0  ;;  %vm2143_vm14 = vcmp.eq.s32.totalorder %v2139_v44, %v7691_v37  ;;  %v7382_v47 = vld [vmem:[#allocation3 + $0x88] sm:$0xff]  }
 0xd36   :  { %v1732_v26 = vadd.f32 %v1731_v12, %v1722_v20  ;;  %v1725_v28 = vadd.f32 %v6945_v24, %v1629_v27  ;;  %v1738_v36 = vmax.f32 %v1734_v25, 0.0  ;;  %v7381_v27 = vld [vmem:[#allocation3 + $0x90] sm:$0xff]  }
 0xd37   :  { %v1710_v32 = vpop.f32.mrf.mxu1 }
 0xd38   :  { %v1736_v33 = vmax.f32 %v1732_v26, 0.0  ;;  %v1735_v34 = vadd.f32 %v1731_v12, %v1725_v28  ;;  %v1723_v35 = vadd.f32 %v1710_v32, %v1621_v23  ;;  %v1757_v42 = vrot.slane %v1738_v36, 7  ;;  %v7383_v26 = vld [vmem:[#allocation3 + $0x1d8] sm:$0xff]   ;;  %v7384_v28 = vld [vmem:[#allocation3 + $0x1d0] sm:$0xff]  }
 0xd39   :  { %v1950_v0 = vrot.slane %v1738_v36, 1  ;;  %v6387_v23 = vsel %vm2143_vm14, 1.0, %v8991_v46 }
 0xd3a   :  { %v1739_v39 = vmax.f32 %v1735_v34, 0.0  ;;  %v1733_v40 = vadd.f32 %v1731_v12, %v1723_v35  ;;  %v1754_v41 = vrot.slane %v1736_v33, 7  ;;  %v1947_v43 = vrot.slane %v1736_v33, 1  ;;  %v2142_v12 = vpop.permute.xlu0 %2141 }
 0xd3b   :  { %vm2144_vm15 = vcmp.eq.s32.totalorder %v2142_v12, %v7691_v37 }
 0xd3c   :  { %v1749_v54 = vrot.slane %v1739_v39, 7  ;;  %v1737_v57 = vmax.f32 %v1733_v40, 0.0  ;;  %v1780_v53 = vpack.c.bf16 %v1739_v39, %v1738_v36  ;;  %v1952_v14 = vrot.slane %v1739_v39, 1  ;;  %v2049_v39 = vld [vmem:[#allocation3 + $0x1a0] sm:$0x1] }
 0xd3d   :  { %v6388_v24 = vsel %vm2144_vm15, 1.0, %v8991_v46 }
 0xd3e   :  { %v1764_v45 = vsel %vm47_vm1, %v1749_v54, %v1754_v41  ;;  %v1755_v38 = vrot.slane %v1737_v57, 7  ;;  %v1948_v48 = vrot.slane %v1737_v57, 1  ;;  %v1779_v52 = vpack.c.bf16 %v1737_v57, %v1736_v33 }
 0xd3f   :  { %v1765_v60 = vsel %vm7616_vm3, %v1764_v45, 0.0  ;;  %v1759_v61 = vsel %vm47_vm1, %v1757_v42, %v1749_v54  ;;  %v1959_v21 = vsel %vm259_vm2, %v1952_v14, %v1947_v43  ;;  %v1953_v30 = vsel %vm259_vm2, %v1950_v0, %v1952_v14 }
 0xd40   :  { %v1758_v50 = vsel %vm47_vm1, %v1755_v38, %v1757_v42  ;;  %6954 = vmatprep.mubr.msk.bf16.mxu0 %vm606_vm11, %v1779_v52  ;;  %v1756_v51 = vsel %vm47_vm1, %v1754_v41, %v1755_v38  ;;  %v1949_v55 = vsel %vm259_vm2, %v1947_v43, %v1948_v48  ;;  %v1951_v59 = vsel %vm259_vm2, %v1948_v48, %v1950_v0 }
 0xd41   :  { %6955 = vmatmul.mubr.msk.bf16.vlgmr.msra.gmra.mxu0 %vm606_vm11, %v1780_v53  ;;  %v1769_v62 = vpack.c.bf16 %v1756_v51, %v1765_v60  ;;  %v1767_v2 = vsel %vm7629_vm4, %v1758_v50, 0.0  ;;  %v1961_v3 = vsel %vm7633_vm5, %v1951_v59, 0.0  ;;  %v1963_v20 = vsel %vm7637_vm6, %v1959_v21, 0.0 }
 0xd42   :  { %6971 = vmatpush3.bf16.msra.mxu0 %v7375_v58  ;;  %v1770_v4 = vpack.c.bf16 %v1759_v61, %v1767_v2  ;;  %v1964_v9 = vpack.c.bf16 %v1961_v3, %v1949_v55  ;;  %v7380_v58 = vld [vmem:[#allocation3 + $0x180] sm:$0xff]   ;;  %v1965_v25 = vpack.c.bf16 %v1963_v20, %v1953_v30  ;;  %v2156_v37 = vpack.c.bf16 %v6388_v24, %v6387_v23 }
 0xd43   :  { %6966 = vmatprep.mubr.msk.bf16.mxu1 %vm606_vm11, %v1769_v62  ;;  %6972 = vmatprep.subr.bf16.mxu0 %v7376_v63  ;;  %v2050_v41 = vunpack.c.l.bf16 %v2049_v39 }
 0xd44   :  { %6967 = vmatmul.mubr.msk.bf16.vlgmr.msra.gmra.mxu1 %vm606_vm11, %v1770_v4  ;;  %6978 = vmatprep.mubr.msk.bf16.mxu0 %vm606_vm11, %v1964_v9 }
 0xd45   :  { %6983 = vmatpush3.bf16.msra.mxu1 %v2183_v29  ;;  %6990 = vmatprep.mubr.msk.bf16.mxu1 %vm7566_vm7, %v8991_v46  ;;  %v2054_v38 = vrot.slane %v2050_v41, %v7681_v56 }
 0xd46   :  { %6973 = vmatpush3.bf16.msra.mxu0 %v7376_v63  ;;  %6984 = vmatprep.subr.bf16.mxu1 %v8991_v46 }
 0xd47   :  { %6974 = vmatprep.subr.bf16.mxu0 %v7378_v13 }
 0xd49   :  { %6985 = vmatpush3.bf16.msra.mxu1 %v7379_v18 }
 0xd4a   :  { %6975 = vmatpush3.bf16.msra.mxu0 %v7378_v13  ;;  %6986 = vmatprep.subr.bf16.mxu1 %v8991_v46 }
 0xd4b   :  { %6976 = vmatprep.subr.bf16.mxu0 %v7380_v58 }
 0xd4d   :  { %6987 = vmatpush3.bf16.msra.mxu1 %v7381_v27  ;;  %v7385_v27 = vld [vmem:[#allocation3 + $0x1c0] sm:$0xff]  }
 0xd4e   :  { %6977 = vmatpush3.bf16.msra.mxu0 %v7380_v58  ;;  %6988 = vmatprep.subr.bf16.mxu1 %v8991_v46 }
 0xd4f   :  { %6994 = vmatprep.subr.bf16.mxu0 %v7385_v27 }
 0xd51   :  { %6979 = vmatmul.mubr.msk.bf16.vlgmr.msra.gmra.mxu0 %vm606_vm11, %v1965_v25  ;;  %6989 = vmatpush3.bf16.msra.mxu1 %v7382_v47 }
 0xd52   :  { %7002 = vmatprep.subr.bf16.mxu1 %v8991_v46  ;;  %6995 = vmatpush3.bf16.msra.mxu0 %v7385_v27 }
 0xd54   :  { %6991 = vmatmul.mubr.msk.bf16.vlgmr.msra.gmra.mxu1 %vm2178_vm9, %v2156_v37 }
 0xd55   :  { %7006 = vmatprep.mubr.msk.bf16.mxu1 %vm7566_vm7, %v8991_v46  ;;  %7003 = vmatpush3.bf16.msra.mxu1 %v7383_v26 }
 0xd56   :  { %7004 = vmatprep.subr.bf16.mxu1 %v8991_v46 }
 0xd59   :  { %7005 = vmatpush3.bf16.msra.mxu1 %v7384_v28 }
 0xe01   :  { %v6956_v32 = vpop.f32.mrf.mxu0 }
 0xe03   :  { %v1845_v34 = vpop.f32.mrf.mxu0 }
 0xe04   :  { %v6968_v33 = vpop.f32.mrf.mxu1 }
 0xe05   :  { %v6957_v36 = vpop.f32.mrf.mxu0  ;;  %v1933_v57 = vadd.f32 %v6968_v33, %v6956_v32 }
 0xe06   :  { %v1924_v35 = vpop.f32.mrf.mxu1 }
 0xe07   :  { %v1848_v54 = vpop.f32.mrf.mxu0  ;;  %v1925_v0 = vadd.f32 %v1924_v35, %v1845_v34 }
 0xe08   :  { %v6969_v40 = vpop.f32.mrf.mxu1 }
 0xe09   :  { %v1936_v52 = vadd.f32 %v6969_v40, %v6957_v36 }
 0xe0a   :  { %v1927_v43 = vpop.f32.mrf.mxu1 }
 0xe0b   :  { %v1928_v63 = vadd.f32 %v1927_v43, %v1848_v54 }
 0xe11   :  { %v6980_v42 = vpop.f32.mrf.mxu0 }
 0xe12   :  { %v2047_v45 = vadd.f32 %v6980_v42, %v1933_v57  ;;  %v2310_v57 = vld [vmem:[#allocation3 + $0x1e0] sm:$0x1] }
 0xe13   :  { %v2030_v48 = vpop.f32.mrf.mxu0  ;;  %v2311_v42 = vunpack.c.l.bf16 %v2310_v57 }
 0xe14   :  { %v2045_v60 = vadd.f32 %v2030_v48, %v1925_v0  ;;  %v2219_v49 = vpop.f32.mrf.mxu1  ;;  %v2057_v50 = vadd.f32 %v2054_v38, %v2047_v45 }
 0xe15   :  { %v6981_v53 = vpop.f32.mrf.mxu0  ;;  %v2315_v43 = vrot.slane %v2311_v42, %v7681_v56 }
 0xe16   :  { %v2055_v51 = vadd.f32 %v2054_v38, %v2045_v60  ;;  %v2048_v55 = vadd.f32 %v6981_v53, %v1936_v52  ;;  %v6992_v59 = vpop.f32.mrf.mxu1  ;;  %v2061_v18 = vadd.f32 %v2057_v50, %v7841_v31  ;;  %v7386_v31 = vld [vmem:[#allocation3 + $0x1b8] sm:$0xff]  }
 0xe17   :  { %v2033_v61 = vpop.f32.mrf.mxu0  ;;  %6996 = vmatprep.subr.bf16.mxu0 %v7386_v31 }
 0xe18   :  { %v2046_v62 = vadd.f32 %v2033_v61, %v1928_v63  ;;  %v2222_v2 = vpop.f32.mrf.mxu1  ;;  %v2059_v3 = vadd.f32 %v2055_v51, %v7839_v10  ;;  %v2058_v9 = vadd.f32 %v2054_v38, %v2048_v55  ;;  %v2071_v12 = vsel %vm373_vm8, %v2061_v18, 0.0  ;;  %6997 = vmatpush3.bf16.msra.mxu0 %v7386_v31 }
 0xe19   :  { %v2309_v4 = vpack.c.bf16 %v2222_v2, %v2219_v49 }
 0xe1a   :  { %v2056_v29 = vadd.f32 %v2054_v38, %v2046_v62  ;;  %v6993_v13 = vpop.f32.mrf.mxu1  ;;  %v2065_v14 = vsel %vm373_vm8, %v2059_v3, 0.0  ;;  %v2062_v21 = vadd.f32 %v2058_v9, %v7852_v22 }
 0xe1b   :  { %2066 = vadd.xlane.f32.xlu1 %v2065_v14  ;;  %7007 = vmatmul.mubr.msk.bf16.vlgmr.msra.gmra.mxu1 %vm373_vm8, %v2309_v4  ;;  %v2064_v14 = vld [vmem:[#allocation3 + $0x1b0] sm:$0x1] }
 0xe1c   :  { %v2060_v58 = vadd.f32 %v2056_v29, %v7843_v19  ;;  %v2074_v10 = vsel %vm373_vm8, %v2062_v21, 0.0  ;;  %v2063_v29 = vld [vmem:[#allocation3 + $0x1a8] sm:$0x1] }
 0xe1d   :  { %v2117_v13 = vunpack.c.l.bf16 %v2063_v29 }
 0xe1e   :  { %v2068_v44 = vsel %vm373_vm8, %v2060_v58, 0.0 }
 0xe1f   :  { %2069 = vadd.xlane.f32.xlu0 %v2068_v44  ;;  %2072 = vadd.xlane.f32.xlu1 %v2071_v12  ;;  %v2121_v44 = vrot.slane %v2117_v13, %v7681_v56  ;;  %v2126_v12 = vunpack.c.l.bf16 %v2064_v14 }
 0xe23   :  { %2075 = vadd.xlane.f32.xlu0 %v2074_v10 }
 0xea4   :  { %v2067_v30 = vpop.xlane.xlu1 %2066 }
 0xea5   :  { %v2077_v20 = vmul.f32 0.03125, %v2067_v30 }
 0xea7   :  { %v2081_v19 = vsub.f32 %v2059_v3, %v2077_v20  ;;  %v2130_v20 = vrot.slane %v2126_v12, %v7681_v56 }
 0xea8   :  { %v2073_v47 = vpop.xlane.xlu1 %2072  ;;  %v2070_v23 = vpop.xlane.xlu0 %2069 }
 0xea9   :  { %v2079_v24 = vmul.f32 0.03125, %v2073_v47  ;;  %v2078_v25 = vmul.f32 0.03125, %v2070_v23  ;;  %v2085_v37 = vmul.f32 %v2081_v19, %v2081_v19 }
 0xeab   :  { %v2083_v22 = vsub.f32 %v2061_v18, %v2079_v24  ;;  %v2082_v26 = vsub.f32 %v2060_v58, %v2078_v25  ;;  %v2089_v28 = vsel %vm373_vm8, %v2085_v37, 0.0 }
 0xeac   :  { %2090 = vadd.xlane.f32.xlu1 %v2089_v28  ;;  %v2076_v32 = vpop.xlane.xlu0 %2075 }
 0xead   :  { %v2080_v33 = vmul.f32 0.03125, %v2076_v32  ;;  %v2087_v34 = vmul.f32 %v2083_v22, %v2083_v22  ;;  %v2086_v35 = vmul.f32 %v2082_v26, %v2082_v26 }
 0xeaf   :  { %v2084_v36 = vsub.f32 %v2062_v21, %v2080_v33  ;;  %v2095_v39 = vsel %vm373_vm8, %v2087_v34, 0.0  ;;  %v2092_v40 = vsel %vm373_vm8, %v2086_v35, 0.0 }
 0xeb0   :  { %2096 = vadd.xlane.f32.xlu1 %v2095_v39  ;;  %2093 = vadd.xlane.f32.xlu0 %v2092_v40 }
 0xeb1   :  { %v2088_v41 = vmul.f32 %v2084_v36, %v2084_v36 }
 0xeb3   :  { %v2098_v54 = vsel %vm373_vm8, %v2088_v41, 0.0 }
 0xeb4   :  { %2099 = vadd.xlane.f32.xlu0 %v2098_v54 }
 0xedb   :  { %v2365_v0 = vpop.f32.mrf.mxu1 }
 0xedc   :  { %v2366_v48 = vadd.f32 %v2365_v0, %v2315_v43 }
 0xedd   :  { %v7008_v45 = vpop.f32.mrf.mxu1 }
 0xedf   :  { %v2368_v38 = vpop.f32.mrf.mxu1 }
 0xee0   :  { %v2369_v52 = vadd.f32 %v2368_v38, %v2315_v43 }
 0xee1   :  { %v7009_v60 = vpop.f32.mrf.mxu1 }
 0xee2   :  { %v7935_v49 = vpack.c.bf16 %v2369_v52, %v2366_v48 }
 0xee4   :  { %2558 = vrot.lane.b32.xlu1 %v7935_v49, %s7570_s11  ;;  %7325 = vmatprep.subr.msk.bf16.mxu0 %vm140_vm0, %v7935_v49 }
 0xf35   :  { %v2091_v53 = vpop.xlane.xlu1 %2090 }
 0xf36   :  { %v2101_v63 = vmul.f32 0.03125, %v2091_v53 }
 0xf38   :  { %v2105_v50 = vadd.f32 1e-05, %v2101_v63 }
 0xf39   :  { %v2097_v51 = vpop.xlane.xlu1 %2096  ;;  %v2094_v55 = vpop.xlane.xlu0 %2093 }
 0xf3a   :  { %7466 = vrsqrt.f32 %v2105_v50  ;;  %v2103_v59 = vmul.f32 0.03125, %v2097_v51  ;;  %v2102_v61 = vmul.f32 0.03125, %v2094_v55  ;;  %v6549_v50 = vld [vmem:[#allocation3 + $0x38] sm:$0xff]   ;;  %v6550_v55 = vld [vmem:[#allocation3 + $0x40] sm:$0xff]  }
 0xf3b   :  { %v6541_v51 = vunpack.c.l.bf16 %v6549_v50 }
 0xf3c   :  { %v2107_v62 = vadd.f32 1e-05, %v2103_v59  ;;  %v2106_v2 = vadd.f32 1e-05, %v2102_v61  ;;  %v6546_v61 = vunpack.c.h.bf16 %v6550_v55 }
 0xf3d   :  { %v2100_v3 = vpop.xlane.xlu0 %2099 }
 0xf3e   :  { %7468 = vrsqrt.f32 %v2107_v62  ;;  %v2104_v4 = vmul.f32 0.03125, %v2100_v3  ;;  %v6542_v3 = vunpack.c.h.bf16 %v6549_v50 }
 0xf3f   :  { %7470 = vrsqrt.f32 %v2106_v2 }
 0xf40   :  { %v2108_v9 = vadd.f32 1e-05, %v2104_v4 }
 0xf42   :  { %7472 = vrsqrt.f32 %v2108_v9  ;;  %v6545_v9 = vunpack.c.l.bf16 %v6550_v55 }
 0xf47   :  { %v7467_v18 = vpop.eup %7466 }
 0xf48   :  { %v2113_v58 = vmul.f32 %v7467_v18, %v2081_v19 }
 0xf4a   :  { %v2122_v30 = vmul.f32 %v2121_v44, %v2113_v58 }
 0xf4b   :  { %v7469_v21 = vpop.eup %7468 }
 0xf4c   :  { %v7471_v10 = vpop.eup %7470  ;;  %v2115_v27 = vmul.f32 %v7469_v21, %v2083_v22  ;;  %v7943_v37 = vadd.f32 %v2130_v20, %v2122_v30 }
 0xf4d   :  { %v2114_v31 = vmul.f32 %v7471_v10, %v2082_v26  ;;  %v2394_v26 = vsel %vm140_vm0, %v7935_v49, 0 }
 0xf4e   :  { %v2124_v25 = vmul.f32 %v2121_v44, %v2115_v27 }
 0xf4f   :  { %v7473_v47 = vpop.eup %7472  ;;  %v2123_v23 = vmul.f32 %v2121_v44, %v2114_v31 }
 0xf50   :  { %v2116_v24 = vmul.f32 %v7473_v47, %v2084_v36  ;;  %v7949_v33 = vadd.f32 %v2130_v20, %v2124_v25  ;;  %v2232_v36 = vld [vmem:[#allocation3 + $0x1c8] sm:$0x1] }
 0xf51   :  { %v7945_v28 = vadd.f32 %v2130_v20, %v2123_v23  ;;  %v2233_v39 = vunpack.c.l.bf16 %v2232_v36 }
 0xf52   :  { %v2125_v32 = vmul.f32 %v2121_v44, %v2116_v24 }
 0xf53   :  { %v2230_v19 = vpack.c.bf16 %v7945_v28, %v7943_v37  ;;  %v2237_v41 = vrot.slane %v2233_v39, %v7681_v56 }
 0xf54   :  { %v7951_v34 = vadd.f32 %v2130_v20, %v2125_v32 }
 0xf55   :  { %6998 = vmatprep.mubr.msk.bf16.mxu0 %vm373_vm8, %v2230_v19 }
 0xf56   :  { %v2231_v22 = vpack.c.bf16 %v7951_v34, %v7949_v33  ;;  %v2559_v35 = vpop.permute.xlu1 %2558 }
 0xf57   :  { %v2567_v60 = vsel %vm140_vm0, %v2559_v35, 0 }
 0xf58   :  { %6999 = vmatmul.mubr.msk.bf16.vlgmr.msra.gmra.mxu0 %vm373_vm8, %v2231_v22 }
 0xf59   :  { %7011 = vmatpush3.bf16.xpose.msra.mxu0 %v2394_v26 }
 0xf5a   :  { %7326 = vmatprep.subr.msk.bf16.mxu0 %vm140_vm0, %v2559_v35 }
0x1018   :  { %v7000_v40 = vpop.f32.mrf.mxu0 }
0x1019   :  { %v2299_v42 = vadd.f32 %v7000_v40, %v2237_v41 }
0x101a   :  { %v2290_v54 = vpop.f32.mrf.mxu0 }
0x101b   :  { %v2291_v45 = vadd.f32 %v2290_v54, %v2237_v41 }
0x101c   :  { %v7001_v57 = vpop.f32.mrf.mxu0 }
0x101d   :  { %v2302_v0 = vadd.f32 %v7001_v57, %v2237_v41 }
0x101e   :  { %v2293_v43 = vpop.f32.mrf.mxu0 }
0x101f   :  { %v2385_v38 = vpack.c.bf16 %v2302_v0, %v2299_v42  ;;  %v2294_v48 = vadd.f32 %v2293_v43, %v2237_v41 }
0x1021   :  { %v2384_v52 = vpack.c.bf16 %v2294_v48, %v2291_v45  ;;  %2556 = vrot.lane.b32.xlu1 %v2385_v38, %s7570_s11 }
0x1023   :  { %2554 = vrot.lane.b32.xlu0 %v2384_v52, %s7570_s11  ;;  %7012 = vmatprep.mubr.msk.bf16.mxu0 %vm140_vm0, %v2384_v52 }
0x1024   :  { %7013 = vmatmul.mubr.msk.bf16.vlgmr.msra.gmra.mxu0 %vm140_vm0, %v2385_v38 }
0x1025   :  { %7023 = vmatpush3.bf16.xpose.msra.mxu0 %v2567_v60 }
0x1093   :  { %v2557_v63 = vpop.permute.xlu1 %2556 }
0x1095   :  { %v2555_v53 = vpop.permute.xlu0 %2554 }
0x1096   :  { %7024 = vmatprep.mubr.msk.bf16.mxu0 %vm140_vm0, %v2555_v53 }
0x1097   :  { %7025 = vmatmul.mubr.msk.bf16.vlgmr.msra.gmra.mxu0 %vm140_vm0, %v2557_v63 }
0x10e4   :  { %v7014_v59 = vpop.f32.mrf.mxu0 }
0x10e5   :  { %v2439_v58 = vadd.f32 %v7014_v59, %v6545_v9 }
0x10e6   :  { %v2430_v62 = vpop.f32.mrf.mxu0 }
0x10e7   :  { %v2431_v2 = vadd.f32 %v6541_v51, %v2430_v62  ;;  %v2451_v21 = vsel %vm140_vm0, %v2439_v58, -inf }
0x10e8   :  { %v7015_v4 = vpop.f32.mrf.mxu0 }
0x10e9   :  { %v2442_v29 = vadd.f32 %v7015_v4, %v6546_v61  ;;  %v2445_v13 = vsel %vm140_vm0, %v2431_v2, -inf }
0x10ea   :  { %v2433_v14 = vpop.f32.mrf.mxu0  ;;  %2446 = vmax.xlane.f32.xlu1 %v2445_v13 }
0x10eb   :  { %v2434_v18 = vadd.f32 %v6542_v3, %v2433_v14  ;;  %v2454_v12 = vsel %vm140_vm0, %v2442_v29, -inf }
0x10ed   :  { %v2448_v44 = vsel %vm140_vm0, %v2434_v18, -inf }
0x10ee   :  { %2449 = vmax.xlane.f32.xlu0 %v2448_v44  ;;  %2455 = vmax.xlane.f32.xlu1 %v2454_v12 }
0x10f2   :  { %2452 = vmax.xlane.f32.xlu0 %v2451_v21 }
0x1157   :  { %v7026_v10 = vpop.f32.mrf.mxu0 }
0x1158   :  { %v2612_v20 = vadd.f32 %v7026_v10, %v6545_v9 }
0x1159   :  { %v2603_v27 = vpop.f32.mrf.mxu0 }
0x115a   :  { %v2604_v31 = vadd.f32 %v6541_v51, %v2603_v27  ;;  %v2624_v32 = vsel %vm140_vm0, %v2612_v20, -inf }
0x115b   :  { %v7027_v30 = vpop.f32.mrf.mxu0 }
0x115c   :  { %v2618_v47 = vsel %vm140_vm0, %v2604_v31, -inf  ;;  %v2615_v25 = vadd.f32 %v7027_v30, %v6546_v61 }
0x115d   :  { %v2606_v23 = vpop.f32.mrf.mxu0  ;;  %2619 = vmax.xlane.f32.xlu0 %v2618_v47 }
0x115e   :  { %v2607_v24 = vadd.f32 %v6542_v3, %v2606_v23  ;;  %v2627_v22 = vsel %vm140_vm0, %v2615_v25, -inf }
0x1160   :  { %v2621_v19 = vsel %vm140_vm0, %v2607_v24, -inf }
0x1161   :  { %2625 = vmax.xlane.f32.xlu0 %v2624_v32  ;;  %2622 = vmax.xlane.f32.xlu1 %v2621_v19 }
0x1165   :  { %2628 = vmax.xlane.f32.xlu1 %v2627_v22 }
0x1173   :  { %v2447_v26 = vpop.xlane.xlu1 %2446 }
0x1174   :  { %v2457_v41 = vsub.f32 %v2431_v2, %v2447_v26 }
0x1176   :  { %v2461_v43 = vmul.f32 1.442695, %v2457_v41 }
0x1177   :  { %v2450_v35 = vpop.xlane.xlu0 %2449  ;;  %v2456_v36 = vpop.xlane.xlu1 %2455 }
0x1178   :  { %v2458_v39 = vsub.f32 %v2434_v18, %v2450_v35  ;;  %v2460_v40 = vsub.f32 %v2442_v29, %v2456_v36 }
0x117a   :  { %v2467_v54 = vmul.f32 1.442695, %v2460_v40  ;;  %v2463_v57 = vmul.f32 1.442695, %v2458_v39 }
0x117b   :  { %v2453_v42 = vpop.xlane.xlu0 %2452 }
0x117c   :  { %v2459_v0 = vsub.f32 %v2439_v58, %v2453_v42  ;;  %7474 = vpow2.f32 %v2467_v54 }
0x117d   :  { %7476 = vpow2.f32 %v2463_v57 }
0x117e   :  { %v2465_v45 = vmul.f32 1.442695, %v2459_v0 }
0x1180   :  { %7478 = vpow2.f32 %v2465_v45 }
0x1181   :  { %7480 = vpow2.f32 %v2461_v43 }
0x1189   :  { %v7475_v38 = vpop.eup %7474 }
0x118a   :  { %v2478_v48 = vsel %vm140_vm0, %v7475_v38, 0.0  ;;  %v7477_v52 = vpop.eup %7476 }
0x118b   :  { %2479 = vadd.xlane.f32.xlu1 %v2478_v48  ;;  %v2472_v50 = vsel %vm140_vm0, %v7477_v52, 0.0 }
0x118d   :  { %v7479_v60 = vpop.eup %7478 }
0x118e   :  { %v2475_v53 = vsel %vm140_vm0, %v7479_v60, 0.0  ;;  %v7481_v63 = vpop.eup %7480 }
0x118f   :  { %2476 = vadd.xlane.f32.xlu0 %v2475_v53  ;;  %2473 = vadd.xlane.f32.xlu1 %v2472_v50  ;;  %v2469_v51 = vsel %vm140_vm0, %v7481_v63, 0.0 }
0x1193   :  { %2470 = vadd.xlane.f32.xlu0 %v2469_v51 }
0x11e6   :  { %v2620_v55 = vpop.xlane.xlu0 %2619 }
0x11e7   :  { %v2630_v59 = vsub.f32 %v2604_v31, %v2620_v55 }
0x11e9   :  { %v2634_v3 = vmul.f32 1.442695, %v2630_v59  ;;  %v7387_v59 = vld [vmem:[#allocation3 + $0x1e8] sm:$0xff]  }
0x11ea   :  { %v2626_v61 = vpop.xlane.xlu0 %2625  ;;  %v2623_v62 = vpop.xlane.xlu1 %2622 }
0x11eb   :  { %v2632_v2 = vsub.f32 %v2612_v20, %v2626_v61  ;;  %v2631_v9 = vsub.f32 %v2607_v24, %v2623_v62  ;;  %v7388_v61 = vld [vmem:[#allocation3 + $0x1f0] sm:$0xff]  }
0x11ec   :  { %7034 = vmatprep.subr.bf16.mxu0 %v7388_v61 }
0x11ed   :  { %v2638_v4 = vmul.f32 1.442695, %v2632_v2  ;;  %v2636_v14 = vmul.f32 1.442695, %v2631_v9  ;;  %7035 = vmatpush3.bf16.msra.mxu0 %v7388_v61 }
0x11ee   :  { %v2629_v29 = vpop.xlane.xlu1 %2628 }
0x11ef   :  { %7482 = vpow2.f32 %v2638_v4  ;;  %v2633_v13 = vsub.f32 %v2615_v25, %v2629_v29 }
0x11f0   :  { %7484 = vpow2.f32 %v2634_v3 }
0x11f1   :  { %v2640_v18 = vmul.f32 1.442695, %v2633_v13 }
0x11f3   :  { %7486 = vpow2.f32 %v2640_v18 }
0x11f4   :  { %7488 = vpow2.f32 %v2636_v14 }
0x11fc   :  { %v7483_v58 = vpop.eup %7482 }
0x11fd   :  { %v2648_v44 = vsel %vm140_vm0, %v7483_v58, 0.0  ;;  %v7485_v12 = vpop.eup %7484 }
0x11fe   :  { %2649 = vadd.xlane.f32.xlu0 %v2648_v44  ;;  %v2642_v10 = vsel %vm140_vm0, %v7485_v12, 0.0 }
0x1200   :  { %v7487_v21 = vpop.eup %7486 }
0x1201   :  { %v2651_v27 = vsel %vm140_vm0, %v7487_v21, 0.0  ;;  %v7489_v31 = vpop.eup %7488 }
0x1202   :  { %2643 = vadd.xlane.f32.xlu0 %v2642_v10  ;;  %2652 = vadd.xlane.f32.xlu1 %v2651_v27  ;;  %v2645_v30 = vsel %vm140_vm0, %v7489_v31, 0.0  ;;  %v7390_v10 = vld [vmem:[#allocation3 + $0x218] sm:$0xff]  }
0x1206   :  { %2646 = vadd.xlane.f32.xlu1 %v2645_v30 }
0x1214   :  { %v2480_v20 = vpop.xlane.xlu1 %2479 }
0x1215   :  { %7490 = vrcp.f32 %v2480_v20 }
0x1217   :  { %2664 = vrot.lane.b32.xlu1 %v7935_v49, %s7569_s10 }
0x1218   :  { %v2477_v47 = vpop.xlane.xlu0 %2476  ;;  %2492 = vrot.lane.b32.xlu0 %v7935_v49, %s7568_s0  ;;  %v2474_v23 = vpop.xlane.xlu1 %2473 }
0x1219   :  { %7492 = vrcp.f32 %v2477_v47 }
0x121a   :  { %7494 = vrcp.f32 %v2474_v23 }
0x121c   :  { %v2471_v24 = vpop.xlane.xlu0 %2470 }
0x121d   :  { %7496 = vrcp.f32 %v2471_v24 }
0x1222   :  { %v7491_v25 = vpop.eup %7490 }
0x1223   :  { %v2488_v22 = vmul.f32 %v7491_v25, %v7475_v38 }
0x1226   :  { %v7493_v32 = vpop.eup %7492 }
0x1227   :  { %v2487_v19 = vmul.f32 %v7493_v32, %v7479_v60  ;;  %v7495_v26 = vpop.eup %7494 }
0x1228   :  { %v2486_v40 = vmul.f32 %v7495_v26, %v7477_v52 }
0x1229   :  { %v2490_v35 = vpack.c.bf16 %v2488_v22, %v2487_v19 }
0x122a   :  { %v7497_v36 = vpop.eup %7496 }
0x122b   :  { %v2485_v39 = vmul.f32 %v7497_v36, %v7481_v63 }
0x122d   :  { %v2489_v41 = vpack.c.bf16 %v2486_v40, %v2485_v39 }
0x122f   :  { %7018 = vmatprep.mubr.msk.bf16.mxu1 %vm140_vm0, %v2489_v41 }
0x1287   :  { %v2650_v54 = vpop.xlane.xlu0 %2649 }
0x128b   :  { %v2644_v57 = vpop.xlane.xlu0 %2643  ;;  %v2653_v49 = vpop.xlane.xlu1 %2652 }
0x128c   :  { %7498 = vrcp.f32 %v2653_v49 }
0x128d   :  { %7500 = vrcp.f32 %v2644_v57 }
0x128e   :  { %7502 = vrcp.f32 %v2650_v54 }
0x128f   :  { %v2493_v42 = vpop.permute.xlu0 %2492  ;;  %v2647_v0 = vpop.xlane.xlu1 %2646 }
0x1290   :  { %7504 = vrcp.f32 %v2647_v0  ;;  %7016 = vmatprep.subr.bf16.mxu1 %v2493_v42 }
0x1291   :  { %7017 = vmatpush3.bf16.msra.mxu1 %v2493_v42 }
0x1293   :  { %v2665_v43 = vpop.permute.xlu1 %2664 }
0x1294   :  { %7019 = vmatmul.mubr.msk.bf16.vlgmr.msra.gmra.mxu1 %vm140_vm0, %v2490_v35  ;;  %7028 = vmatprep.subr.bf16.mxu1 %v2665_v43 }
0x1295   :  { %7029 = vmatpush3.bf16.msra.mxu1 %v2665_v43 }
0x1296   :  { %7040 = vmatprep.subr.bf16.mxu1 %v7387_v59 }
0x1299   :  { %v7499_v45 = vpop.eup %7498 }
0x129a   :  { %v7501_v38 = vpop.eup %7500  ;;  %v2661_v60 = vmul.f32 %v7499_v45, %v7487_v21  ;;  %v7389_v21 = vld [vmem:[#allocation3 + $0x220] sm:$0xff]  }
0x129b   :  { %v7503_v48 = vpop.eup %7502  ;;  %v2658_v53 = vmul.f32 %v7501_v38, %v7485_v12  ;;  %7046 = vmatprep.subr.bf16.mxu0 %v7389_v21 }
0x129c   :  { %v2660_v50 = vmul.f32 %v7503_v48, %v7483_v58 }
0x129d   :  { %v7505_v52 = vpop.eup %7504 }
0x129e   :  { %v2659_v63 = vmul.f32 %v7505_v52, %v7489_v31  ;;  %v2663_v55 = vpack.c.bf16 %v2661_v60, %v2660_v50  ;;  %v2846_v31 = vld [vmem:[#allocation3 + $0x1f8] sm:$0x1] }
0x129f   :  { %v2847_v20 = vunpack.c.l.bf16 %v2846_v31  ;;  %v2945_v31 = vld [vmem:[%s8988_s3 + $0x10] sm:$0xff] }
0x12a0   :  { %v2662_v51 = vpack.c.bf16 %v2659_v63, %v2658_v53 }
0x12a1   :  { %v2851_v25 = vrot.slane %v2847_v20, %v7681_v56 }
0x12a2   :  { %7030 = vmatprep.mubr.msk.bf16.mxu1 %vm140_vm0, %v2662_v51 }
0x12a3   :  { %7031 = vmatmul.mubr.msk.bf16.vlgmr.msra.gmra.mxu1 %vm140_vm0, %v2663_v55 }
0x12a4   :  { %7041 = vmatpush3.bf16.msra.mxu1 %v7387_v59 }
0x1354   :  { %v7020_v62 = vpop.f32.mrf.mxu1 }
0x1356   :  { %v2535_v2 = vpop.f32.mrf.mxu1 }
0x1358   :  { %v7021_v3 = vpop.f32.mrf.mxu1 }
0x1359   :  { %v2551_v29 = vpack.c.bf16 %v7021_v3, %v7020_v62 }
0x135a   :  { %v2538_v4 = vpop.f32.mrf.mxu1 }
0x135b   :  { %v2550_v9 = vpack.c.bf16 %v2538_v4, %v2535_v2 }
0x135d   :  { %7042 = vmatprep.mubr.msk.bf16.mxu1 %vm140_vm0, %v2550_v9 }
0x135e   :  { %7043 = vmatmul.mubr.msk.bf16.vlgmr.msra.gmra.mxu1 %vm140_vm0, %v2551_v29  ;;  %v7391_v29 = vld [vmem:[#allocation3 + $0x230] sm:$0xff]  }
0x135f   :  { %7054 = vmatprep.subr.bf16.mxu1 %v7391_v29 }
0x1360   :  { %7055 = vmatpush3.bf16.msra.mxu1 %v7391_v29 }
0x1363   :  { %v7032_v13 = vpop.f32.mrf.mxu1 }
0x1365   :  { %v2707_v14 = vpop.f32.mrf.mxu1 }
0x1367   :  { %v7033_v18 = vpop.f32.mrf.mxu1 }
0x1368   :  { %v2723_v12 = vpack.c.bf16 %v7033_v18, %v7032_v13 }
0x1369   :  { %v2710_v58 = vpop.f32.mrf.mxu1 }
0x136a   :  { %v2722_v44 = vpack.c.bf16 %v2710_v58, %v2707_v14 }
0x136c   :  { %7036 = vmatprep.mubr.msk.bf16.mxu0 %vm140_vm0, %v2722_v44  ;;  %v2943_v44 = vld [vmem:[%s8988_s3] sm:$0xff] }
0x136d   :  { %7037 = vmatmul.mubr.msk.bf16.vlgmr.msra.gmra.mxu0 %vm140_vm0, %v2723_v12 }
0x136e   :  { %7047 = vmatpush3.bf16.msra.mxu0 %v7389_v21  ;;  %v2944_v21 = vld [vmem:[%s8988_s3 + $0x8] sm:$0xff] }
0x136f   :  { %7048 = vmatprep.subr.bf16.mxu0 %v7390_v10 }
0x1372   :  { %7049 = vmatpush3.bf16.msra.mxu0 %v7390_v10 }
0x141e   :  { %v7044_v27 = vpop.f32.mrf.mxu1 }
0x1420   :  { %v2831_v30 = vpop.f32.mrf.mxu1 }
0x1422   :  { %v7045_v23 = vpop.f32.mrf.mxu1 }
0x1424   :  { %v2834_v36 = vpop.f32.mrf.mxu1 }
0x142d   :  { %v7038_v47 = vpop.f32.mrf.mxu0 }
0x142e   :  { %v2840_v24 = vadd.f32 %v7044_v27, %v7038_v47  ;;  %v2946_v47 = vld [vmem:[%s8988_s3 + $0x18] sm:$0xff]  ;;  %s7572_s3 = smov 16  }
0x142f   :  { %v2770_v32 = vpop.f32.mrf.mxu0 }
0x1430   :  { %v2832_v19 = vadd.f32 %v2831_v30, %v2770_v32  ;;  %v2854_v39 = vadd.f32 %v2851_v25, %v2840_v24 }
0x1431   :  { %v7039_v22 = vpop.f32.mrf.mxu0 }
0x1432   :  { %v2852_v26 = vadd.f32 %v2851_v25, %v2832_v19  ;;  %v2843_v35 = vadd.f32 %v7045_v23, %v7039_v22  ;;  %v2858_v0 = vadd.f32 %v2854_v39, %v7949_v33  ;;  %v7392_v39 = vld [vmem:[#allocation3 + $0x258] sm:$0xff]  }
0x1433   :  { %v2773_v40 = vpop.f32.mrf.mxu0  ;;  %7060 = vmatprep.subr.bf16.mxu0 %v7392_v39 }
0x1434   :  { %v2855_v41 = vadd.f32 %v2851_v25, %v2843_v35  ;;  %v2835_v54 = vadd.f32 %v2834_v36, %v2773_v40  ;;  %v2856_v57 = vadd.f32 %v2852_v26, %v7943_v37  ;;  %v2862_v52 = vadd.f32 %v7707_v5, %v2858_v0  ;;  %v2870_v37 = vld [vmem:[#allocation3 + $0x228] sm:$0x1] }
0x1435   :  { %v7393_v40 = vld [vmem:[#allocation3 + $0x248] sm:$0xff]  }
0x1436   :  { %v2859_v49 = vadd.f32 %v2855_v41, %v7951_v34  ;;  %v2853_v42 = vadd.f32 %v2851_v25, %v2835_v54  ;;  %v2860_v38 = vadd.f32 %v2856_v57, %v7709_v6  ;;  %v2871_v34 = vunpack.c.l.bf16 %v2870_v37  ;;  %v7394_v41 = vld [vmem:[#allocation3 + $0x250] sm:$0xff]   ;;  %7068 = vmatprep.subr.bf16.mxu1 %v7393_v40  ;;  %v7395_v54 = vld [vmem:[#allocation3 + $0x240] sm:$0xff]   ;;  %v7396_v57 = vld [vmem:[#allocation3 + $0x268] sm:$0xff]  }
0x1438   :  { %v2857_v43 = vadd.f32 %v2853_v42, %v7945_v28  ;;  %v2863_v45 = vadd.f32 %v7711_v7, %v2859_v49  ;;  %v2875_v33 = vrot.slane %v2871_v34, %v7681_v56  ;;  %v2983_v49 = vld [vmem:[#allocation3 + $0x238] sm:$0x1] }
0x1439   :  { %v2984_v42 = vunpack.c.l.bf16 %v2983_v49 }
0x143a   :  { %v2861_v48 = vadd.f32 %v2857_v43, %v7713_v8  ;;  %v2869_v53 = vpack.c.bf16 %v2863_v45, %v2862_v52 }
0x143b   :  { %v2988_v0 = vrot.slane %v2984_v42, %v7681_v56 }
0x143c   :  { %v2868_v60 = vpack.c.bf16 %v2861_v48, %v2860_v38 }
0x143e   :  { %7050 = vmatprep.mubr.msk.bf16.mxu0 %vm373_vm8, %v2868_v60 }
0x143f   :  { %7051 = vmatmul.mubr.msk.bf16.vlgmr.msra.gmra.mxu0 %vm373_vm8, %v2869_v53 }
0x1440   :  { %7061 = vmatpush3.bf16.msra.mxu0 %v7392_v39 }
0x1441   :  { %7062 = vmatprep.subr.bf16.mxu0 %v7394_v41 }
0x1444   :  { %7063 = vmatpush3.bf16.msra.mxu0 %v7394_v41 }
0x1445   :  { %7076 = vmatprep.subr.bf16.mxu0 %v7396_v57 }
0x14ff   :  { %v7052_v63 = vpop.f32.mrf.mxu0 }
0x1500   :  { %v2937_v28 = vadd.f32 %v7052_v63, %v2875_v33 }
0x1501   :  { %v2928_v50 = vpop.f32.mrf.mxu0 }
0x1502   :  { %v2929_v51 = vadd.f32 %v2928_v50, %v2875_v33  ;;  %v2951_v61 = vmul.f32 1.442695, %v2937_v28 }
0x1503   :  { %v7053_v55 = vpop.f32.mrf.mxu0 }
0x1504   :  { %v2947_v59 = vmul.f32 1.442695, %v2929_v51  ;;  %v2940_v2 = vadd.f32 %v7053_v55, %v2875_v33 }
0x1505   :  { %v2931_v62 = vpop.f32.mrf.mxu0 }
0x1506   :  { %7506 = vpow2.f32 %v2947_v59  ;;  %v2932_v3 = vadd.f32 %v2931_v62, %v2875_v33  ;;  %v2953_v9 = vmul.f32 1.442695, %v2940_v2 }
0x1507   :  { %7508 = vpow2.f32 %v2951_v61 }
0x1508   :  { %v2949_v4 = vmul.f32 1.442695, %v2932_v3 }
0x150a   :  { %7510 = vpow2.f32 %v2949_v4 }
0x150b   :  { %7512 = vpow2.f32 %v2953_v9 }
0x1513   :  { %v7507_v13 = vpop.eup %7506 }
0x1514   :  { %2959 = vrot.lane.b32.xlu1 %v7507_v13, %s7568_s0  ;;  %v7509_v14 = vpop.eup %7508 }
0x1517   :  { %v7511_v18 = vpop.eup %7510 }
0x1518   :  { %2961 = vrot.lane.b32.xlu0 %v7511_v18, %s7568_s0  ;;  %2963 = vrot.lane.b32.xlu1 %v7509_v14, %s7568_s0  ;;  %v7513_v58 = vpop.eup %7512 }
0x151c   :  { %2965 = vrot.lane.b32.xlu0 %v7513_v58, %s7568_s0  ;;  %3054 = vrot.lane.b32.xlu1 %v7709_v6, %s7568_s0 }
0x1520   :  { %3056 = vrot.lane.b32.xlu0 %v7713_v8, %s7568_s0  ;;  %3058 = vrot.lane.b32.xlu1 %v7707_v5, %s7568_s0 }
0x1524   :  { %3060 = vrot.lane.b32.xlu0 %v7711_v7, %s7568_s0 }
0x1586   :  { %v2960_v12 = vpop.permute.xlu1 %2959 }
0x1587   :  { %v2971_v10 = vmul.f32 %v2960_v12, %v2943_v44 }
0x1589   :  { %v8032_v23 = vadd.f32 %v2971_v10, %v2929_v51 }
0x158a   :  { %v2962_v27 = vpop.permute.xlu0 %2961  ;;  %v2964_v30 = vpop.permute.xlu1 %2963 }
0x158b   :  { %v2972_v20 = vmul.f32 %v2962_v27, %v2944_v21  ;;  %v2973_v25 = vmul.f32 %v2964_v30, %v2945_v31  ;;  %v7397_v27 = vld [vmem:[#allocation3 + $0x260] sm:$0xff]  }
0x158d   :  { %v8034_v24 = vadd.f32 %v2972_v20, %v2932_v3  ;;  %v8038_v26 = vadd.f32 %v2973_v25, %v2937_v28 }
0x158e   :  { %v2966_v32 = vpop.permute.xlu0 %2965  ;;  %v3055_v43 = vpop.permute.xlu1 %3054 }
0x158f   :  { %v2981_v19 = vpack.c.bf16 %v8034_v24, %v8032_v23  ;;  %v2974_v22 = vmul.f32 %v2966_v32, %v2946_v47 }
0x1591   :  { %v8040_v35 = vadd.f32 %v2974_v22, %v2940_v2  ;;  %7056 = vmatprep.mubr.msk.bf16.mxu1 %vm140_vm0, %v2981_v19 }
0x1592   :  { %v3057_v45 = vpop.permute.xlu0 %3056  ;;  %v3059_v37 = vpop.permute.xlu1 %3058 }
0x1593   :  { %v2982_v36 = vpack.c.bf16 %v8040_v35, %v8038_v26 }
0x1595   :  { %7057 = vmatmul.mubr.msk.bf16.vlgmr.msra.gmra.mxu1 %vm140_vm0, %v2982_v36 }
0x1596   :  { %7069 = vmatpush3.bf16.msra.mxu1 %v7393_v40  ;;  %v3061_v33 = vpop.permute.xlu0 %3060 }
0x1597   :  { %7070 = vmatprep.subr.bf16.mxu1 %v7395_v54 }
0x159a   :  { %7071 = vmatpush3.bf16.msra.mxu1 %v7395_v54  ;;  %v3331_v54 = vld [vmem:[#allocation3 + $0x270] sm:$0x1] }
0x159b   :  { %v3332_v42 = vunpack.c.l.bf16 %v3331_v54 }
0x1655   :  { %v7058_v38 = vpop.f32.mrf.mxu1 }
0x1656   :  { %v3044_v48 = vadd.f32 %v7058_v38, %v2988_v0 }
0x1657   :  { %v3035_v52 = vpop.f32.mrf.mxu1 }
0x1658   :  { %v3036_v60 = vadd.f32 %v3035_v52, %v2988_v0  ;;  %v3068_v63 = vadd.f32 %v3059_v37, %v3044_v48  ;;  %v3336_v52 = vrot.slane %v3332_v42, %v7681_v56 }
0x1659   :  { %v7059_v53 = vpop.f32.mrf.mxu1 }
0x165a   :  { %v3047_v34 = vadd.f32 %v7059_v53, %v2988_v0  ;;  %v3066_v28 = vadd.f32 %v3055_v43, %v3036_v60  ;;  %v3083_v62 = vrot.slane %v3068_v63, 7  ;;  %v3244_v3 = vrot.slane %v3068_v63, 1 }
0x165b   :  { %v3038_v50 = vpop.f32.mrf.mxu1 }
0x165c   :  { %v3069_v51 = vadd.f32 %v3061_v33, %v3047_v34  ;;  %v3039_v55 = vadd.f32 %v3038_v50, %v2988_v0  ;;  %v3080_v2 = vrot.slane %v3066_v28, 7  ;;  %v3241_v4 = vrot.slane %v3066_v28, 1 }
0x165e   :  { %v3075_v59 = vrot.slane %v3069_v51, 7  ;;  %v3067_v61 = vadd.f32 %v3057_v45, %v3039_v55  ;;  %v3246_v9 = vrot.slane %v3069_v51, 1  ;;  %v3102_v13 = vpack.c.bf16 %v3069_v51, %v3068_v63 }
0x1660   :  { %v3081_v29 = vrot.slane %v3067_v61, 7  ;;  %v3101_v14 = vpack.c.bf16 %v3067_v61, %v3066_v28  ;;  %v3242_v18 = vrot.slane %v3067_v61, 1  ;;  %v3090_v58 = vsel %vm47_vm1, %v3075_v59, %v3080_v2 }
0x1661   :  { %v3085_v44 = vsel %vm47_vm1, %v3083_v62, %v3075_v59  ;;  %v3091_v10 = vsel %vm7616_vm3, %v3090_v58, 0.0  ;;  %v3253_v25 = vsel %vm259_vm2, %v3246_v9, %v3241_v4  ;;  %v3247_v36 = vsel %vm259_vm2, %v3244_v3, %v3246_v9 }
0x1662   :  { %v3084_v12 = vsel %vm47_vm1, %v3081_v29, %v3083_v62  ;;  %v3082_v21 = vsel %vm47_vm1, %v3080_v2, %v3081_v29  ;;  %7064 = vmatprep.mubr.msk.bf16.mxu0 %vm373_vm8, %v3101_v14  ;;  %v3243_v20 = vsel %vm259_vm2, %v3241_v4, %v3242_v18  ;;  %v3245_v47 = vsel %vm259_vm2, %v3242_v18, %v3244_v3 }
0x1663   :  { %v3093_v31 = vsel %vm7629_vm4, %v3084_v12, 0.0  ;;  %v3095_v30 = vpack.c.bf16 %v3082_v21, %v3091_v10  ;;  %7065 = vmatmul.mubr.msk.bf16.vlgmr.msra.gmra.mxu0 %vm373_vm8, %v3102_v13  ;;  %v3255_v19 = vsel %vm7633_vm5, %v3245_v47, 0.0  ;;  %v3257_v39 = vsel %vm7637_vm6, %v3253_v25, 0.0 }
0x1664   :  { %v3096_v32 = vpack.c.bf16 %v3085_v44, %v3093_v31  ;;  %7077 = vmatpush3.bf16.msra.mxu0 %v7396_v57  ;;  %v3258_v22 = vpack.c.bf16 %v3255_v19, %v3243_v20  ;;  %v3259_v40 = vpack.c.bf16 %v3257_v39, %v3247_v36  ;;  %v7399_v20 = vld [vmem:[#allocation3 + $0x278] sm:$0xff]  }
0x1665   :  { %7072 = vmatprep.mubr.msk.bf16.mxu1 %vm373_vm8, %v3095_v30  ;;  %7078 = vmatprep.subr.bf16.mxu0 %v7397_v27  ;;  %v7398_v30 = vld [vmem:[#allocation3 + $0x280] sm:$0xff]  }
0x1666   :  { %7073 = vmatmul.mubr.msk.bf16.vlgmr.msra.gmra.mxu1 %vm373_vm8, %v3096_v32  ;;  %7080 = vmatprep.mubr.msk.bf16.mxu0 %vm373_vm8, %v3258_v22 }
0x1667   :  { %7084 = vmatprep.subr.bf16.mxu1 %v7398_v30 }
0x1668   :  { %7079 = vmatpush3.bf16.msra.mxu0 %v7397_v27  ;;  %7085 = vmatpush3.bf16.msra.mxu1 %v7398_v30 }
0x1669   :  { %7086 = vmatprep.subr.bf16.mxu1 %v7399_v20 }
0x166b   :  { %7081 = vmatmul.mubr.msk.bf16.vlgmr.msra.gmra.mxu0 %vm373_vm8, %v3259_v40 }
0x166c   :  { %7087 = vmatpush3.bf16.msra.mxu1 %v7399_v20 }
0x1723   :  { %v7066_v41 = vpop.f32.mrf.mxu0 }
0x1725   :  { %v3155_v57 = vpop.f32.mrf.mxu0 }
0x1726   :  { %v7074_v49 = vpop.f32.mrf.mxu1 }
0x1727   :  { %v7067_v0 = vpop.f32.mrf.mxu0  ;;  %v3231_v48 = vadd.f32 %v7074_v49, %v7066_v41 }
0x1728   :  { %v3222_v43 = vpop.f32.mrf.mxu1 }
0x1729   :  { %v3158_v45 = vpop.f32.mrf.mxu0  ;;  %v3223_v53 = vadd.f32 %v3222_v43, %v3155_v57 }
0x172a   :  { %v7075_v38 = vpop.f32.mrf.mxu1 }
0x172b   :  { %v7082_v60 = vpop.f32.mrf.mxu0  ;;  %v3234_v63 = vadd.f32 %v7075_v38, %v7067_v0 }
0x172c   :  { %v3329_v37 = vadd.f32 %v7082_v60, %v3231_v48  ;;  %v3225_v34 = vpop.f32.mrf.mxu1  ;;  %v7400_v60 = vld [vmem:[#allocation3 + $0x2a8] sm:$0xff]  }
0x172d   :  { %v3312_v33 = vpop.f32.mrf.mxu0  ;;  %v3226_v59 = vadd.f32 %v3225_v34, %v3158_v45  ;;  %7092 = vmatprep.subr.bf16.mxu0 %v7400_v60  ;;  %v7401_v34 = vld [vmem:[#allocation3 + $0x2a0] sm:$0xff]  }
0x172e   :  { %v3339_v28 = vadd.f32 %v3336_v52, %v3329_v37  ;;  %v3327_v50 = vadd.f32 %v3312_v33, %v3223_v53  ;;  %7093 = vmatpush3.bf16.msra.mxu0 %v7400_v60  ;;  %v7409_v60 = vld [vmem:[#allocation3 + $0x2c8] sm:$0xff]  }
0x172f   :  { %v7083_v51 = vpop.f32.mrf.mxu0  ;;  %7094 = vmatprep.subr.bf16.mxu0 %v7401_v34 }
0x1730   :  { %v6436_v55 = vmul.f32 -1.442695, %v3339_v28  ;;  %v3337_v61 = vadd.f32 %v3336_v52, %v3327_v50  ;;  %v3330_v62 = vadd.f32 %v7083_v51, %v3234_v63  ;;  %v7402_v63 = vld [vmem:[#allocation3 + $0x298] sm:$0xff]  }
0x1731   :  { %v3315_v2 = vpop.f32.mrf.mxu0  ;;  %7100 = vmatprep.subr.bf16.mxu1 %v7402_v63 }
0x1732   :  { %v6434_v3 = vmul.f32 -1.442695, %v3337_v61  ;;  %v3340_v4 = vadd.f32 %v3336_v52, %v3330_v62  ;;  %v3328_v9 = vadd.f32 %v3315_v2, %v3226_v59  ;;  %7514 = vpow2.f32 %v6436_v55  ;;  %7095 = vmatpush3.bf16.msra.mxu0 %v7401_v34  ;;  %v7403_v55 = vld [vmem:[#allocation3 + $0x2b8] sm:$0xff]   ;;  %v7404_v59 = vld [vmem:[#allocation3 + $0x290] sm:$0xff]   ;;  %v3753_v34 = vld [vmem:[#allocation3 + $0x2c0] sm:$0x1] }
0x1733   :  { %7108 = vmatprep.subr.bf16.mxu0 %v7403_v55 }
0x1734   :  { %7516 = vpow2.f32 %v6434_v3  ;;  %v6437_v29 = vmul.f32 -1.442695, %v3340_v4  ;;  %v3338_v13 = vadd.f32 %v3336_v52, %v3328_v9  ;;  %v3395_v52 = vld [vmem:[#allocation3 + $0x288] sm:$0x1] }
0x1735   :  { %v3396_v53 = vunpack.c.l.bf16 %v3395_v52  ;;  %v7408_v52 = vld [vmem:[#allocation3 + $0x2d8] sm:$0xff]  }
0x1736   :  { %v6435_v14 = vmul.f32 -1.442695, %v3338_v13  ;;  %7518 = vpow2.f32 %v6437_v29 }
0x1737   :  { %v3400_v33 = vrot.slane %v3396_v53, %v7681_v56  ;;  %v8119_v53 = vld [vmem:[#allocation3 + $0x2f0] sm:$0xff]  }
0x1738   :  { %7520 = vpow2.f32 %v6435_v14 }
0x173f   :  { %v7515_v18 = vpop.eup %7514 }
0x1740   :  { %v3359_v12 = vadd.f32 1.0, %v7515_v18 }
0x1741   :  { %v7517_v58 = vpop.eup %7516 }
0x1742   :  { %v3357_v44 = vadd.f32 1.0, %v7517_v58 }
0x1743   :  { %v7519_v21 = vpop.eup %7518 }
0x1744   :  { %7522 = vrcp.f32 %v3357_v44  ;;  %v3360_v31 = vadd.f32 1.0, %v7519_v21 }
0x1745   :  { %v7521_v10 = vpop.eup %7520  ;;  %7524 = vrcp.f32 %v3359_v12 }
0x1746   :  { %v3358_v27 = vadd.f32 1.0, %v7521_v10 }
0x1748   :  { %7526 = vrcp.f32 %v3358_v27 }
0x1749   :  { %7528 = vrcp.f32 %v3360_v31 }
0x174a   :  { %7530 = vtanh.f32 %v3337_v61 }
0x174b   :  { %7532 = vtanh.f32 %v3338_v13 }
0x174c   :  { %7534 = vtanh.f32 %v3339_v28 }
0x174d   :  { %7536 = vtanh.f32 %v3340_v4 }
0x1751   :  { %v7523_v47 = vpop.eup %7522 }
0x1752   :  { %3373 = vrot.lane.b32.xlu1 %v7523_v47, %s7568_s0  ;;  %v7525_v25 = vpop.eup %7524 }
0x1755   :  { %v7527_v32 = vpop.eup %7526 }
0x1756   :  { %3375 = vrot.lane.b32.xlu0 %v7527_v32, %s7568_s0  ;;  %3377 = vrot.lane.b32.xlu1 %v7525_v25, %s7568_s0  ;;  %v7529_v19 = vpop.eup %7528 }
0x1757   :  { %v7531_v36 = vpop.eup %7530 }
0x1758   :  { %v7533_v39 = vpop.eup %7532 }
0x1759   :  { %v7535_v49 = vpop.eup %7534 }
0x175a   :  { %3379 = vrot.lane.b32.xlu0 %v7529_v19, %s7568_s0  ;;  %v7537_v0 = vpop.eup %7536  ;;  %v7405_v19 = vld [vmem:[#allocation3 + $0x2b0] sm:$0xff]  }
0x17c4   :  { %v3374_v22 = vpop.permute.xlu1 %3373 }
0x17c5   :  { %v3385_v41 = vmul.f32 %v7531_v36, %v3374_v22 }
0x17c8   :  { %v3376_v40 = vpop.permute.xlu0 %3375  ;;  %v3378_v57 = vpop.permute.xlu1 %3377 }
0x17c9   :  { %v3386_v54 = vmul.f32 %v7533_v39, %v3376_v40  ;;  %v3387_v45 = vmul.f32 %v7535_v49, %v3378_v57 }
0x17cb   :  { %v3393_v42 = vpack.c.bf16 %v3386_v54, %v3385_v41 }
0x17cc   :  { %v3380_v43 = vpop.permute.xlu0 %3379 }
0x17cd   :  { %v3388_v38 = vmul.f32 %v7537_v0, %v3380_v43  ;;  %7088 = vmatprep.mubr.msk.bf16.mxu1 %vm373_vm8, %v3393_v42 }
0x17cf   :  { %v3394_v48 = vpack.c.bf16 %v3388_v38, %v3387_v45  ;;  %v7406_v38 = vld [vmem:[#allocation3 + $0x2e0] sm:$0xff]  }
0x17d1   :  { %7089 = vmatmul.mubr.msk.bf16.vlgmr.msra.gmra.mxu1 %vm373_vm8, %v3394_v48  ;;  %v7407_v48 = vld [vmem:[#allocation3 + $0x2d0] sm:$0xff]  }
0x17d2   :  { %7101 = vmatpush3.bf16.msra.mxu1 %v7402_v63  ;;  %v3754_v63 = vunpack.c.l.bf16 %v3753_v34 }
0x17d3   :  { %7102 = vmatprep.subr.bf16.mxu1 %v7404_v59 }
0x17d6   :  { %7103 = vmatpush3.bf16.msra.mxu1 %v7404_v59 }
0x17d7   :  { %7116 = vmatprep.subr.bf16.mxu1 %v7406_v38 }
0x1891   :  { %v7090_v37 = vpop.f32.mrf.mxu1 }
0x1892   :  { %v3462_v62 = vadd.f32 %v7090_v37, %v3400_v33 }
0x1893   :  { %v3453_v28 = vpop.f32.mrf.mxu1 }
0x1894   :  { %v3454_v50 = vadd.f32 %v3453_v28, %v3400_v33 }
0x1895   :  { %v7091_v51 = vpop.f32.mrf.mxu1 }
0x1896   :  { %3472 = vrot.lane.b32.xlu1 %v3454_v50, %s7572_s3  ;;  %v3465_v3 = vadd.f32 %v7091_v51, %v3400_v33 }
0x1897   :  { %v3456_v61 = vpop.f32.mrf.mxu1 }
0x1898   :  { %v3457_v2 = vadd.f32 %v3456_v61, %v3400_v33 }
0x189a   :  { %3474 = vrot.lane.b32.xlu0 %v3457_v2, %s7572_s3  ;;  %3476 = vrot.lane.b32.xlu1 %v3462_v62, %s7572_s3  ;;  %v3758_v62 = vrot.slane %v3754_v63, %v7681_v56 }
0x189e   :  { %3478 = vrot.lane.b32.xlu0 %v3465_v3, %s7572_s3  ;;  %3763 = vrot.lane.b32.xlu1 %v7709_v6, %s7563_s21 }
0x18a2   :  { %3765 = vrot.lane.b32.xlu0 %v7713_v8, %s7563_s21  ;;  %3767 = vrot.lane.b32.xlu1 %v7707_v5, %s7563_s21 }
0x18a6   :  { %3769 = vrot.lane.b32.xlu0 %v7711_v7, %s7563_s21 }
0x1908   :  { %v3473_v4 = vpop.permute.xlu1 %3472 }
0x1909   :  { %v3484_v9 = vsub.f32 %v8032_v23, %v3473_v4 }
0x190b   :  { %v3488_v14 = vsel %vm140_vm0, %v8032_v23, %v3484_v9 }
0x190c   :  { %v3475_v29 = vpop.permute.xlu0 %3474  ;;  %v3477_v13 = vpop.permute.xlu1 %3476  ;;  %v3663_v58 = vrot.slane %v3488_v14, 1  ;;  %v3502_v30 = vrot.slane %v3488_v14, 7 }
0x190d   :  { %v3485_v18 = vsub.f32 %v8034_v24, %v3475_v29  ;;  %v3486_v6 = vsub.f32 %v8038_v26, %v3477_v13 }
0x190f   :  { %v3489_v8 = vsel %vm140_vm0, %v8034_v24, %v3485_v18  ;;  %v3490_v5 = vsel %vm140_vm0, %v8038_v26, %v3486_v6 }
0x1910   :  { %v3523_v7 = vpack.c.bf16 %v3489_v8, %v3488_v14  ;;  %v3664_v44 = vrot.slane %v3489_v8, 1  ;;  %v3479_v12 = vpop.permute.xlu0 %3478  ;;  %v3503_v21 = vrot.slane %v3489_v8, 7  ;;  %v3505_v10 = vrot.slane %v3490_v5, 7  ;;  %v3764_v51 = vpop.permute.xlu1 %3763 }
0x1911   :  { %v3666_v27 = vrot.slane %v3490_v5, 1  ;;  %v3487_v31 = vsub.f32 %v8040_v35, %v3479_v12 }
0x1912   :  { %7096 = vmatprep.mubr.msk.bf16.mxu0 %vm373_vm8, %v3523_v7  ;;  %v3665_v23 = vsel %vm259_vm2, %v3663_v58, %v3664_v44  ;;  %v3506_v22 = vsel %vm47_vm1, %v3503_v21, %v3505_v10  ;;  %v3504_v41 = vsel %vm47_vm1, %v3502_v30, %v3503_v21 }
0x1913   :  { %v3491_v24 = vsel %vm140_vm0, %v8040_v35, %v3487_v31  ;;  %v3667_v20 = vsel %vm259_vm2, %v3664_v44, %v3666_v27  ;;  %v3515_v57 = vsel %vm7629_vm4, %v3506_v22, 0.0 }
0x1914   :  { %v3497_v26 = vrot.slane %v3491_v24, 7  ;;  %v3524_v47 = vpack.c.bf16 %v3491_v24, %v3490_v5  ;;  %v3668_v25 = vrot.slane %v3491_v24, 1  ;;  %v3677_v32 = vsel %vm7633_vm5, %v3667_v20, 0.0  ;;  %v3766_v29 = vpop.permute.xlu0 %3765  ;;  %v3768_v5 = vpop.permute.xlu1 %3767 }
0x1915   :  { %v3680_v36 = vpack.c.bf16 %v3677_v32, %v3665_v23 }
0x1916   :  { %v3507_v39 = vsel %vm47_vm1, %v3505_v10, %v3497_v26  ;;  %v3675_v40 = vsel %vm259_vm2, %v3668_v25, %v3663_v58  ;;  %7097 = vmatmul.mubr.msk.bf16.vlgmr.msra.gmra.mxu0 %vm373_vm8, %v3524_v47  ;;  %v3512_v35 = vsel %vm47_vm1, %v3497_v26, %v3502_v30  ;;  %v3669_v42 = vsel %vm259_vm2, %v3666_v27, %v3668_v25 }
0x1917   :  { %7109 = vmatpush3.bf16.msra.mxu0 %v7403_v55  ;;  %7112 = vmatprep.mubr.msk.bf16.mxu0 %vm373_vm8, %v3680_v36  ;;  %v3513_v54 = vsel %vm7616_vm3, %v3512_v35, 0.0  ;;  %v3679_v0 = vsel %vm7637_vm6, %v3675_v40, 0.0  ;;  %v3518_v43 = vpack.c.bf16 %v3507_v39, %v3515_v57 }
0x1918   :  { %v3517_v49 = vpack.c.bf16 %v3504_v41, %v3513_v54  ;;  %7110 = vmatprep.subr.bf16.mxu0 %v7405_v19  ;;  %v3681_v45 = vpack.c.bf16 %v3679_v0, %v3669_v42  ;;  %v3770_v23 = vpop.permute.xlu0 %3769 }
0x191a   :  { %7104 = vmatprep.mubr.msk.bf16.mxu1 %vm373_vm8, %v3517_v49 }
0x191b   :  { %7105 = vmatmul.mubr.msk.bf16.vlgmr.msra.gmra.mxu1 %vm373_vm8, %v3518_v43  ;;  %7111 = vmatpush3.bf16.msra.mxu0 %v7405_v19 }
0x191c   :  { %7117 = vmatpush3.bf16.msra.mxu1 %v7406_v38  ;;  %7124 = vmatprep.subr.bf16.mxu0 %v7407_v48 }
0x191d   :  { %7118 = vmatprep.subr.bf16.mxu1 %v7408_v52 }
0x191e   :  { %7113 = vmatmul.mubr.msk.bf16.vlgmr.msra.gmra.mxu0 %vm373_vm8, %v3681_v45 }
0x191f   :  { %7125 = vmatpush3.bf16.msra.mxu0 %v7407_v48 }
0x1920   :  { %7119 = vmatpush3.bf16.msra.mxu1 %v7408_v52  ;;  %7126 = vmatprep.subr.bf16.mxu0 %v7409_v60 }
0x1921   :  { %7132 = vmatprep.subr.bf16.mxu1 %v8119_v53 }
0x1923   :  { %7127 = vmatpush3.bf16.msra.mxu0 %v7409_v60 }
0x19d6   :  { %v7098_v37 = vpop.f32.mrf.mxu0 }
0x19d8   :  { %v3577_v33 = vpop.f32.mrf.mxu0 }
0x19da   :  { %v7099_v28 = vpop.f32.mrf.mxu0 }
0x19db   :  { %v7106_v50 = vpop.f32.mrf.mxu1 }
0x19dc   :  { %v3653_v55 = vadd.f32 %v7106_v50, %v7098_v37  ;;  %v3580_v59 = vpop.f32.mrf.mxu0  ;;  %v7411_v37 = vld [vmem:[#allocation3 + $0x2e8] sm:$0xff]  }
0x19dd   :  { %v3644_v61 = vpop.f32.mrf.mxu1 }
0x19de   :  { %v3645_v2 = vadd.f32 %v3644_v61, %v3577_v33  ;;  %v7114_v3 = vpop.f32.mrf.mxu0 }
0x19df   :  { %v3751_v4 = vadd.f32 %v7114_v3, %v3653_v55  ;;  %v7107_v9 = vpop.f32.mrf.mxu1 }
0x19e0   :  { %v3656_v13 = vadd.f32 %v7107_v9, %v7099_v28  ;;  %v3734_v14 = vpop.f32.mrf.mxu0 }
0x19e1   :  { %v3761_v18 = vadd.f32 %v3758_v62, %v3751_v4  ;;  %v3749_v6 = vadd.f32 %v3734_v14, %v3645_v2  ;;  %v3647_v8 = vpop.f32.mrf.mxu1 }
0x19e2   :  { %v3648_v58 = vadd.f32 %v3647_v8, %v3580_v59  ;;  %v7115_v7 = vpop.f32.mrf.mxu0 }
0x19e3   :  { %v3777_v44 = vadd.f32 %v3768_v5, %v3761_v18  ;;  %v3759_v12 = vadd.f32 %v3758_v62, %v3749_v6  ;;  %v3752_v21 = vadd.f32 %v7115_v7, %v3656_v13 }
0x19e4   :  { %v3737_v10 = vpop.f32.mrf.mxu0 }
0x19e5   :  { %v3775_v27 = vadd.f32 %v3764_v51, %v3759_v12  ;;  %v3762_v31 = vadd.f32 %v3758_v62, %v3752_v21  ;;  %v3750_v30 = vadd.f32 %v3737_v10, %v3648_v58  ;;  %v3785_v24 = vmul.f32 0.1, %v3777_v44  ;;  %v7412_v12 = vld [vmem:[#allocation3 + $0x318] sm:$0xff]  }
0x19e6   :  { %vm3781_vm10 = vcmp.ge.f32.partialorder %v3777_v44, 0.0 }
0x19e7   :  { %vm3779_vm0 = vcmp.ge.f32.partialorder %v3775_v27, 0.0  ;;  %v3783_v20 = vmul.f32 0.1, %v3775_v27  ;;  %v3778_v26 = vadd.f32 %v3770_v23, %v3762_v31  ;;  %v3760_v47 = vadd.f32 %v3758_v62, %v3750_v30  ;;  %v7413_v23 = vld [vmem:[#allocation3 + $0x310] sm:$0xff]   ;;  %v7414_v30 = vld [vmem:[#allocation3 + $0x328] sm:$0xff]  }
0x19e8   :  { %v3789_v22 = vsel %vm3781_vm10, %v3777_v44, %v3785_v24  ;;  %7180 = vmatprep.subr.bf16.mxu0 %v7414_v30  ;;  %v7415_v24 = vld [vmem:[#allocation3 + $0x320] sm:$0xff]  }
0x19e9   :  { %v3787_v25 = vsel %vm3779_vm0, %v3775_v27, %v3783_v20  ;;  %vm3782_vm11 = vcmp.ge.f32.partialorder %v3778_v26, 0.0  ;;  %v3786_v32 = vmul.f32 0.1, %v3778_v26  ;;  %v3776_v19 = vadd.f32 %v3766_v29, %v3760_v47  ;;  %v6291_v20 = vld [vmem:[#allocation3 + $0x378] sm:$0x1] }
0x19ea   :  { %v3801_v39 = vrot.slane %v3787_v25, 7  ;;  %v3804_v41 = vrot.slane %v3789_v22, 7  ;;  %v3965_v57 = vrot.slane %v3789_v22, 1  ;;  %v3962_v49 = vrot.slane %v3787_v25, 1 }
0x19eb   :  { %v3790_v36 = vsel %vm3782_vm11, %v3778_v26, %v3786_v32  ;;  %vm3780_vm12 = vcmp.ge.f32.partialorder %v3776_v19, 0.0  ;;  %v3784_v35 = vmul.f32 0.1, %v3776_v19  ;;  %v8153_v26 = vld [vmem:[#allocation3 + $0x308] sm:$0xff]   ;;  %v6292_v47 = vunpack.c.l.bf16 %v6291_v20 }
0x19ec   :  { %v3796_v40 = vrot.slane %v3790_v36, 7  ;;  %v3967_v42 = vrot.slane %v3790_v36, 1  ;;  %v3823_v52 = vpack.c.bf16 %v3790_v36, %v3789_v22 }
0x19ed   :  { %v3788_v0 = vsel %vm3780_vm12, %v3776_v19, %v3784_v35  ;;  %v4139_v19 = vld [vmem:[#allocation3 + $0x2f8] sm:$0x1] }
0x19ee   :  { %v3811_v54 = vsel %vm47_vm1, %v3796_v40, %v3801_v39  ;;  %v3802_v43 = vrot.slane %v3788_v0, 7  ;;  %v3963_v45 = vrot.slane %v3788_v0, 1  ;;  %v3822_v38 = vpack.c.bf16 %v3788_v0, %v3787_v25 }
0x19ef   :  { %v3812_v48 = vsel %vm7616_vm3, %v3811_v54, 0.0  ;;  %v3806_v60 = vsel %vm47_vm1, %v3804_v41, %v3796_v40  ;;  %v3974_v55 = vsel %vm259_vm2, %v3967_v42, %v3962_v49  ;;  %v3968_v62 = vsel %vm259_vm2, %v3965_v57, %v3967_v42 }
0x19f0   :  { %7120 = vmatprep.mubr.msk.bf16.mxu1 %vm373_vm8, %v3822_v38  ;;  %v3803_v34 = vsel %vm47_vm1, %v3801_v39, %v3802_v43  ;;  %v3805_v33 = vsel %vm47_vm1, %v3802_v43, %v3804_v41  ;;  %v3964_v63 = vsel %vm259_vm2, %v3962_v49, %v3963_v45  ;;  %v3966_v28 = vsel %vm259_vm2, %v3963_v45, %v3965_v57 }
0x19f1   :  { %7121 = vmatmul.mubr.msk.bf16.vlgmr.msra.gmra.mxu1 %vm373_vm8, %v3823_v52  ;;  %v3816_v50 = vpack.c.bf16 %v3803_v34, %v3812_v48  ;;  %v3814_v11 = vsel %vm7629_vm4, %v3805_v33, 0.0  ;;  %v3976_v51 = vsel %vm7633_vm5, %v3966_v28, 0.0  ;;  %v3978_v15 = vsel %vm7637_vm6, %v3974_v55, 0.0 }
0x19f2   :  { %7133 = vmatpush3.bf16.msra.mxu1 %v8119_v53  ;;  %v3817_v59 = vpack.c.bf16 %v3806_v60, %v3814_v11  ;;  %v3979_v61 = vpack.c.bf16 %v3976_v51, %v3964_v63  ;;  %v3980_v16 = vpack.c.bf16 %v3978_v15, %v3968_v62  ;;  %v4140_v39 = vunpack.c.l.bf16 %v4139_v19 }
0x19f3   :  { %7128 = vmatprep.mubr.msk.bf16.mxu0 %vm373_vm8, %v3816_v50  ;;  %7134 = vmatprep.subr.bf16.mxu1 %v7411_v37 }
0x19f4   :  { %7129 = vmatmul.mubr.msk.bf16.vlgmr.msra.gmra.mxu0 %vm373_vm8, %v3817_v59  ;;  %7136 = vmatprep.mubr.msk.bf16.mxu1 %vm373_vm8, %v3979_v61  ;;  %v8158_v41 = vrot.slane %v4140_v39, %v7681_v56 }
0x19f5   :  { %7181 = vmatpush3.bf16.msra.mxu0 %v7414_v30 }
0x19f6   :  { %7135 = vmatpush3.bf16.msra.mxu1 %v7411_v37  ;;  %7182 = vmatprep.subr.bf16.mxu0 %v7415_v24 }
0x19f7   :  { %7140 = vmatprep.subr.bf16.mxu1 %v7412_v12 }
0x19f9   :  { %7137 = vmatmul.mubr.msk.bf16.vlgmr.msra.gmra.mxu1 %vm373_vm8, %v3980_v16  ;;  %7183 = vmatpush3.bf16.msra.mxu0 %v7415_v24 }
0x19fa   :  { %7141 = vmatpush3.bf16.msra.mxu1 %v7412_v12 }
0x19fb   :  { %7142 = vmatprep.subr.bf16.mxu1 %v7413_v23 }
0x19fe   :  { %7143 = vmatpush3.bf16.msra.mxu1 %v7413_v23 }
0x19ff   :  { %7160 = vmatprep.subr.bf16.mxu1 %v8153_v26 }
0x1ab1   :  { %v7122_v2 = vpop.f32.mrf.mxu1 }
0x1ab3   :  { %v3876_v53 = vpop.f32.mrf.mxu1 }
0x1ab4   :  { %v7130_v3 = vpop.f32.mrf.mxu0 }
0x1ab5   :  { %v7123_v4 = vpop.f32.mrf.mxu1  ;;  %v3952_v13 = vadd.f32 %v7130_v3, %v7122_v2 }
0x1ab6   :  { %v3943_v9 = vpop.f32.mrf.mxu0 }
0x1ab7   :  { %v3879_v29 = vpop.f32.mrf.mxu1  ;;  %v3944_v6 = vadd.f32 %v3943_v9, %v3876_v53 }
0x1ab8   :  { %v7131_v14 = vpop.f32.mrf.mxu0 }
0x1ab9   :  { %v7138_v18 = vpop.f32.mrf.mxu1  ;;  %v3955_v7 = vadd.f32 %v7131_v14, %v7123_v4 }
0x1aba   :  { %v4050_v8 = vadd.f32 %v7138_v18, %v3952_v13  ;;  %v3946_v5 = vpop.f32.mrf.mxu0 }
0x1abb   :  { %v4033_v58 = vpop.f32.mrf.mxu1  ;;  %v3947_v21 = vadd.f32 %v3946_v5, %v3879_v29 }
0x1abc   :  { %4056 = vst [vmem:[#allocation2 + $0x40] ss:$4 sm:$0xff] %v4050_v8  ;;  %v4048_v17 = vadd.f32 %v4033_v58, %v3944_v6 }
0x1abd   :  { %v7139_v44 = vpop.f32.mrf.mxu1 }
0x1abe   :  { %4052 = vst [vmem:[#allocation2] ss:$4 sm:$0xff] %v4048_v17  ;;  %v4051_v10 = vadd.f32 %v7139_v44, %v3955_v7  ;;  %4083 = vrot.lane.b32.xlu0 %v4048_v17, %s7563_s21  ;;  %4063 = vrot.lane.b32.xlu1 %v4048_v17, %s7568_s0 }
0x1abf   :  { %v4036_v27 = vpop.f32.mrf.mxu1 }
0x1ac0   :  { %4058 = vst [vmem:[#allocation2 + $0x60] ss:$4 sm:$0xff] %v4051_v10  ;;  %v4049_v31 = vadd.f32 %v4036_v27, %v3947_v21 }
0x1ac2   :  { %4054 = vst [vmem:[#allocation2 + $0x20] ss:$4 sm:$0xff] %v4049_v31  ;;  %4065 = vrot.lane.b32.xlu0 %v4049_v31, %s7568_s0  ;;  %4103 = vrot.lane.b32.xlu1 %v4048_v17, %s7573_s4 }
0x1ac6   :  { %4105 = vrot.lane.b32.xlu0 %v4049_v31, %s7573_s4  ;;  %4085 = vrot.lane.b32.xlu1 %v4049_v31, %s7563_s21  ;;  %v7417_v31 = vld [vmem:[#allocation3 + $0x300] sm:$0xff]  }
0x1aca   :  { %4087 = vrot.lane.b32.xlu0 %v4050_v8, %s7563_s21  ;;  %4067 = vrot.lane.b32.xlu1 %v4050_v8, %s7568_s0 }
0x1ace   :  { %4069 = vrot.lane.b32.xlu0 %v4051_v10, %s7568_s0  ;;  %4107 = vrot.lane.b32.xlu1 %v4050_v8, %s7573_s4 }
0x1ad2   :  { %4109 = vrot.lane.b32.xlu0 %v4051_v10, %s7573_s4  ;;  %4089 = vrot.lane.b32.xlu1 %v4051_v10, %s7563_s21 }
0x1ad6   :  { %6295 = vperm.xlu1 %7340, %v6292_v47  }
0x1b30   :  { %v4084_v25 = vpop.permute.xlu0 %4083  ;;  %v4064_v32 = vpop.permute.xlu1 %4063 }
0x1b31   :  { %4096 = vst [vmem:[#allocation2 + $0x2] ss:$4 sm:$0xff] %v4084_v25  ;;  %4076 = vst [vmem:[#allocation2 + $0x1] ss:$4 sm:$0xff] %v4064_v32 }
0x1b34   :  { %v4066_v22 = vpop.permute.xlu0 %4065  ;;  %v4104_v36 = vpop.permute.xlu1 %4103 }
0x1b35   :  { %4078 = vst [vmem:[#allocation2 + $0x21] ss:$4 sm:$0xff] %v4066_v22  ;;  %4116 = vst [vmem:[#allocation2 + $0x3] ss:$4 sm:$0xff] %v4104_v36 }
0x1b38   :  { %v4106_v40 = vpop.permute.xlu0 %4105  ;;  %v4086_v35 = vpop.permute.xlu1 %4085 }
0x1b39   :  { %4118 = vst [vmem:[#allocation2 + $0x23] ss:$4 sm:$0xff] %v4106_v40  ;;  %4098 = vst [vmem:[#allocation2 + $0x22] ss:$4 sm:$0xff] %v4086_v35 }
0x1b3c   :  { %v4088_v54 = vpop.permute.xlu0 %4087  ;;  %v4068_v57 = vpop.permute.xlu1 %4067  ;;  %v4123_v49 = vld [vmem:[#allocation2] sm:$0xff]  ;;  %v4124_v42 = vld [vmem:[#allocation2 + $0x8] sm:$0xff]  ;;  %v4125_v0 = vld [vmem:[#allocation2 + $0x10] sm:$0xff] }
0x1b3d   :  { %4100 = vst [vmem:[#allocation2 + $0x42] ss:$4 sm:$0xff] %v4088_v54  ;;  %4080 = vst [vmem:[#allocation2 + $0x41] ss:$4 sm:$0xff] %v4068_v57  ;;  %v4145_v43 = vadd.f32 %v8158_v41, %v4123_v49  ;;  %v4146_v45 = vadd.f32 %v8158_v41, %v4124_v42  ;;  %v4126_v38 = vld [vmem:[#allocation2 + $0x18] sm:$0xff]  ;;  %v4147_v48 = vadd.f32 %v8158_v41, %v4125_v0  ;;  %v4329_v42 = vadd.s32 56, %v7610_v1 }
0x1b3e   :  { %v4148_v52 = vadd.f32 %v8158_v41, %v4126_v38 }
0x1b3f   :  { %vm4161_vm3 = vcmp.ge.f32.partialorder %v4145_v43, 0.0  ;;  %vm4162_vm4 = vcmp.ge.f32.partialorder %v4146_v45, 0.0  ;;  %v4177_v60 = vmul.f32 0.1, %v4145_v43  ;;  %v4178_v37 = vmul.f32 0.1, %v4146_v45 }
0x1b40   :  { %v4070_v34 = vpop.permute.xlu0 %4069  ;;  %v4108_v33 = vpop.permute.xlu1 %4107  ;;  %vm4163_vm5 = vcmp.ge.f32.partialorder %v4147_v48, 0.0  ;;  %vm4164_vm6 = vcmp.ge.f32.partialorder %v4148_v52, 0.0  ;;  %v4179_v63 = vmul.f32 0.1, %v4147_v48  ;;  %v4180_v28 = vmul.f32 0.1, %v4148_v52 }
0x1b41   :  { %4082 = vst [vmem:[#allocation2 + $0x61] ss:$4 sm:$0xff] %v4070_v34  ;;  %4120 = vst [vmem:[#allocation2 + $0x43] ss:$4 sm:$0xff] %v4108_v33  ;;  %v8164_v50 = vsel %vm4161_vm3, %v4145_v43, %v4177_v60  ;;  %v8166_v11 = vsel %vm4162_vm4, %v4146_v45, %v4178_v37  ;;  %v4127_v51 = vld [vmem:[#allocation2 + $0x20] sm:$0xff]  ;;  %v4128_v55 = vld [vmem:[#allocation2 + $0x28] sm:$0xff] }
0x1b42   :  { %vm4209_vm13 = vcmp.ge.f32.partialorder %v8164_v50, 0.0  ;;  %vm4210_vm14 = vcmp.ge.f32.partialorder %v8166_v11, 0.0  ;;  %v4225_v59 = vmul.f32 0.1, %v8164_v50  ;;  %v4226_v61 = vmul.f32 0.1, %v8166_v11 }
0x1b43   :  { %v8172_v62 = vsel %vm4163_vm5, %v4147_v48, %v4179_v63  ;;  %v8174_v15 = vsel %vm4164_vm6, %v4148_v52, %v4180_v28  ;;  %v4149_v16 = vadd.f32 %v8158_v41, %v4127_v51  ;;  %v4150_v2 = vadd.f32 %v8158_v41, %v4128_v55  ;;  %v4129_v14 = vld [vmem:[#allocation2 + $0x30] sm:$0xff]  ;;  %v4130_v18 = vld [vmem:[#allocation2 + $0x38] sm:$0xff] }
0x1b44   :  { %v4110_v53 = vpop.permute.xlu0 %4109  ;;  %v4090_v3 = vpop.permute.xlu1 %4089  ;;  %v8179_v4 = vsel %vm4209_vm13, %v8164_v50, %v4225_v59  ;;  %v8182_v9 = vsel %vm4210_vm14, %v8166_v11, %v4226_v61  ;;  %vm4211_vm15 = vcmp.ge.f32.partialorder %v8172_v62, 0.0  ;;  %vm4212_vm9 = vcmp.ge.f32.partialorder %v8174_v15, 0.0 }
0x1b45   :  { %4122 = vst [vmem:[#allocation2 + $0x63] ss:$4 sm:$0xff] %v4110_v53  ;;  %4102 = vst [vmem:[#allocation2 + $0x62] ss:$4 sm:$0xff] %v4090_v3  ;;  %v4606_v29 = vpack.c.bf16 %v8182_v9, %v8179_v4  ;;  %v4884_v13 = vrot.slane %v8179_v4, 1  ;;  %v4885_v6 = vrot.slane %v8182_v9, 1  ;;  %v4151_v12 = vadd.f32 %v8158_v41, %v4129_v14 }
0x1b46   :  { %v4227_v8 = vmul.f32 0.1, %v8172_v62  ;;  %v4228_v5 = vmul.f32 0.1, %v8174_v15  ;;  %vm4165_vm0 = vcmp.ge.f32.partialorder %v4149_v16, 0.0  ;;  %vm4166_vm10 = vcmp.ge.f32.partialorder %v4150_v2, 0.0 }
0x1b47   :  { %7144 = vmatprep.mubr.msk.bf16.mxu1 %vm373_vm8, %v4606_v29  ;;  %v4181_v58 = vmul.f32 0.1, %v4149_v16  ;;  %v4182_v7 = vmul.f32 0.1, %v4150_v2  ;;  %v4152_v21 = vadd.f32 %v8158_v41, %v4130_v18  ;;  %v4886_v27 = vsel %vm259_vm2, %v4884_v13, %v4885_v6 }
0x1b48   :  { %v8194_v17 = vsel %vm4211_vm15, %v8172_v62, %v4227_v8  ;;  %v8197_v44 = vsel %vm4212_vm9, %v8174_v15, %v4228_v5  ;;  %vm4167_vm3 = vcmp.ge.f32.partialorder %v4151_v12, 0.0  ;;  %v4183_v19 = vmul.f32 0.1, %v4151_v12  ;;  %v4131_v22 = vld [vmem:[#allocation2 + $0x40] sm:$0xff]  ;;  %v4132_v49 = vld [vmem:[#allocation2 + $0x48] sm:$0xff]  ;;  %v4133_v48 = vld [vmem:[#allocation2 + $0x50] sm:$0xff] }
0x1b49   :  { %v4607_v10 = vpack.c.bf16 %v8197_v44, %v8194_v17  ;;  %v4889_v23 = vrot.slane %v8197_v44, 1  ;;  %v4887_v30 = vrot.slane %v8194_v17, 1  ;;  %v8208_v24 = vsel %vm4165_vm0, %v4149_v16, %v4181_v58  ;;  %v4134_v29 = vld [vmem:[#allocation2 + $0x58] sm:$0xff] }
0x1b4a   :  { %v8210_v20 = vsel %vm4166_vm10, %v4150_v2, %v4182_v7  ;;  %vm4213_vm11 = vcmp.ge.f32.partialorder %v8208_v24, 0.0  ;;  %v4229_v47 = vmul.f32 0.1, %v8208_v24  ;;  %vm4168_vm4 = vcmp.ge.f32.partialorder %v4152_v21, 0.0 }
0x1b4b   :  { %7145 = vmatmul.mubr.msk.bf16.vlgmr.msra.gmra.mxu1 %vm373_vm8, %v4607_v10  ;;  %vm4214_vm12 = vcmp.ge.f32.partialorder %v8210_v20, 0.0  ;;  %v4230_v25 = vmul.f32 0.1, %v8210_v20  ;;  %v4888_v32 = vsel %vm259_vm2, %v4885_v6, %v4887_v30  ;;  %v4184_v35 = vmul.f32 0.1, %v4152_v21 }
0x1b4c   :  { %7161 = vmatpush3.bf16.msra.mxu1 %v8153_v26  ;;  %v4997_v36 = vpack.c.bf16 %v4888_v32, %v4886_v27  ;;  %v8220_v39 = vsel %vm4213_vm11, %v8208_v24, %v4229_v47  ;;  %v4890_v26 = vsel %vm259_vm2, %v4887_v30, %v4889_v23  ;;  %v8233_v43 = vsel %vm4167_vm3, %v4151_v12, %v4183_v19  ;;  %v4135_v8 = vld [vmem:[#allocation2 + $0x60] sm:$0xff]  ;;  %v4136_v27 = vld [vmem:[#allocation2 + $0x68] sm:$0xff] }
0x1b4d   :  { %v8223_v40 = vsel %vm4214_vm12, %v8210_v20, %v4230_v25  ;;  %7162 = vmatprep.subr.bf16.mxu1 %v7417_v31  ;;  %v4891_v57 = vrot.slane %v8220_v39, 1  ;;  %v8235_v45 = vsel %vm4168_vm4, %v4152_v21, %v4184_v35  ;;  %v4153_v38 = vadd.f32 %v8158_v41, %v4131_v22 }
0x1b4e   :  { %v4608_v54 = vpack.c.bf16 %v8223_v40, %v8220_v39  ;;  %7184 = vmatprep.mubr.msk.bf16.mxu0 %vm373_vm8, %v4997_v36  ;;  %v4893_v0 = vrot.slane %v8223_v40, 1  ;;  %vm4215_vm5 = vcmp.ge.f32.partialorder %v8233_v43, 0.0  ;;  %v4231_v60 = vmul.f32 0.1, %v8233_v43 }
0x1b4f   :  { %v4892_v52 = vsel %vm259_vm2, %v4889_v23, %v4891_v57  ;;  %vm4216_vm6 = vcmp.ge.f32.partialorder %v8235_v45, 0.0  ;;  %v4232_v33 = vmul.f32 0.1, %v8235_v45  ;;  %v4154_v63 = vadd.f32 %v8158_v41, %v4132_v49  ;;  %v4137_v49 = vld [vmem:[#allocation2 + $0x70] sm:$0xff] }
0x1b50   :  { %7148 = vmatprep.mubr.msk.bf16.mxu1 %vm373_vm8, %v4608_v54  ;;  %7163 = vmatpush3.bf16.msra.mxu1 %v7417_v31  ;;  %v4998_v37 = vpack.c.bf16 %v4892_v52, %v4890_v26  ;;  %v4894_v34 = vsel %vm259_vm2, %v4891_v57, %v4893_v0  ;;  %v8247_v28 = vsel %vm4215_vm5, %v8233_v43, %v4231_v60  ;;  %vm4169_vm13 = vcmp.ge.f32.partialorder %v4153_v38, 0.0 }
0x1b51   :  { %v4185_v51 = vmul.f32 0.1, %v4153_v38  ;;  %v4155_v55 = vadd.f32 %v8158_v41, %v4133_v48  ;;  %v4895_v59 = vrot.slane %v8247_v28, 1  ;;  %v8253_v61 = vsel %vm4216_vm6, %v8235_v45, %v4232_v33  ;;  %v4138_v48 = vld [vmem:[#allocation2 + $0x78] sm:$0xff] }
0x1b52   :  { %7185 = vmatmul.mubr.msk.bf16.vlgmr.msra.gmra.mxu0 %vm373_vm8, %v4998_v37  ;;  %vm4170_vm14 = vcmp.ge.f32.partialorder %v4154_v63, 0.0  ;;  %v4186_v16 = vmul.f32 0.1, %v4154_v63  ;;  %v4609_v2 = vpack.c.bf16 %v8253_v61, %v8247_v28  ;;  %v4391_v3 = vand.u32 63, %v4329_v42 }
0x1b53   :  { %v8257_v53 = vsel %vm4169_vm13, %v4153_v38, %v4185_v51  ;;  %v4896_v14 = vsel %vm259_vm2, %v4893_v0, %v4895_v59  ;;  %v4897_v58 = vrot.slane %v8253_v61, 1  ;;  %v4156_v21 = vadd.f32 %v8158_v41, %v4134_v29 }
0x1b54   :  { %v8260_v18 = vsel %vm4170_vm14, %v4154_v63, %v4186_v16  ;;  %vm4217_vm15 = vcmp.ge.f32.partialorder %v8257_v53, 0.0  ;;  %v4233_v6 = vmul.f32 0.1, %v8257_v53  ;;  %v4999_v5 = vpack.c.bf16 %v4896_v14, %v4894_v34  ;;  %7149 = vmatmul.mubr.msk.bf16.gmra.mxu1 %vm373_vm8, %v4609_v2 }
0x1b55   :  { %vm4218_vm9 = vcmp.ge.f32.partialorder %v8260_v18, 0.0  ;;  %v4234_v7 = vmul.f32 0.1, %v8260_v18  ;;  %vm4171_vm0 = vcmp.ge.f32.partialorder %v4155_v55, 0.0  ;;  %v4187_v10 = vmul.f32 0.1, %v4155_v55 }
0x1b56   :  { %v8269_v12 = vsel %vm4217_vm15, %v8257_v53, %v4233_v6  ;;  %7188 = vmatprep.mubr.msk.bf16.mxu0 %vm373_vm8, %v4999_v5  ;;  %vm8277_vm10 = vcmp.lt.s32.totalorder %v4391_v3, 63  ;;  %v4157_v47 = vadd.f32 %v8158_v41, %v4135_v8  ;;  %vm4172_vm11 = vcmp.ge.f32.partialorder %v4156_v21, 0.0 }
0x1b57   :  { %v8274_v31 = vsel %vm4218_vm9, %v8260_v18, %v4234_v7  ;;  %v4899_v23 = vrot.slane %v8269_v12, 1  ;;  %v4188_v22 = vmul.f32 0.1, %v4156_v21  ;;  %v8286_v36 = vsel %vm4171_vm0, %v4155_v55, %v4187_v10 }
0x1b58   :  { %v4610_v25 = vpack.c.bf16 %v8274_v31, %v8269_v12  ;;  %v4901_v32 = vrot.slane %v8274_v31, 1  ;;  %9005 = vst [vmem:[#allocation6_spill] sm:$0xff] %v8286_v36  ;;  %v4158_v35 = vadd.f32 %v8158_v41, %v4136_v27  ;;  %v4898_v54 = vsel %vm259_vm2, %v4895_v59, %v4897_v58 }
0x1b59   :  { %v4900_v19 = vsel %vm259_vm2, %v4897_v58, %v4899_v23  ;;  %vm4219_vm12 = vcmp.ge.f32.partialorder %v8286_v36, 0.0  ;;  %v4235_v26 = vmul.f32 0.1, %v8286_v36  ;;  %v8295_v0 = vsel %vm4172_vm11, %v4156_v21, %v4188_v22 }
0x1b5a   :  { %7152 = vmatprep.mubr.msk.bf16.mxu1 %vm373_vm8, %v4610_v25  ;;  %v4988_v57 = vsel %vm8277_vm10, %v4900_v19, 0.0  ;;  %v4902_v38 = vsel %vm259_vm2, %v4899_v23, %v4901_v32  ;;  %vm4173_vm3 = vcmp.ge.f32.partialorder %v4157_v47, 0.0  ;;  %vm4220_vm4 = vcmp.ge.f32.partialorder %v8295_v0, 0.0 }
0x1b5b   :  { %v5000_v42 = vpack.c.bf16 %v4988_v57, %v4898_v54  ;;  %v4236_v52 = vmul.f32 0.1, %v8295_v0  ;;  %v8301_v60 = vsel %vm4219_vm12, %v8286_v36, %v4235_v26  ;;  %v4189_v37 = vmul.f32 0.1, %v4157_v47 }
0x1b5c   :  { %v4903_v34 = vrot.slane %v8301_v60, 1  ;;  %vm4174_vm5 = vcmp.ge.f32.partialorder %v4158_v35, 0.0  ;;  %v4190_v33 = vmul.f32 0.1, %v4158_v35  ;;  %v4159_v63 = vadd.f32 %v8158_v41, %v4137_v49 }
0x1b5d   :  { %7189 = vmatmul.mubr.msk.bf16.gmra.mxu0 %vm373_vm8, %v5000_v42  ;;  %v8307_v51 = vsel %vm4220_vm4, %v8295_v0, %v4236_v52  ;;  %v8309_v55 = vsel %vm4173_vm3, %v4157_v47, %v4189_v37  ;;  %v4160_v59 = vadd.f32 %v8158_v41, %v4138_v48  ;;  %v4337_v29 = vadd.s32 120, %v7610_v1 }
0x1b5e   :  { %v4611_v16 = vpack.c.bf16 %v8307_v51, %v8301_v60  ;;  %v4905_v2 = vrot.slane %v8307_v51, 1  ;;  %v4904_v3 = vsel %vm259_vm2, %v4901_v32, %v4903_v34  ;;  %v8317_v6 = vsel %vm4174_vm5, %v4158_v35, %v4190_v33 }
0x1b5f   :  { %v5001_v14 = vpack.c.bf16 %v4904_v3, %v4902_v38  ;;  %9006 = vst [vmem:[#allocation7_spill] sm:$0xff] %v8317_v6  ;;  %vm4221_vm6 = vcmp.ge.f32.partialorder %v8309_v55, 0.0  ;;  %v4237_v8 = vmul.f32 0.1, %v8309_v55  ;;  %vm4222_vm13 = vcmp.ge.f32.partialorder %v8317_v6, 0.0 }
0x1b60   :  { %7153 = vmatmul.mubr.msk.bf16.gmra.mxu1 %vm373_vm8, %v4611_v16  ;;  %v4238_v41 = vmul.f32 0.1, %v8317_v6  ;;  %vm4175_vm14 = vcmp.ge.f32.partialorder %v4159_v63, 0.0  ;;  %vm4176_vm15 = vcmp.ge.f32.partialorder %v4160_v59, 0.0  ;;  %v4191_v58 = vmul.f32 0.1, %v4159_v63 }
0x1b61   :  { %7192 = vmatprep.mubr.msk.bf16.mxu0 %vm373_vm8, %v5001_v14  ;;  %v8326_v5 = vsel %vm4221_vm6, %v8309_v55, %v4237_v8  ;;  %v4192_v7 = vmul.f32 0.1, %v4160_v59  ;;  %v4342_v27 = vand.u32 63, %v7610_v1  ;;  %v4447_v23 = vand.u32 63, %v4337_v29 }
0x1b62   :  { %v8329_v21 = vsel %vm4222_vm13, %v8317_v6, %v4238_v41  ;;  %v4907_v10 = vrot.slane %v8326_v5, 1  ;;  %v4906_v32 = vsel %vm259_vm2, %v4903_v34, %v4905_v2  ;;  %v8337_v19 = vsel %vm4175_vm14, %v4159_v63, %v4191_v58 }
0x1b63   :  { %v4612_v47 = vpack.c.bf16 %v8329_v21, %v8326_v5  ;;  %v4909_v25 = vrot.slane %v8329_v21, 1  ;;  %v8340_v35 = vsel %vm4176_vm15, %v4160_v59, %v4192_v7  ;;  %vm4223_vm9 = vcmp.ge.f32.partialorder %v8337_v19, 0.0 }
0x1b64   :  { %v4908_v22 = vsel %vm259_vm2, %v4905_v2, %v4907_v10  ;;  %v4239_v54 = vmul.f32 0.1, %v8337_v19  ;;  %vm4224_vm0 = vcmp.ge.f32.partialorder %v8340_v35, 0.0  ;;  %v4240_v26 = vmul.f32 0.1, %v8340_v35 }
0x1b65   :  { %7156 = vmatprep.mubr.msk.bf16.mxu1 %vm373_vm8, %v4612_v47  ;;  %v5002_v57 = vpack.c.bf16 %v4908_v22, %v4906_v32  ;;  %v4279_v49 = vrot.slane %v8179_v4, 7  ;;  %vm8351_vm11 = vcmp.ge.s32.totalorder %v4342_v27, 1  ;;  %vm8355_vm12 = vcmp.lt.s32.totalorder %v4447_v23, 63 }
0x1b66   :  { %v8349_v42 = vsel %vm4223_vm9, %v8337_v19, %v4239_v54  ;;  %v4280_v52 = vrot.slane %v8182_v9, 7  ;;  %v8362_v37 = vsel %vm4224_vm0, %v8340_v35, %v4240_v26  ;;  %v4910_v33 = vsel %vm259_vm2, %v4907_v10, %v4909_v25 }
0x1b67   :  { %7193 = vmatmul.mubr.msk.bf16.gmra.mxu0 %vm373_vm8, %v5002_v57  ;;  %v4911_v34 = vrot.slane %v8349_v42, 1  ;;  %v4282_v63 = vrot.slane %v8194_v17, 7  ;;  %v4262_v59 = vrot.slane %v8362_v37, 7  ;;  %v4613_v16 = vpack.c.bf16 %v8362_v37, %v8349_v42 }
0x1b68   :  { %v4913_v2 = vrot.slane %v8362_v37, 1  ;;  %v4284_v9 = vrot.slane %v8197_v44, 7  ;;  %v4286_v3 = vrot.slane %v8220_v39, 7  ;;  %v4288_v29 = vrot.slane %v8223_v40, 7 }
0x1b69   :  { %v4912_v14 = vsel %vm259_vm2, %v4909_v25, %v4911_v34  ;;  %7157 = vmatmul.mubr.msk.bf16.gmra.mxu1 %vm373_vm8, %v4613_v16  ;;  %v4325_v17 = vsel %vm47_vm1, %v4262_v59, %v4279_v49  ;;  %v4281_v7 = vsel %vm47_vm1, %v4279_v49, %v4280_v52  ;;  %v4330_v40 = vadd.s32 64, %v7610_v1 }
0x1b6a   :  { %v5003_v8 = vpack.c.bf16 %v4912_v14, %v4910_v33  ;;  %v4914_v41 = vsel %vm259_vm2, %v4911_v34, %v4913_v2  ;;  %v4932_v58 = vsel %vm259_vm2, %v4913_v2, %v4884_v13  ;;  %v4578_v44 = vsel %vm8351_vm11, %v4325_v17, 0.0 }
0x1b6b   :  { %v4996_v39 = vsel %vm8355_vm12, %v4932_v58, 0.0  ;;  %v4594_v10 = vpack.c.bf16 %v4281_v7, %v4578_v44  ;;  %v4283_v23 = vsel %vm47_vm1, %v4280_v52, %v4282_v63  ;;  %v4285_v4 = vsel %vm47_vm1, %v4282_v63, %v4284_v9  ;;  %v7419_v58 = vld [vmem:[#allocation3 + $0x348] sm:$0xff]   ;;  %v7420_v7 = vld [vmem:[#allocation3 + $0x340] sm:$0xff]   ;;  %v7422_v44 = vld [vmem:[#allocation3 + $0x338] sm:$0xff]  }
0x1b6c   :  { %7196 = vmatprep.mubr.msk.bf16.mxu0 %vm373_vm8, %v5003_v8  ;;  %v5004_v27 = vpack.c.bf16 %v4996_v39, %v4914_v41  ;;  %v4287_v13 = vsel %vm47_vm1, %v4284_v9, %v4286_v3  ;;  %v4289_v47 = vsel %vm47_vm1, %v4286_v3, %v4288_v29  ;;  %v4294_v25 = vrot.slane %v8269_v12, 7  ;;  %v7418_v41 = vld [vmem:[#allocation3 + $0x350] sm:$0xff]   ;;  %7220 = vmatprep.subr.bf16.mxu0 %v7420_v7 }
0x1b6d   :  { %7164 = vmatprep.mubr.msk.bf16.mxu1 %vm373_vm8, %v4594_v10  ;;  %v4398_v32 = vand.u32 63, %v4330_v40  ;;  %v4595_v1 = vpack.c.bf16 %v4285_v4, %v4283_v23  ;;  %v4292_v22 = vrot.slane %v8253_v61, 7  ;;  %v4596_v54 = vpack.c.bf16 %v4289_v47, %v4287_v13  ;;  %7200 = vmatprep.subr.bf16.mxu1 %v7418_v41 }
0x1b6e   :  { %v4290_v57 = vrot.slane %v8247_v28, 7  ;;  %v4296_v26 = vrot.slane %v8274_v31, 7  ;;  %v4298_v34 = vrot.slane %v8301_v60, 7  ;;  %v4300_v33 = vrot.slane %v8307_v51, 7  ;;  %7221 = vmatpush3.bf16.msra.mxu0 %v7420_v7 }
0x1b6f   :  { %7197 = vmatmul.mubr.msk.bf16.gmra.mxu0 %vm373_vm8, %v5004_v27  ;;  %v4295_v49 = vsel %vm47_vm1, %v4292_v22, %v4294_v25  ;;  %vm8401_vm3 = vcmp.ge.s32.totalorder %v4398_v32, 1  ;;  %v4302_v16 = vrot.slane %v8326_v5, 7  ;;  %v4304_v2 = vrot.slane %v8329_v21, 7  ;;  %7222 = vmatprep.subr.bf16.mxu0 %v7422_v44 }
0x1b70   :  { %v4291_v12 = vsel %vm47_vm1, %v4288_v29, %v4290_v57  ;;  %v4293_v37 = vsel %vm47_vm1, %v4290_v57, %v4292_v22  ;;  %v4297_v61 = vsel %vm47_vm1, %v4294_v25, %v4296_v26  ;;  %v4586_v28 = vsel %vm8401_vm3, %v4295_v49, 0.0 }
0x1b71   :  { %7165 = vmatmul.mubr.msk.bf16.vlgmr.msra.gmra.mxu1 %vm373_vm8, %v4595_v1  ;;  %v4597_v31 = vpack.c.bf16 %v4293_v37, %v4291_v12  ;;  %v4598_v63 = vpack.c.bf16 %v4297_v61, %v4586_v28  ;;  %v4299_v9 = vsel %vm47_vm1, %v4296_v26, %v4298_v34  ;;  %v4301_v3 = vsel %vm47_vm1, %v4298_v34, %v4300_v33 }
0x1b72   :  { %7168 = vmatprep.mubr.msk.bf16.mxu1 %vm373_vm8, %v4596_v54  ;;  %v4303_v29 = vsel %vm47_vm1, %v4300_v33, %v4302_v16  ;;  %v4305_v14 = vsel %vm47_vm1, %v4302_v16, %v4304_v2  ;;  %v4599_v60 = vpack.c.bf16 %v4301_v3, %v4299_v9  ;;  %v4306_v51 = vrot.slane %v8349_v42, 7  ;;  %7201 = vmatpush3.bf16.msra.mxu1 %v7418_v41  ;;  %v8426_v42 = vld [vmem:[#allocation3 + $0x360] sm:$0xff]  }
0x1b73   :  { %v4600_v8 = vpack.c.bf16 %v4305_v14, %v4303_v29  ;;  %7202 = vmatprep.subr.bf16.mxu1 %v7419_v58  ;;  %7223 = vmatpush3.bf16.msra.mxu0 %v7422_v44 }
0x1b74   :  { %v4307_v5 = vsel %vm47_vm1, %v4304_v2, %v4306_v51  ;;  %v4308_v21 = vsel %vm47_vm1, %v4306_v51, %v4262_v59  ;;  %7260 = vmatprep.subr.bf16.mxu0 %v8991_v46 }
0x1b75   :  { %v4601_v17 = vpack.c.bf16 %v4308_v21, %v4307_v5 }
0x1b76   :  { %7203 = vmatpush3.bf16.msra.mxu1 %v7419_v58 }
0x1b77   :  { %7240 = vmatprep.subr.bf16.mxu1 %v8426_v42 }
0x1b79   :  { %7169 = vmatmul.mubr.msk.bf16.gmra.mxu1 %vm373_vm8, %v4597_v31 }
0x1b7a   :  { %7172 = vmatprep.mubr.msk.bf16.mxu1 %vm373_vm8, %v4598_v63  ;;  %v5154_v63 = vld [vmem:[#allocation3 + $0x330] sm:$0x1] }
0x1b7b   :  { %v5155_v29 = vunpack.c.l.bf16 %v5154_v63 }
0x1b7d   :  { %v8447_v58 = vrot.slane %v5155_v29, %v7681_v56 }
0x1b81   :  { %7173 = vmatmul.mubr.msk.bf16.gmra.mxu1 %vm373_vm8, %v4599_v60 }
0x1b82   :  { %7176 = vmatprep.mubr.msk.bf16.mxu1 %vm373_vm8, %v4600_v8 }
0x1b89   :  { %7177 = vmatmul.mubr.msk.bf16.gmra.mxu1 %vm373_vm8, %v4601_v17 }
0x1c0b   :  { %v7146_v59 = vpop.f32.mrf.mxu1 }
0x1c0d   :  { %v4684_v39 = vpop.f32.mrf.mxu1 }
0x1c0f   :  { %v7147_v40 = vpop.f32.mrf.mxu1 }
0x1c11   :  { %v4687_v10 = vpop.f32.mrf.mxu1 }
0x1c12   :  { %v7186_v13 = vpop.f32.mrf.mxu0 }
0x1c14   :  { %v7150_v27 = vpop.f32.mrf.mxu1  ;;  %v5075_v25 = vpop.f32.mrf.mxu0 }
0x1c16   :  { %v4700_v23 = vpop.f32.mrf.mxu1  ;;  %v7187_v1 = vpop.f32.mrf.mxu0 }
0x1c18   :  { %v7151_v4 = vpop.f32.mrf.mxu1  ;;  %v5078_v57 = vpop.f32.mrf.mxu0 }
0x1c1a   :  { %v4703_v47 = vpop.f32.mrf.mxu1 }
0x1c1d   :  { %v7190_v49 = vpop.f32.mrf.mxu0 }
0x1c1f   :  { %v5091_v61 = vpop.f32.mrf.mxu0 }
0x1c20   :  { %v8430_v32 = vpop.f32.mrf.mxu1 }
0x1c21   :  { %v7191_v34 = vpop.f32.mrf.mxu0 }
0x1c22   :  { %v4716_v22 = vpop.f32.mrf.mxu1 }
0x1c23   :  { %v5094_v2 = vpop.f32.mrf.mxu0 }
0x1c24   :  { %v8432_v54 = vpop.f32.mrf.mxu1 }
0x1c26   :  { %v8434_v26 = vpop.f32.mrf.mxu1 }
0x1c27   :  { %v8444_v8 = vpop.f32.mrf.mxu0 }
0x1c29   :  { %v8436_v12 = vpop.f32.mrf.mxu1  ;;  %v5107_v36 = vpop.f32.mrf.mxu0 }
0x1c2b   :  { %v8438_v37 = vpop.f32.mrf.mxu1 }
0x1c2d   :  { %v8440_v28 = vpop.f32.mrf.mxu1 }
0x1c2f   :  { %v8442_v31 = vpop.f32.mrf.mxu1 }
0x1c31   :  { %v7166_v33 = vpop.f32.mrf.mxu1 }
0x1c32   :  { %v4826_v3 = vadd.f32 %v7166_v33, %v7146_v59 }
0x1c33   :  { %v4817_v16 = vpop.f32.mrf.mxu1 }
0x1c34   :  { %v4818_v14 = vadd.f32 %v4817_v16, %v4684_v39  ;;  %v5140_v41 = vadd.f32 %v7186_v13, %v4826_v3  ;;  %v7195_v16 = vpop.f32.mrf.mxu0 }
0x1c35   :  { %v7167_v9 = vpop.f32.mrf.mxu1 }
0x1c36   :  { %v4829_v60 = vadd.f32 %v7167_v9, %v7147_v40  ;;  %v5138_v7 = vadd.f32 %v5075_v25, %v4818_v14  ;;  %v5162_v33 = vadd.f32 %v8447_v58, %v5140_v41 }
0x1c37   :  { %v4820_v51 = vpop.f32.mrf.mxu1 }
0x1c38   :  { %v5141_v5 = vadd.f32 %v7187_v1, %v4829_v60  ;;  %v4821_v21 = vadd.f32 %v4820_v51, %v4687_v10  ;;  %v5160_v1 = vadd.f32 %v8447_v58, %v5138_v7  ;;  %v5194_v60 = vmul.f32 0.1, %v5162_v33 }
0x1c39   :  { %v7170_v17 = vpop.f32.mrf.mxu1  ;;  %vm5178_vm6 = vcmp.ge.f32.partialorder %v5162_v33, 0.0 }
0x1c3a   :  { %v5139_v44 = vadd.f32 %v5078_v57, %v4821_v21  ;;  %v5163_v6 = vadd.f32 %v8447_v58, %v5141_v5  ;;  %v4842_v10 = vadd.f32 %v7170_v17, %v7150_v27  ;;  %v5192_v51 = vmul.f32 0.1, %v5160_v1  ;;  %v5110_v27 = vpop.f32.mrf.mxu0 }
0x1c3b   :  { %v4833_v46 = vpop.f32.mrf.mxu1  ;;  %vm5176_vm13 = vcmp.ge.f32.partialorder %v5160_v1, 0.0  ;;  %v8459_v41 = vsel %vm5178_vm6, %v5162_v33, %v5194_v60 }
0x1c3c   :  { %v5161_v59 = vadd.f32 %v8447_v58, %v5139_v44  ;;  %v4834_v39 = vadd.f32 %v4833_v46, %v4700_v23  ;;  %v5195_v9 = vmul.f32 0.1, %v5163_v6  ;;  %vm5179_vm4 = vcmp.ge.f32.partialorder %v5163_v6, 0.0 }
0x1c3d   :  { %v7171_v40 = vpop.f32.mrf.mxu1  ;;  %v5144_v46 = vadd.f32 %v7190_v49, %v4842_v10  ;;  %v8461_v7 = vsel %vm5176_vm13, %v5160_v1, %v5192_v51 }
0x1c3e   :  { %v4845_v63 = vadd.f32 %v7171_v40, %v7151_v4  ;;  %v5193_v25 = vmul.f32 0.1, %v5161_v59  ;;  %v5142_v57 = vadd.f32 %v5091_v61, %v4834_v39  ;;  %vm5177_vm5 = vcmp.ge.f32.partialorder %v5161_v59, 0.0 }
0x1c3f   :  { %v4836_v13 = vpop.f32.mrf.mxu1  ;;  %v8454_v4 = vsel %vm5179_vm4, %v5163_v6, %v5195_v9  ;;  %v5166_v49 = vadd.f32 %v8447_v58, %v5144_v46 }
0x1c40   :  { %v5145_v3 = vadd.f32 %v7191_v34, %v4845_v63  ;;  %v4837_v29 = vadd.f32 %v4836_v13, %v4703_v47  ;;  %v8456_v34 = vsel %vm5177_vm5, %v5161_v59, %v5193_v25  ;;  %v5164_v61 = vadd.f32 %v8447_v58, %v5142_v57  ;;  %v7198_v59 = vpop.f32.mrf.mxu0  ;;  %v7423_v63 = vld [vmem:[#allocation3 + $0x358] sm:$0xff]  }
0x1c41   :  { %v7174_v14 = vpop.f32.mrf.mxu1  ;;  %v5322_v44 = vpack.c.bf16 %v8454_v4, %v8459_v41  ;;  %v5321_v10 = vpack.c.bf16 %v8456_v34, %v8461_v7  ;;  %v5198_v25 = vmul.f32 0.1, %v5166_v49  ;;  %vm5182_vm0 = vcmp.ge.f32.partialorder %v5166_v49, 0.0 }
0x1c42   :  { %v5167_v23 = vadd.f32 %v8447_v58, %v5145_v3  ;;  %v5143_v21 = vadd.f32 %v5094_v2, %v4837_v29  ;;  %v4858_v2 = vadd.f32 %v7174_v14, %v8430_v32  ;;  %v5196_v13 = vmul.f32 0.1, %v5164_v61  ;;  %v5123_v29 = vpop.f32.mrf.mxu0 }
0x1c43   :  { %v4849_v5 = vpop.f32.mrf.mxu1  ;;  %vm5180_vm9 = vcmp.ge.f32.partialorder %v5164_v61, 0.0  ;;  %7204 = vmatprep.mubr.msk.bf16.mxu1 %vm373_vm8, %v5321_v10 }
0x1c44   :  { %v4850_v17 = vadd.f32 %v4849_v5, %v4716_v22  ;;  %v5199_v39 = vmul.f32 0.1, %v5167_v23  ;;  %v5165_v6 = vadd.f32 %v8447_v58, %v5143_v21  ;;  %vm5183_vm14 = vcmp.ge.f32.partialorder %v5167_v23, 0.0  ;;  %7205 = vmatmul.mubr.msk.bf16.vlgmr.msra.gmra.mxu1 %vm373_vm8, %v5322_v44 }
0x1c45   :  { %v7175_v47 = vpop.f32.mrf.mxu1  ;;  %v5148_v14 = vadd.f32 %v8444_v8, %v4858_v2  ;;  %7241 = vmatpush3.bf16.msra.mxu1 %v8426_v42  ;;  %v8481_v51 = vsel %vm5180_vm9, %v5164_v61, %v5196_v13  ;;  %v8484_v21 = vsel %vm5182_vm0, %v5166_v49, %v5198_v25  ;;  %v7199_v42 = vpop.f32.mrf.mxu0 }
0x1c46   :  { %v5146_v40 = vadd.f32 %v5107_v36, %v4850_v17  ;;  %v4861_v33 = vadd.f32 %v7175_v47, %v8432_v54  ;;  %vm5181_vm15 = vcmp.ge.f32.partialorder %v5165_v6, 0.0  ;;  %v5197_v9 = vmul.f32 0.1, %v5165_v6  ;;  %7242 = vmatprep.subr.bf16.mxu1 %v7423_v63 }
0x1c47   :  { %v4852_v22 = vpop.f32.mrf.mxu1  ;;  %v5170_v61 = vadd.f32 %v8447_v58, %v5148_v14  ;;  %v5126_v10 = vpop.f32.mrf.mxu0 }
0x1c48   :  { %v4853_v1 = vadd.f32 %v4852_v22, %v8434_v26  ;;  %v8473_v32 = vsel %vm5181_vm15, %v5165_v6, %v5197_v9  ;;  %v5149_v36 = vadd.f32 %v7195_v16, %v4861_v33  ;;  %v8476_v26 = vsel %vm5183_vm14, %v5167_v23, %v5199_v39 }
0x1c49   :  { %v7178_v3 = vpop.f32.mrf.mxu1  ;;  %v5168_v60 = vadd.f32 %v8447_v58, %v5146_v40  ;;  %v5323_v23 = vpack.c.bf16 %v8473_v32, %v8481_v51  ;;  %v5324_v8 = vpack.c.bf16 %v8476_v26, %v8484_v21  ;;  %7243 = vmatpush3.bf16.msra.mxu1 %v7423_v63  ;;  %v9013_v6 = vmov 0.0  }
0x1c4a   :  { %v5147_v57 = vadd.f32 %v5110_v27, %v4853_v1  ;;  %v5171_v16 = vadd.f32 %v8447_v58, %v5149_v36  ;;  %v4874_v44 = vadd.f32 %v7178_v3, %v8436_v12  ;;  %7280 = vmatprep.subr.bf16.mxu1 %v9013_v6  ;;  %vm5186_vm13 = vcmp.ge.f32.partialorder %v5170_v61, 0.0 }
0x1c4b   :  { %v4865_v54 = vpop.f32.mrf.mxu1  ;;  %v5200_v47 = vmul.f32 0.1, %v5168_v60  ;;  %7208 = vmatprep.mubr.msk.bf16.mxu1 %vm373_vm8, %v5323_v23  ;;  %vm5184_vm5 = vcmp.ge.f32.partialorder %v5168_v60, 0.0  ;;  %v5202_v12 = vmul.f32 0.1, %v5170_v61  ;;  %v5249_v36 = vrot.slane %v8459_v41, 7 }
0x1c4c   :  { %v5169_v46 = vadd.f32 %v8447_v58, %v5147_v57  ;;  %v4866_v27 = vadd.f32 %v4865_v54, %v8438_v37  ;;  %v5203_v2 = vmul.f32 0.1, %v5171_v16  ;;  %vm5187_vm6 = vcmp.ge.f32.partialorder %v5171_v16, 0.0  ;;  %7209 = vmatmul.mubr.msk.bf16.gmra.mxu1 %vm373_vm8, %v5324_v8 }
0x1c4d   :  { %v7179_v5 = vpop.f32.mrf.mxu1  ;;  %v8501_v33 = vsel %vm5184_vm5, %v5168_v60, %v5200_v47  ;;  %v5152_v1 = vadd.f32 %v7198_v59, %v4874_v44  ;;  %v8512_v57 = vsel %vm5186_vm13, %v5170_v61, %v5202_v12  ;;  %v5602_v54 = vrot.slane %v8459_v41, 1 }
0x1c4e   :  { %vm5185_vm4 = vcmp.ge.f32.partialorder %v5169_v46, 0.0  ;;  %v5201_v49 = vmul.f32 0.1, %v5169_v46  ;;  %v5150_v37 = vadd.f32 %v5123_v29, %v4866_v27  ;;  %v4877_v39 = vadd.f32 %v7179_v5, %v8440_v28 }
0x1c4f   :  { %v4868_v17 = vpop.f32.mrf.mxu1  ;;  %v8506_v3 = vsel %vm5187_vm6, %v5171_v16, %v5203_v2  ;;  %v5174_v59 = vadd.f32 %v8447_v58, %v5152_v1  ;;  %v5246_v5 = vrot.slane %v8461_v7, 7  ;;  %v5599_v16 = vrot.slane %v8461_v7, 1 }
0x1c50   :  { %v4869_v22 = vadd.f32 %v4868_v17, %v8442_v31  ;;  %v8498_v40 = vsel %vm5185_vm4, %v5169_v46, %v5201_v49  ;;  %v5172_v63 = vadd.f32 %v8447_v58, %v5150_v37  ;;  %v5153_v13 = vadd.f32 %v7199_v42, %v4877_v39 }
0x1c51   :  { %v5325_v9 = vpack.c.bf16 %v8498_v40, %v8501_v33  ;;  %v5326_v29 = vpack.c.bf16 %v8506_v3, %v8512_v57  ;;  %v5247_v27 = vrot.slane %v8456_v34, 7  ;;  %v5600_v23 = vrot.slane %v8456_v34, 1 }
0x1c52   :  { %v5151_v28 = vadd.f32 %v5126_v10, %v4869_v22  ;;  %v5175_v31 = vadd.f32 %v8447_v58, %v5153_v13  ;;  %vm5188_vm14 = vcmp.ge.f32.partialorder %v5172_v63, 0.0  ;;  %v5204_v14 = vmul.f32 0.1, %v5172_v63 }
0x1c53   :  { %7212 = vmatprep.mubr.msk.bf16.mxu1 %vm373_vm8, %v5325_v9  ;;  %v5206_v41 = vmul.f32 0.1, %v5174_v59  ;;  %v5251_v42 = vrot.slane %v8454_v4, 7  ;;  %vm5190_vm0 = vcmp.ge.f32.partialorder %v5174_v59, 0.0  ;;  %v5253_v44 = vrot.slane %v8481_v51, 7 }
0x1c54   :  { %v5173_v25 = vadd.f32 %v8447_v58, %v5151_v28  ;;  %vm5191_vm15 = vcmp.ge.f32.partialorder %v5175_v31, 0.0  ;;  %v5207_v60 = vmul.f32 0.1, %v5175_v31  ;;  %7213 = vmatmul.mubr.msk.bf16.gmra.mxu1 %vm373_vm8, %v5326_v29  ;;  %v5255_v58 = vrot.slane %v8473_v32, 7 }
0x1c55   :  { %v8530_v61 = vsel %vm5188_vm14, %v5172_v63, %v5204_v14  ;;  %v5250_v49 = vsel %vm47_vm1, %v5247_v27, %v5249_v36  ;;  %v5601_v39 = vsel %vm259_vm2, %v5599_v16, %v5600_v23  ;;  %v5603_v2 = vsel %vm259_vm2, %v5600_v23, %v5602_v54 }
0x1c56   :  { %vm5189_vm9 = vcmp.ge.f32.partialorder %v5173_v25, 0.0  ;;  %v5205_v46 = vmul.f32 0.1, %v5173_v25  ;;  %v8524_v8 = vsel %vm5191_vm15, %v5175_v31, %v5207_v60  ;;  %v8544_v22 = vsel %vm5190_vm0, %v5174_v59, %v5206_v41 }
0x1c57   :  { %v5229_v47 = vrot.slane %v8524_v8, 7  ;;  %v5248_v10 = vsel %vm47_vm1, %v5246_v5, %v5247_v27  ;;  %v5256_v1 = vsel %vm47_vm1, %v5253_v44, %v5255_v58  ;;  %v5252_v63 = vsel %vm47_vm1, %v5249_v36, %v5251_v42 }
0x1c58   :  { %v8526_v17 = vsel %vm5189_vm9, %v5173_v25, %v5205_v46  ;;  %v5328_v13 = vpack.c.bf16 %v8524_v8, %v8544_v22  ;;  %v5310_v9 = vpack.c.bf16 %v5252_v63, %v5250_v49  ;;  %v5606_v31 = vrot.slane %v8481_v51, 1 }
0x1c59   :  { %v5327_v34 = vpack.c.bf16 %v8526_v17, %v8530_v61  ;;  %v5292_v37 = vsel %vm47_vm1, %v5229_v47, %v5246_v5  ;;  %v5664_v25 = vpack.c.bf16 %v5603_v2, %v5601_v39  ;;  %v5254_v59 = vsel %vm47_vm1, %v5251_v42, %v5253_v44 }
0x1c5a   :  { %v5293_v12 = vsel %vm8351_vm11, %v5292_v37, 0.0  ;;  %v5608_v29 = vrot.slane %v8473_v32, 1  ;;  %v5261_v14 = vrot.slane %v8501_v33, 7  ;;  %v5311_v60 = vpack.c.bf16 %v5256_v1, %v5254_v59 }
0x1c5b   :  { %7216 = vmatprep.mubr.msk.bf16.mxu1 %vm373_vm8, %v5327_v34  ;;  %v5309_v28 = vpack.c.bf16 %v5248_v10, %v5293_v12  ;;  %v5604_v36 = vrot.slane %v8454_v4, 1  ;;  %v5263_v46 = vrot.slane %v8498_v40, 7  ;;  %v5257_v51 = vrot.slane %v8484_v21, 7 }
0x1c5c   :  { %7217 = vmatmul.mubr.msk.bf16.gmra.mxu1 %vm373_vm8, %v5328_v13  ;;  %v5610_v5 = vrot.slane %v8484_v21, 1  ;;  %v5259_v32 = vrot.slane %v8476_v26, 7  ;;  %v5614_v23 = vrot.slane %v8501_v33, 1  ;;  %v5609_v4 = vsel %vm259_vm2, %v5606_v31, %v5608_v29 }
0x1c5d   :  { %7224 = vmatprep.mubr.msk.bf16.mxu0 %vm373_vm8, %v5309_v28  ;;  %7244 = vmatprep.mubr.msk.bf16.mxu1 %vm373_vm8, %v5664_v25  ;;  %v5607_v27 = vsel %vm259_vm2, %v5604_v36, %v5606_v31  ;;  %v5258_v42 = vsel %vm47_vm1, %v5255_v58, %v5257_v51  ;;  %v5605_v34 = vsel %vm259_vm2, %v5602_v54, %v5604_v36  ;;  %v5612_v37 = vrot.slane %v8476_v26, 1 }
0x1c5e   :  { %7225 = vmatmul.mubr.msk.bf16.vlgmr.msra.gmra.mxu0 %vm373_vm8, %v5310_v9  ;;  %v5611_v41 = vsel %vm259_vm2, %v5608_v29, %v5610_v5  ;;  %v5262_v44 = vsel %vm47_vm1, %v5259_v32, %v5261_v14  ;;  %v5264_v21 = vsel %vm47_vm1, %v5261_v14, %v5263_v46  ;;  %v5665_v49 = vpack.c.bf16 %v5607_v27, %v5605_v34 }
0x1c5f   :  { %7228 = vmatprep.mubr.msk.bf16.mxu0 %vm373_vm8, %v5311_v60  ;;  %v5260_v39 = vsel %vm47_vm1, %v5257_v51, %v5259_v32  ;;  %v5666_v2 = vpack.c.bf16 %v5611_v41, %v5609_v4  ;;  %v5301_v33 = vsel %vm8401_vm3, %v5262_v44, 0.0  ;;  %v5616_v12 = vrot.slane %v8498_v40, 1 }
0x1c60   :  { %v5312_v10 = vpack.c.bf16 %v5260_v39, %v5258_v42  ;;  %v5313_v58 = vpack.c.bf16 %v5264_v21, %v5301_v33  ;;  %v5615_v1 = vsel %vm259_vm2, %v5612_v37, %v5614_v23  ;;  %v5271_v54 = vrot.slane %v8526_v17, 7 }
0x1c61   :  { %v5265_v26 = vrot.slane %v8512_v57, 7  ;;  %v5618_v63 = vrot.slane %v8512_v57, 1  ;;  %v5267_v13 = vrot.slane %v8506_v3, 7  ;;  %v5269_v40 = vrot.slane %v8530_v61, 7 }
0x1c62   :  { %v5655_v28 = vsel %vm8277_vm10, %v5615_v1, 0.0  ;;  %v5617_v9 = vsel %vm259_vm2, %v5614_v23, %v5616_v12  ;;  %v5613_v59 = vsel %vm259_vm2, %v5610_v5, %v5612_v37  ;;  %v5622_v60 = vrot.slane %v8530_v61, 1 }
0x1c63   :  { %v5619_v31 = vsel %vm259_vm2, %v5616_v12, %v5618_v63  ;;  %v5266_v25 = vsel %vm47_vm1, %v5263_v46, %v5265_v26  ;;  %v5272_v29 = vsel %vm47_vm1, %v5269_v40, %v5271_v54  ;;  %v5667_v57 = vpack.c.bf16 %v5655_v28, %v5613_v59  ;;  %v5821_v28 = vld [vmem:[#allocation3 + $0x368] sm:$0x1] }
0x1c64   :  { %7245 = vmatmul.mubr.msk.bf16.vlgmr.msra.gmra.mxu1 %vm373_vm8, %v5665_v49  ;;  %v5268_v14 = vsel %vm47_vm1, %v5265_v26, %v5267_v13  ;;  %v5668_v36 = vpack.c.bf16 %v5619_v31, %v5617_v9  ;;  %v5270_v32 = vsel %vm47_vm1, %v5267_v13, %v5269_v40  ;;  %v5624_v27 = vrot.slane %v8526_v17, 1 }
0x1c65   :  { %7248 = vmatprep.mubr.msk.bf16.mxu1 %vm373_vm8, %v5666_v2  ;;  %v5314_v51 = vpack.c.bf16 %v5268_v14, %v5266_v25  ;;  %v5315_v23 = vpack.c.bf16 %v5272_v29, %v5270_v32  ;;  %v5620_v46 = vrot.slane %v8506_v3, 1  ;;  %v5273_v5 = vrot.slane %v8544_v22, 7 }
0x1c66   :  { %7229 = vmatmul.mubr.msk.bf16.gmra.mxu0 %vm373_vm8, %v5312_v10  ;;  %v5626_v4 = vrot.slane %v8544_v22, 1  ;;  %v5628_v41 = vrot.slane %v8524_v8, 1  ;;  %v5625_v17 = vsel %vm259_vm2, %v5622_v60, %v5624_v27  ;;  %v5822_v29 = vunpack.c.l.bf16 %v5821_v28 }
0x1c67   :  { %7232 = vmatprep.mubr.msk.bf16.mxu0 %vm373_vm8, %v5313_v58  ;;  %v5623_v61 = vsel %vm259_vm2, %v5620_v46, %v5622_v60  ;;  %v5274_v3 = vsel %vm47_vm1, %v5271_v54, %v5273_v5  ;;  %v5621_v44 = vsel %vm259_vm2, %v5618_v63, %v5620_v46  ;;  %v5275_v21 = vsel %vm47_vm1, %v5273_v5, %v5229_v47 }
0x1c68   :  { %v5627_v42 = vsel %vm259_vm2, %v5624_v27, %v5626_v4  ;;  %v5669_v34 = vpack.c.bf16 %v5623_v61, %v5621_v44  ;;  %v5316_v49 = vpack.c.bf16 %v5275_v21, %v5274_v3  ;;  %v5647_v37 = vsel %vm259_vm2, %v5628_v41, %v5599_v16 }
0x1c69   :  { %v5670_v22 = vpack.c.bf16 %v5627_v42, %v5625_v17  ;;  %v5629_v39 = vsel %vm259_vm2, %v5626_v4, %v5628_v41  ;;  %v5663_v8 = vsel %vm8355_vm12, %v5647_v37, 0.0  ;;  %v8649_v27 = vrot.slane %v5822_v29, %v7681_v56 }
0x1c6a   :  { %v5671_v47 = vpack.c.bf16 %v5663_v8, %v5629_v39 }
0x1c6c   :  { %7249 = vmatmul.mubr.msk.bf16.gmra.mxu1 %vm373_vm8, %v5667_v57 }
0x1c6d   :  { %7252 = vmatprep.mubr.msk.bf16.mxu1 %vm373_vm8, %v5668_v36 }
0x1c6e   :  { %7233 = vmatmul.mubr.msk.bf16.gmra.mxu0 %vm373_vm8, %v5314_v51 }
0x1c6f   :  { %7236 = vmatprep.mubr.msk.bf16.mxu0 %vm373_vm8, %v5315_v23 }
0x1c74   :  { %7253 = vmatmul.mubr.msk.bf16.gmra.mxu1 %vm373_vm8, %v5669_v34 }
0x1c75   :  { %7256 = vmatprep.mubr.msk.bf16.mxu1 %vm373_vm8, %v5670_v22 }
0x1c76   :  { %7237 = vmatmul.mubr.msk.bf16.gmra.mxu0 %vm373_vm8, %v5316_v49 }
0x1c77   :  { %7276 = vmatprep.mubr.msk.bf16.mxu0 %vm7566_vm7, %v9013_v6 }
0x1c7c   :  { %7257 = vmatmul.mubr.msk.bf16.gmra.mxu1 %vm373_vm8, %v5671_v47 }
0x1c7d   :  { %7296 = vmatprep.mubr.msk.bf16.mxu1 %vm7566_vm7, %v9013_v6 }
0x1d04   :  { %v7206_v7 = vpop.f32.mrf.mxu1 }
0x1d06   :  { %v5399_v16 = vpop.f32.mrf.mxu1 }
0x1d08   :  { %v7207_v2 = vpop.f32.mrf.mxu1 }
0x1d0a   :  { %v5402_v10 = vpop.f32.mrf.mxu1 }
0x1d0c   :  { %v7210_v33 = vpop.f32.mrf.mxu1 }
0x1d0e   :  { %v8632_v12 = vpop.f32.mrf.mxu1 }
0x1d10   :  { %v7211_v58 = vpop.f32.mrf.mxu1 }
0x1d12   :  { %v5418_v1 = vpop.f32.mrf.mxu1 }
0x1d14   :  { %v8634_v54 = vpop.f32.mrf.mxu1 }
0x1d16   :  { %v5431_v26 = vpop.f32.mrf.mxu1 }
0x1d18   :  { %v8636_v63 = vpop.f32.mrf.mxu1 }
0x1d1a   :  { %v8638_v13 = vpop.f32.mrf.mxu1 }
0x1d1c   :  { %v8640_v40 = vpop.f32.mrf.mxu1 }
0x1d1e   :  { %v7226_v9 = vpop.f32.mrf.mxu0  ;;  %v8642_v31 = vpop.f32.mrf.mxu1 }
0x1d1f   :  { %v5541_v25 = vadd.f32 %v7226_v9, %v7206_v7 }
0x1d20   :  { %v5532_v59 = vpop.f32.mrf.mxu0  ;;  %v8644_v57 = vpop.f32.mrf.mxu1 }
0x1d21   :  { %v5533_v14 = vadd.f32 %v5532_v59, %v5399_v16 }
0x1d22   :  { %v7227_v60 = vpop.f32.mrf.mxu0  ;;  %v8646_v36 = vpop.f32.mrf.mxu1 }
0x1d23   :  { %v5544_v51 = vadd.f32 %v7227_v60, %v7207_v2 }
0x1d24   :  { %v5535_v32 = vpop.f32.mrf.mxu0  ;;  %v7246_v46 = vpop.f32.mrf.mxu1 }
0x1d25   :  { %v5536_v23 = vadd.f32 %v5535_v32, %v5402_v10  ;;  %v5807_v5 = vadd.f32 %v7246_v46, %v5541_v25 }
0x1d26   :  { %v7230_v4 = vpop.f32.mrf.mxu0  ;;  %v5742_v61 = vpop.f32.mrf.mxu1 }
0x1d27   :  { %v5829_v41 = vadd.f32 %v8649_v27, %v5807_v5  ;;  %v5805_v17 = vadd.f32 %v5742_v61, %v5533_v14  ;;  %v5557_v49 = vadd.f32 %v7230_v4, %v7210_v33 }
0x1d28   :  { %v5548_v42 = vpop.f32.mrf.mxu0  ;;  %v7247_v3 = vpop.f32.mrf.mxu1 }
0x1d29   :  { %v5808_v44 = vadd.f32 %v7247_v3, %v5544_v51  ;;  %v5845_v22 = vadd.f32 %v5829_v41, %v8172_v62  ;;  %v5827_v60 = vadd.f32 %v8649_v27, %v5805_v17 }
0x1d2a   :  { %v7231_v34 = vpop.f32.mrf.mxu0  ;;  %v5745_v21 = vpop.f32.mrf.mxu1 }
0x1d2b   :  { %v5830_v37 = vadd.f32 %v8649_v27, %v5808_v44  ;;  %v5806_v39 = vadd.f32 %v5745_v21, %v5536_v23  ;;  %v5560_v2 = vadd.f32 %v7231_v34, %v7211_v58  ;;  %v5877_v28 = vmul.f32 0.1, %v5845_v22 }
0x1d2c   :  { %v5551_v56 = vpop.f32.mrf.mxu0  ;;  %v7250_v8 = vpop.f32.mrf.mxu1  ;;  %vm5861_vm5 = vcmp.ge.f32.partialorder %v5845_v22, 0.0  ;;  %v8667_v17 = vadd.f32 %v5827_v60, %v8164_v50 }
0x1d2d   :  { %v5846_v47 = vadd.f32 %v5830_v37, %v8174_v15  ;;  %v5811_v7 = vadd.f32 %v7250_v8, %v5557_v49  ;;  %v5552_v51 = vadd.f32 %v5551_v56, %v5418_v1  ;;  %v8661_v46 = vsel %vm5861_vm5, %v5845_v22, %v5877_v28 }
0x1d2e   :  { %v7234_v16 = vpop.f32.mrf.mxu0  ;;  %v5758_v10 = vpop.f32.mrf.mxu1  ;;  %v5549_v1 = vadd.f32 %v5548_v42, %v8632_v12 }
0x1d2f   :  { %vm5862_vm4 = vcmp.ge.f32.partialorder %v5846_v47, 0.0  ;;  %v5878_v9 = vmul.f32 0.1, %v5846_v47  ;;  %v5833_v25 = vadd.f32 %v8649_v27, %v5811_v7  ;;  %v5573_v7 = vadd.f32 %v7234_v16, %v8634_v54 }
0x1d30   :  { %v5564_v59 = vpop.f32.mrf.mxu0  ;;  %v7251_v62 = vpop.f32.mrf.mxu1  ;;  %v5809_v56 = vadd.f32 %v5758_v10, %v5549_v1 }
0x1d31   :  { %v8656_v33 = vsel %vm5862_vm4, %v5846_v47, %v5878_v9  ;;  %v5812_v29 = vadd.f32 %v7251_v62, %v5560_v2  ;;  %v5849_v32 = vadd.f32 %v5833_v25, %v8233_v43  ;;  %v5565_v41 = vadd.f32 %v5564_v59, %v5431_v26 }
0x1d32   :  { %v7235_v14 = vpop.f32.mrf.mxu0  ;;  %v5761_v15 = vpop.f32.mrf.mxu1  ;;  %v5998_v61 = vpack.c.bf16 %v8656_v33, %v8661_v46  ;;  %v5828_v43 = vadd.f32 %v8649_v27, %v5806_v39  ;;  %v8676_v47 = vmul.f32 0.1, %v8667_v17  ;;  %v5929_v9 = vrot.slane %v8661_v46, 7 }
0x1d33   :  { %v5834_v58 = vadd.f32 %v8649_v27, %v5812_v29  ;;  %v5810_v5 = vadd.f32 %v5761_v15, %v5552_v51  ;;  %v5881_v21 = vmul.f32 0.1, %v5849_v32  ;;  %vm5865_vm13 = vcmp.ge.f32.partialorder %v5849_v32, 0.0 }
0x1d34   :  { %v5567_v23 = vpop.f32.mrf.mxu0  ;;  %v7254_v4 = vpop.f32.mrf.mxu1  ;;  %v5844_v12 = vadd.f32 %v5828_v43, %v8166_v11  ;;  %v5831_v25 = vadd.f32 %v8649_v27, %v5809_v56 }
0x1d35   :  { %v5850_v3 = vadd.f32 %v5834_v58, %v8235_v45  ;;  %v5832_v26 = vadd.f32 %v8649_v27, %v5810_v5  ;;  %v5568_v42 = vadd.f32 %v5567_v23, %v8638_v13  ;;  %v8682_v28 = vsel %vm5865_vm13, %v5849_v32, %v5881_v21 }
0x1d36   :  { %v7238_v44 = vpop.f32.mrf.mxu0  ;;  %v5774_v34 = vpop.f32.mrf.mxu1  ;;  %v5576_v13 = vadd.f32 %v7235_v14, %v8636_v63  ;;  %vm5860_vm14 = vcmp.ge.f32.partialorder %v5844_v12, 0.0  ;;  %v5876_v60 = vmul.f32 0.1, %v5844_v12  ;;  %v5931_v32 = vrot.slane %v8656_v33, 7 }
0x1d37   :  { %vm5866_vm6 = vcmp.ge.f32.partialorder %v5850_v3, 0.0  ;;  %v5882_v22 = vmul.f32 0.1, %v5850_v3  ;;  %v5813_v49 = vadd.f32 %v5774_v34, %v5565_v41  ;;  %v5589_v2 = vadd.f32 %v7238_v44, %v8640_v40 }
0x1d38   :  { %v5580_v37 = vpop.f32.mrf.mxu0  ;;  %v7255_v8 = vpop.f32.mrf.mxu1  ;;  %v5848_v59 = vadd.f32 %v5832_v26, %v8210_v20  ;;  %v8697_v63 = vadd.f32 %v5831_v25, %v8208_v24  ;;  %v5815_v34 = vadd.f32 %v7254_v4, %v5573_v7  ;;  %v8704_v24 = vsel %vm5860_vm14, %v5844_v12, %v5876_v60 }
0x1d39   :  { %v8672_v45 = vsel %vm5866_vm6, %v5850_v3, %v5882_v22  ;;  %v5835_v50 = vadd.f32 %v8649_v27, %v5813_v49  ;;  %v5581_v40 = vadd.f32 %v5580_v37, %v8642_v31  ;;  %v5816_v20 = vadd.f32 %v7255_v8, %v5576_v13 }
0x1d3a   :  { %v5777_v39 = vpop.f32.mrf.mxu1  ;;  %v7239_v10 = vpop.f32.mrf.mxu0  ;;  %v6000_v11 = vpack.c.bf16 %v8672_v45, %v8682_v28  ;;  %vm5864_vm15 = vcmp.ge.f32.partialorder %v5848_v59, 0.0  ;;  %vm5863_vm4 = vcmp.ge.f32.partialorder %v8697_v63, 0.0  ;;  %vm5859_vm13 = vcmp.ge.f32.partialorder %v8667_v17, 0.0 }
0x1d3b   :  { %v5814_v62 = vadd.f32 %v5777_v39, %v5568_v42  ;;  %v5851_v54 = vadd.f32 %v5835_v50, %v8257_v53  ;;  %v5592_v58 = vadd.f32 %v7239_v10, %v8644_v57  ;;  %v5880_v53 = vmul.f32 0.1, %v5848_v59 }
0x1d3c   :  { %v7258_v29 = vpop.f32.mrf.mxu1  ;;  %v5583_v23 = vpop.f32.mrf.mxu0  ;;  %v5838_v49 = vadd.f32 %v8649_v27, %v5816_v20  ;;  %v5837_v50 = vadd.f32 %v8649_v27, %v5815_v34  ;;  %v5939_v10 = vrot.slane %v8672_v45, 7  ;;  %v6147_v30 = vrot.slane %v8704_v24, 1 }
0x1d3d   :  { %v5819_v16 = vadd.f32 %v7258_v29, %v5589_v2  ;;  %v5836_v51 = vadd.f32 %v8649_v27, %v5814_v62  ;;  %v5883_v3 = vmul.f32 0.1, %v5851_v54  ;;  %vm5867_vm9 = vcmp.ge.f32.partialorder %v5851_v54, 0.0 }
0x1d3e   :  { %v5790_v15 = vpop.f32.mrf.mxu1  ;;  %v5584_v21 = vadd.f32 %v5583_v23, %v8646_v36  ;;  %v8711_v37 = vsel %vm5864_vm15, %v5848_v59, %v5880_v53  ;;  %v5854_v39 = vadd.f32 %v5838_v49, %v8295_v0  ;;  %v5937_v2 = vrot.slane %v8682_v28, 7 }
0x1d3f   :  { %v5841_v5 = vadd.f32 %v8649_v27, %v5819_v16  ;;  %v5817_v41 = vadd.f32 %v5790_v15, %v5581_v40  ;;  %v5852_v31 = vadd.f32 %v5836_v51, %v8260_v18  ;;  %v8715_v8 = vsel %vm5867_vm9, %v5851_v54, %v5883_v3  ;;  %v9015_v40 = vld [vmem:[#allocation6_spill] sm:$0xff] }
0x1d40   :  { %v7259_v14 = vpop.f32.mrf.mxu1  ;;  %v5935_v59 = vrot.slane %v8711_v37, 7  ;;  %v5853_v16 = vadd.f32 %v5837_v50, %v9015_v40  ;;  %vm5870_vm9 = vcmp.ge.f32.partialorder %v5854_v39, 0.0  ;;  %v5886_v60 = vmul.f32 0.1, %v5854_v39 }
0x1d41   :  { %v5857_v44 = vadd.f32 %v5841_v5, %v8337_v19  ;;  %v5839_v1 = vadd.f32 %v8649_v27, %v5817_v41  ;;  %v5820_v43 = vadd.f32 %v7259_v14, %v5592_v58  ;;  %v5884_v57 = vmul.f32 0.1, %v5852_v31 }
0x1d42   :  { %v5793_v22 = vpop.f32.mrf.mxu1  ;;  %vm5868_vm0 = vcmp.ge.f32.partialorder %v5852_v31, 0.0  ;;  %v5879_v19 = vmul.f32 0.1, %v8697_v63  ;;  %v8754_v3 = vsel %vm47_vm1, %v5935_v59, %v5937_v2 }
0x1d43   :  { %v5842_v18 = vadd.f32 %v8649_v27, %v5820_v43  ;;  %v5818_v4 = vadd.f32 %v5793_v22, %v5584_v21  ;;  %v5889_v56 = vmul.f32 0.1, %v5857_v44  ;;  %v5855_v36 = vadd.f32 %v5839_v1, %v8309_v55  ;;  %v9014_v55 = vld [vmem:[#allocation7_spill] sm:$0xff] }
0x1d44   :  { %v8718_v12 = vsel %vm5868_vm0, %v5852_v31, %v5884_v57  ;;  %vm5873_vm5 = vcmp.ge.f32.partialorder %v5857_v44, 0.0  ;;  %v8762_v1 = vsel %vm5863_vm4, %v8697_v63, %v5879_v19  ;;  %v8765_v43 = vsel %vm5870_vm9, %v5854_v39, %v5886_v60 }
0x1d45   :  { %v5858_v26 = vadd.f32 %v5842_v18, %v8340_v35  ;;  %v5840_v42 = vadd.f32 %v8649_v27, %v5818_v4  ;;  %v5941_v35 = vrot.slane %v8715_v8, 7  ;;  %v5887_v62 = vmul.f32 0.1, %v5855_v36 }
0x1d46   :  { %v8728_v29 = vsel %vm5873_vm5, %v5857_v44, %v5889_v56  ;;  %v5943_v0 = vrot.slane %v8718_v12, 7  ;;  %vm5871_vm14 = vcmp.ge.f32.partialorder %v5855_v36, 0.0  ;;  %v8757_v44 = vsel %vm47_vm1, %v5937_v2, %v5939_v10 }
0x1d47   :  { %vm5874_vm6 = vcmp.ge.f32.partialorder %v5858_v26, 0.0  ;;  %v5890_v7 = vmul.f32 0.1, %v5858_v26  ;;  %v5856_v25 = vadd.f32 %v5840_v42, %v9014_v55  ;;  %v5953_v20 = vrot.slane %v8728_v29, 7 }
0x1d48   :  { %v5942_v23 = vsel %vm47_vm1, %v5939_v10, %v5941_v35  ;;  %v8743_v41 = vsel %vm5871_vm14, %v5855_v36, %v5887_v62  ;;  %v5944_v53 = vsel %vm47_vm1, %v5941_v35, %v5943_v0  ;;  %v5992_v57 = vpack.c.bf16 %v8757_v44, %v8754_v3 }
0x1d49   :  { %v8730_v27 = vsel %vm5874_vm6, %v5858_v26, %v5890_v7  ;;  %vm5872_vm15 = vcmp.ge.f32.partialorder %v5856_v25, 0.0  ;;  %v5888_v13 = vmul.f32 0.1, %v5856_v25  ;;  %v5981_v31 = vsel %vm8401_vm3, %v5942_v23, 0.0 }
0x1d4a   :  { %v6004_v54 = vpack.c.bf16 %v8730_v27, %v8728_v29  ;;  %v5909_v51 = vrot.slane %v8730_v27, 7  ;;  %v8751_v14 = vpack.c.bf16 %v5944_v53, %v5981_v31  ;;  %v5885_v21 = vmul.f32 0.1, %v5853_v16 }
0x1d4b   :  { %v8737_v15 = vsel %vm5872_vm15, %v5856_v25, %v5888_v13  ;;  %v5933_v18 = vrot.slane %v8762_v1, 7  ;;  %vm5869_vm3 = vcmp.ge.f32.partialorder %v5853_v16, 0.0  ;;  %v5949_v63 = vrot.slane %v8743_v41, 7 }
0x1d4c   :  { %v6036_v58 = vsel %vm373_vm8, %v6004_v54, 0  ;;  %v5951_v5 = vrot.slane %v8737_v15, 7  ;;  %v5955_v34 = vsel %vm47_vm1, %v5953_v20, %v5909_v51  ;;  %v6003_v49 = vpack.c.bf16 %v8737_v15, %v8743_v41 }
0x1d4d   :  { %7261 = vmatpush3.bf16.xpose.msra.mxu0 %v6036_v58  ;;  %v5999_v19 = vpack.c.bf16 %v8711_v37, %v8762_v1  ;;  %v5927_v4 = vrot.slane %v8704_v24, 7  ;;  %v5947_v36 = vrot.slane %v8765_v43, 7  ;;  %v8783_v26 = vsel %vm47_vm1, %v5931_v32, %v5933_v18 }
0x1d4e   :  { %7262 = vmatprep.subr.bf16.mxu0 %v9013_v6  ;;  %v5954_v52 = vsel %vm47_vm1, %v5951_v5, %v5953_v20  ;;  %v8786_v50 = vsel %vm47_vm1, %v5933_v18, %v5935_v59  ;;  %v5952_v42 = vsel %vm47_vm1, %v5949_v63, %v5951_v5  ;;  %v8801_v2 = vsel %vm47_vm1, %v5929_v9, %v5931_v32 }
0x1d4f   :  { %v5996_v22 = vpack.c.bf16 %v5955_v34, %v5954_v52  ;;  %v5991_v39 = vpack.c.bf16 %v8786_v50, %v8783_v26  ;;  %v8794_v7 = vsel %vm47_vm1, %v5927_v4, %v5929_v9  ;;  %v6033_v10 = vsel %vm373_vm8, %v6003_v49, 0 }
0x1d50   :  { %v8805_v55 = vsel %vm5869_vm3, %v5853_v16, %v5885_v21  ;;  %v5990_v25 = vpack.c.bf16 %v8801_v2, %v8794_v7  ;;  %v8813_v35 = vsel %vm5859_vm13, %v8667_v17, %v8676_v47  ;;  %v5950_v59 = vsel %vm47_vm1, %v5947_v36, %v5949_v63 }
0x1d51   :  { %v6103_v56 = vsel %vm373_vm8, %v5996_v22, 0  ;;  %v5926_v9 = vrot.slane %v8813_v35, 7  ;;  %v5997_v32 = vpack.c.bf16 %v8704_v24, %v8813_v35  ;;  %v5995_v62 = vpack.c.bf16 %v5952_v42, %v5950_v59 }
0x1d52   :  { %7281 = vmatpush3.bf16.xpose.msra.mxu1 %v6103_v56  ;;  %v6002_v13 = vpack.c.bf16 %v8765_v43, %v8805_v55  ;;  %v5945_v54 = vrot.slane %v8805_v55, 7  ;;  %v6161_v47 = vrot.slane %v8715_v8, 1  ;;  %v6157_v16 = vrot.slane %v8682_v28, 1 }
0x1d53   :  { %7282 = vmatprep.subr.bf16.mxu1 %v9013_v6  ;;  %v5928_v40 = vsel %vm47_vm1, %v5926_v9, %v5927_v4  ;;  %v5972_v17 = vsel %vm47_vm1, %v5909_v51, %v5926_v9  ;;  %v6149_v60 = vrot.slane %v8661_v46, 1  ;;  %v6165_v58 = vrot.slane %v8805_v55, 1 }
0x1d54   :  { %v5973_v20 = vsel %vm8351_vm11, %v5972_v17, 0.0  ;;  %v5946_v23 = vsel %vm47_vm1, %v5943_v0, %v5945_v54  ;;  %v6163_v53 = vrot.slane %v8718_v12, 1  ;;  %v6100_v51 = vsel %vm373_vm8, %v5995_v62, 0 }
0x1d55   :  { %7263 = vmatpush3.bf16.xpose.msra.mxu0 %v6033_v10  ;;  %v8834_v5 = vpack.c.bf16 %v5928_v40, %v5973_v20  ;;  %v6030_v31 = vsel %vm373_vm8, %v6002_v13, 0  ;;  %v6159_v52 = vrot.slane %v8672_v45, 1  ;;  %v6155_v34 = vrot.slane %v8711_v37, 1  ;;  %v5907_v37 = vld [vmem:[#allocation3 + $0x370] sm:$0x1] }
0x1d56   :  { %7264 = vmatprep.subr.bf16.mxu0 %v9013_v6  ;;  %v5948_v38 = vsel %vm47_vm1, %v5945_v54, %v5947_v36  ;;  %v6153_v21 = vrot.slane %v8762_v1, 1  ;;  %v8844_v22 = vsel %vm259_vm2, %v6161_v47, %v6163_v53  ;;  %v8849_v0 = vsel %vm259_vm2, %v6163_v53, %v6165_v58 }
0x1d57   :  { %v5994_v49 = vpack.c.bf16 %v5948_v38, %v5946_v23  ;;  %v6215_v18 = vpack.c.bf16 %v8849_v0, %v8844_v22  ;;  %v6160_v63 = vsel %vm259_vm2, %v6157_v16, %v6159_v52  ;;  %v6162_v4 = vsel %vm259_vm2, %v6159_v52, %v6161_v47 }
0x1d58   :  { %v6202_v56 = vsel %vm8277_vm10, %v6162_v4, 0.0  ;;  %v8859_v36 = vsel %vm259_vm2, %v6153_v21, %v6155_v34  ;;  %v8862_v42 = vsel %vm259_vm2, %v6155_v34, %v6157_v16  ;;  %v6151_v10 = vrot.slane %v8656_v33, 1 }
0x1d59   :  { %v6146_v59 = vrot.slane %v8813_v35, 1  ;;  %v8867_v9 = vpack.c.bf16 %v6202_v56, %v6160_v63  ;;  %v6213_v62 = vpack.c.bf16 %v8862_v42, %v8859_v36  ;;  %v6001_v40 = vpack.c.bf16 %v8718_v12, %v8715_v8  ;;  %v6296_v36 = vpop.permute.xlu1 %6295 }
0x1d5a   :  { %7283 = vmatpush3.bf16.xpose.msra.mxu1 %v6100_v51  ;;  %v8873_v13 = vsel %vm259_vm2, %v6149_v60, %v6151_v10  ;;  %v8876_v54 = vsel %vm259_vm2, %v6151_v10, %v6153_v21  ;;  %v8886_v16 = vsel %vm259_vm2, %v6147_v30, %v6149_v60  ;;  %v6097_v20 = vsel %vm373_vm8, %v5994_v49, 0 }
0x1d5b   :  { %7284 = vmatprep.subr.bf16.mxu1 %v9013_v6  ;;  %v6212_v17 = vpack.c.bf16 %v8876_v54, %v8873_v13  ;;  %v8883_v47 = vsel %vm259_vm2, %v6146_v59, %v6147_v30  ;;  %v6027_v53 = vsel %vm373_vm8, %v6001_v40, 0  ;;  %v6094_v8 = vsel %vm373_vm8, %v8751_v14, 0 }
0x1d5c   :  { %v6211_v23 = vpack.c.bf16 %v8886_v16, %v8883_v47  ;;  %v6024_v12 = vsel %vm373_vm8, %v6000_v11, 0  ;;  %v6091_v60 = vsel %vm373_vm8, %v5992_v57, 0  ;;  %v6021_v14 = vsel %vm373_vm8, %v5999_v19, 0 }
0x1d5d   :  { %7265 = vmatpush3.bf16.xpose.msra.mxu0 %v6030_v31  ;;  %v6088_v45 = vsel %vm373_vm8, %v5991_v39, 0  ;;  %v6018_v28 = vsel %vm373_vm8, %v5998_v61, 0  ;;  %v6175_v11 = vrot.slane %v8730_v27, 1  ;;  %v6085_v3 = vsel %vm373_vm8, %v5990_v25, 0 }
0x1d5e   :  { %7266 = vmatprep.subr.bf16.mxu0 %v9013_v6  ;;  %v6173_v1 = vrot.slane %v8728_v29, 1  ;;  %v6015_v33 = vsel %vm373_vm8, %v5997_v32, 0  ;;  %v6526_v46 = vcombine.low %v5907_v37, %v5907_v37  ;;  %v6171_v29 = vrot.slane %v8737_v15, 1  ;;  %v7425_v31 = vld [vmem:[#allocation3 + $0x370] ss:$0 sps:$4 sm:$0x22]  }
0x1d5f   :  { %v6194_v44 = vsel %vm259_vm2, %v6175_v11, %v6146_v59  ;;  %v6082_v24 = vsel %vm373_vm8, %v8834_v5, 0  ;;  %v6169_v26 = vrot.slane %v8743_v41, 1  ;;  %v6167_v41 = vrot.slane %v8765_v43, 1 }
0x1d60   :  { %v6176_v61 = vsel %vm259_vm2, %v6173_v1, %v6175_v11  ;;  %v6210_v27 = vsel %vm8355_vm12, %v6194_v44, 0.0  ;;  %v6009_v57 = vshrl.u32 %v6526_v46, 16  ;;  %v6174_v39 = vsel %vm259_vm2, %v6171_v29, %v6173_v1 }
0x1d61   :  { %v6218_v19 = vpack.c.bf16 %v6210_v27, %v6176_v61  ;;  %v6172_v48 = vsel %vm259_vm2, %v6169_v26, %v6171_v29  ;;  %v6170_v2 = vsel %vm259_vm2, %v6167_v41, %v6169_v26  ;;  %v6168_v25 = vsel %vm259_vm2, %v6165_v58, %v6167_v41 }
0x1d62   :  { %7285 = vmatpush3.bf16.xpose.msra.mxu1 %v6097_v20  ;;  %v6217_v15 = vpack.c.bf16 %v6174_v39, %v6172_v48  ;;  %v6216_v35 = vpack.c.bf16 %v6170_v2, %v6168_v25  ;;  %v6239_v43 = vsel %vm373_vm8, %v6215_v18, 0  ;;  %v6236_v5 = vsel %vm373_vm8, %v8867_v9, 0 }
0x1d63   :  { %7286 = vmatprep.subr.bf16.mxu1 %v9013_v6  ;;  %v6248_v50 = vsel %vm373_vm8, %v6218_v19, 0  ;;  %v6233_v55 = vsel %vm373_vm8, %v6213_v62, 0  ;;  %v6230_v58 = vsel %vm373_vm8, %v6212_v17, 0  ;;  %v6227_v51 = vsel %vm373_vm8, %v6211_v23, 0 }
0x1d64   :  { %v6245_v7 = vsel %vm373_vm8, %v6217_v15, 0  ;;  %v6242_v32 = vsel %vm373_vm8, %v6216_v35, 0  ;;  %v6222_v52 = vrot.slane %v7425_v31, 1 }
0x1d65   :  { %7267 = vmatpush3.bf16.xpose.msra.mxu0 %v6027_v53 }
0x1d66   :  { %7268 = vmatprep.subr.bf16.mxu0 %v9013_v6 }
0x1d6a   :  { %7287 = vmatpush3.bf16.xpose.msra.mxu1 %v6094_v8 }
0x1d6b   :  { %7288 = vmatprep.subr.bf16.mxu1 %v9013_v6 }
0x1d6d   :  { %7269 = vmatpush3.bf16.xpose.msra.mxu0 %v6024_v12 }
0x1d6e   :  { %7270 = vmatprep.subr.bf16.mxu0 %v9013_v6 }
0x1d72   :  { %7289 = vmatpush3.bf16.xpose.msra.mxu1 %v6091_v60 }
0x1d73   :  { %7290 = vmatprep.subr.bf16.mxu1 %v9013_v6 }
0x1d75   :  { %7271 = vmatpush3.bf16.xpose.msra.mxu0 %v6021_v14 }
0x1d76   :  { %7272 = vmatprep.subr.bf16.mxu0 %v9013_v6 }
0x1d7a   :  { %7291 = vmatpush3.bf16.xpose.msra.mxu1 %v6088_v45 }
0x1d7b   :  { %7292 = vmatprep.subr.bf16.mxu1 %v9013_v6 }
0x1d7d   :  { %7273 = vmatpush3.bf16.xpose.msra.mxu0 %v6018_v28 }
0x1d7e   :  { %7274 = vmatprep.subr.bf16.mxu0 %v9013_v6 }
0x1d82   :  { %7293 = vmatpush3.bf16.xpose.msra.mxu1 %v6085_v3 }
0x1d83   :  { %7294 = vmatprep.subr.bf16.mxu1 %v9013_v6 }
0x1d85   :  { %7275 = vmatpush3.bf16.xpose.msra.mxu0 %v6015_v33 }
0x1d86   :  { %7300 = vmatprep.subr.bf16.mxu0 %v9013_v6 }
0x1d8a   :  { %7295 = vmatpush3.bf16.xpose.msra.mxu1 %v6082_v24 }
0x1d8c   :  { %7277 = vmatmul.mubr.msk.bf16.vlgmr.msra.gmra.mxu0 %vm373_vm8, %v6009_v57 }
0x1d8d   :  { %7301 = vmatpush3.bf16.xpose.msra.mxu0 %v6248_v50  ;;  %7316 = vmatprep.mubr.msk.bf16.mxu0 %vm7566_vm7, %v9013_v6 }
0x1d8e   :  { %7302 = vmatprep.subr.bf16.mxu0 %v9013_v6 }
0x1d91   :  { %7297 = vmatmul.mubr.msk.bf16.vlgmr.msra.gmra.mxu1 %vm373_vm8, %v5907_v37 }
0x1d95   :  { %7303 = vmatpush3.bf16.xpose.msra.mxu0 %v6245_v7 }
0x1d96   :  { %7304 = vmatprep.subr.bf16.mxu0 %v9013_v6 }
0x1d9d   :  { %7305 = vmatpush3.bf16.xpose.msra.mxu0 %v6242_v32 }
0x1d9e   :  { %7306 = vmatprep.subr.bf16.mxu0 %v9013_v6 }
0x1da5   :  { %7307 = vmatpush3.bf16.xpose.msra.mxu0 %v6239_v43 }
0x1da6   :  { %7308 = vmatprep.subr.bf16.mxu0 %v9013_v6 }
0x1dad   :  { %7309 = vmatpush3.bf16.xpose.msra.mxu0 %v6236_v5 }
0x1dae   :  { %7310 = vmatprep.subr.bf16.mxu0 %v9013_v6 }
0x1db5   :  { %7311 = vmatpush3.bf16.xpose.msra.mxu0 %v6233_v55 }
0x1db6   :  { %7312 = vmatprep.subr.bf16.mxu0 %v9013_v6 }
0x1dbd   :  { %7313 = vmatpush3.bf16.xpose.msra.mxu0 %v6230_v58 }
0x1dbe   :  { %7314 = vmatprep.subr.bf16.mxu0 %v9013_v6 }
0x1dc5   :  { %7315 = vmatpush3.bf16.xpose.msra.mxu0 %v6227_v51 }
0x1dcc   :  { %7317 = vmatmul.mubr.msk.bf16.vlgmr.msra.gmra.mxu0 %vm373_vm8, %v6222_v52 }
0x1e4c   :  { %v6072_v34 = vpop.f32.mrf.mxu0 }
0x1e4e   :  { %v7278_v38 = vpop.f32.mrf.mxu0 }
0x1e50   :  { %v6075_v21 = vpop.f32.mrf.mxu0 }
0x1e51   :  { %v6139_v0 = vpop.f32.mrf.mxu1 }
0x1e52   :  { %v7279_v22 = vpop.f32.mrf.mxu0  ;;  %v6140_v4 = vadd.f32 %v6139_v0, %v6072_v34 }
0x1e53   :  { %v7298_v49 = vpop.f32.mrf.mxu1 }
0x1e55   :  { %v6142_v18 = vpop.f32.mrf.mxu1 }
0x1e57   :  { %v7299_v63 = vpop.f32.mrf.mxu1 }
0x1e8c   :  { %v6284_v6 = vpop.f32.mrf.mxu0 }
0x1e8d   :  { %v6290_v56 = vadd.f32 %v6284_v6, %v6140_v4 }
0x1e8e   :  { %v7318_v42 = vpop.f32.mrf.mxu0 }
0x1e8f   :  { %v6298_v10 = vadd.f32 %v6296_v36, %v6290_v56 }
0x1e90   :  { %v6287_v59 = vpop.f32.mrf.mxu0 }
0x1e91   :  { %7538 = vtanh.f32 %v6298_v10 }
0x1e92   :  { %v7319_v9 = vpop.f32.mrf.mxu0 }
0x1e9e   :  { %v7539_v62 = vpop.eup %7538 }
0x1e9f   :  { %6300 = vst [vmem:[%s8990_s5] sm:$0x1] %v7539_v62 }
0x1ea0   :  { %6305 = vsyncpa [#allocation4], 1 }

</bundles_post_ra>
